<compile_context>
chip_gen: v6e
topology: v6e:2x2x1
jax: 0.10.0
libtpu: 0.0.40
codegen_flags: <defaults>
</compile_context>

<pallas_src>
import jax
import jax.numpy as jnp
from jax.experimental import pallas as pl
from jax.experimental.pallas import tpu as pltpu

# Fixed hidden widths from the module definition.
H1, H2, H3, H4 = 768, 512, 256, 128


def spk_head_kernel(x_ref,
                    w1_ref, b1_ref,
                    w2_ref, b2_ref,
                    w3_ref, b3_ref,
                    w4_ref, b4_ref,
                    w5_ref, b5_ref,
                    o_ref):
    # Activations enter each MXU matmul as bf16; accumulation is f32.
    # Bias-add + ReLU run in f32 on the VPU.
    h = x_ref[...].astype(jnp.bfloat16)

    # Layer 1: [tb, dim] @ [dim, 768] + b1, ReLU   (Dropout = identity in eval)
    h = jnp.dot(h, w1_ref[...], preferred_element_type=jnp.float32)
    h = jnp.maximum(h + b1_ref[...], 0.0).astype(jnp.bfloat16)

    # Layer 2: [tb, 768] @ [768, 512] + b2, ReLU
    h = jnp.dot(h, w2_ref[...], preferred_element_type=jnp.float32)
    h = jnp.maximum(h + b2_ref[...], 0.0).astype(jnp.bfloat16)

    # Layer 3: [tb, 512] @ [512, 256] + b3, ReLU
    h = jnp.dot(h, w3_ref[...], preferred_element_type=jnp.float32)
    h = jnp.maximum(h + b3_ref[...], 0.0).astype(jnp.bfloat16)

    # Layer 4: [tb, 256] @ [256, 128] + b4, ReLU
    h = jnp.dot(h, w4_ref[...], preferred_element_type=jnp.float32)
    h = jnp.maximum(h + b4_ref[...], 0.0).astype(jnp.bfloat16)

    # Layer 5 (logits, lane-padded to a multiple of 128, no activation):
    # [tb, 128] @ [128, n_spk_pad] + b5 -> lane-dense unmasked store.
    h = jnp.dot(h, w5_ref[...], preferred_element_type=jnp.float32)
    o_ref[...] = (h + b5_ref[...]).astype(o_ref.dtype)


def _hw_config():
    """Generation-aware VMEM budget + largest single batch tile."""
    try:
        cap = int(pltpu.get_tpu_info().vmem_capacity_bytes)
    except Exception:
        cap = 64 << 20                       # conservative (v7x-sized) default
    if cap >= (96 << 20):                    # v5e / v6e: 128 MiB physical VMEM
        return (100 << 20), 1024
    else:                                    # v7x: 64 MiB per TensorCore
        return (48 << 20), 512


def _pick_tile_b(B, max_tile_b):
    """Small/medium batches: ONE full-batch tile (cost is the one-time weight
    fetch, not pipelining).  Only split very large batches, and then only into
    MXU-filling tiles (multiples of 256 rows: fills v6e/v7x 256-row MXU and is
    2x the v5e 128-row MXU)."""
    if B <= max_tile_b:
        return B
    for cand in range(max_tile_b, 255, -256):
        if cand % 256 == 0 and B % cand == 0:
            return cand
    for cand in range(max_tile_b, 15, -16):   # fallback: any multiple-of-16 divisor
        if B % cand == 0:
            return cand
    return B                                  # awkward batch size: single tile


def prepare_params(params):
    """ONE-TIME parameter preparation (do NOT call per forward step):
      * weights -> bf16 (halves weight HBM/DMA bytes, native bf16 MXU input)
      * biases  -> f32  (bias-add + ReLU run in f32 on the VPU)
      * logit layer zero-padded to a lane-dense multiple of 128.
    Returns (prepared_param_dict, n_spk)."""
    n_spk = params["w5"].shape[1]
    n_spk_pad = pl.cdiv(n_spk, 128) * 128
    pad = n_spk_pad - n_spk
    prepped = {}
    for i in range(1, 6):
        w = params[f"w{i}"].astype(jnp.bfloat16)
        b = params[f"b{i}"].astype(jnp.float32)
        if i == 5 and pad:
            w = jnp.pad(w, ((0, 0), (0, pad)))
            b = jnp.pad(b, ((0, 0), (0, pad)))
        prepped[f"w{i}"], prepped[f"b{i}"] = w, b
    return prepped, n_spk


def spk_head_forward(x, prepped, n_spk, *, tile_b=None, single_buffer_weights=True):
    """x: [B, dim] (f32 or bf16).  prepped: output of prepare_params()."""
    B, dim = x.shape
    n_spk_pad = prepped["w5"].shape[1]

    vmem_limit, max_tile_b = _hw_config()
    if tile_b is None:
        tile_b = _pick_tile_b(B, max_tile_b)
    if B % tile_b != 0 or (tile_b != B and tile_b % 16 != 0):
        tile_b = B                                # keep blocks legal ((8,128) rule)
    grid = (B // tile_b,)

    def resident(arr):
        # Whole-array block with a constant index_map: fetched from HBM exactly
        # once and resident in VMEM for the entire grid.  Single-buffered so the
        # dead second pipeline buffer doesn't double weight VMEM.
        if single_buffer_weights and hasattr(pl, "Buffered"):
            return pl.BlockSpec(arr.shape, lambda i: (0, 0),
                                pipeline_mode=pl.Buffered(1))
        return pl.BlockSpec(arr.shape, lambda i: (0, 0))

    in_specs = [
        pl.BlockSpec((tile_b, dim), lambda i: (i, 0)),           # x batch tile
        resident(prepped["w1"]), resident(prepped["b1"]),
        resident(prepped["w2"]), resident(prepped["b2"]),
        resident(prepped["w3"]), resident(prepped["b3"]),
        resident(prepped["w4"]), resident(prepped["b4"]),
        resident(prepped["w5"]), resident(prepped["b5"]),
    ]
    out_spec = pl.BlockSpec((tile_b, n_spk_pad), lambda i: (i, 0))

    # Dual-TC "parallel" sharding only pays when each TC gets MXU-filling tiles;
    # otherwise splitting just doubles the weight DMA (one copy per TC's VMEM).
    dims_sem = ("parallel",) if (grid[0] > 1 and tile_b >= 256) else ("arbitrary",)

    # Advisory cost estimate for XLA's scheduler around this custom call.
    flops = 2 * B * (dim * H1 + H1 * H2 + H2 * H3 + H3 * H4 + H4 * n_spk_pad)
    bytes_weights = sum(int(v.size) * v.dtype.itemsize for v in prepped.values())
    bytes_io = int(x.size) * x.dtype.itemsize + B * n_spk_pad * 4
    cost = pl.CostEstimate(flops=flops, transcendentals=0,
                           bytes_accessed=bytes_weights + bytes_io)

    out_padded = pl.pallas_call(
        spk_head_kernel,
        out_shape=jax.ShapeDtypeStruct((B, n_spk_pad), jnp.float32),
        grid_spec=pltpu.PrefetchScalarGridSpec(
            num_scalar_prefetch=0,
            grid=grid,
            in_specs=in_specs,
            out_specs=out_spec,
        ),
        compiler_params=pltpu.CompilerParams(
            dimension_semantics=dims_sem,
            vmem_limit_bytes=vmem_limit,
        ),
        cost_estimate=cost,
    )(
        x,
        prepped["w1"], prepped["b1"],
        prepped["w2"], prepped["b2"],
        prepped["w3"], prepped["b3"],
        prepped["w4"], prepped["b4"],
        prepped["w5"], prepped["b5"],
    )
    # TODO(synk): fuse this narrow slice into the consumer (or emit bf16 logits)
    # to avoid the padded-column writeback + external re-slice when n_spk << 128.
    return out_padded[:, :n_spk]


def init_params(key, dim, n_spk):
    """Deterministic synthetic init.  Weights [in,out] f32; biases [1,out] f32."""
    dims = [(dim, H1), (H1, H2), (H2, H3), (H3, H4), (H4, n_spk)]
    params = {}
    for idx, (fan_in, fan_out) in enumerate(dims, start=1):
        key, kw, kb = jax.random.split(key, 3)
        scale = 1.0 / jnp.sqrt(jnp.float32(fan_in))
        params[f"w{idx}"] = jax.random.normal(kw, (fan_in, fan_out), jnp.float32) * scale
        params[f"b{idx}"] = jax.random.normal(kb, (1, fan_out), jnp.float32) * 0.01
    return params


def reference_forward_f32(x, params):
    """Pure f32 reference (module semantics, dropout = identity)."""
    h = x
    for i in range(1, 5):
        h = jnp.maximum(h @ params[f"w{i}"] + params[f"b{i}"], 0.0)
    return h @ params["w5"] + params["b5"]


def reference_forward_mixed(x, params):
    """Reference mirroring the kernel's precision: bf16 MXU inputs, f32 accumulate."""
    h = x
    for i in range(1, 6):
        w = params[f"w{i}"].astype(jnp.bfloat16)
        h = jnp.dot(h.astype(jnp.bfloat16), w, preferred_element_type=jnp.float32)
        h = h + params[f"b{i}"]
        if i < 5:
            h = jnp.maximum(h, 0.0)
    return h


if __name__ == "__main__":
    key = jax.random.PRNGKey(0)
    # Small, module-consistent shapes.  B=16 runs as a single full-batch tile.
    B, dim, n_spk = 16, 32, 16
    key, kx, kp = jax.random.split(key, 3)
    x = jax.random.normal(kx, (B, dim), jnp.float32)
    params = init_params(kp, dim, n_spk)

    # One-time parameter preparation (bf16 + lane-padded logit layer).
    prepped, n_spk_real = prepare_params(params)

    try:
        out = spk_head_forward(x, prepped, n_spk_real)
    except Exception:
        # Fallback for Pallas builds without BlockSpec pipeline_mode support.
        out = spk_head_forward(x, prepped, n_spk_real, single_buffer_weights=False)
    out = jax.block_until_ready(out)
    assert out.shape == (B, n_spk)

    ref_mixed = reference_forward_mixed(x, params)   # same precision as kernel
    ref_f32 = reference_forward_f32(x, params)       # original f32 semantics
    assert jnp.allclose(out, ref_mixed, atol=1e-2, rtol=1e-2), \
        "mismatch vs mixed-precision JAX reference"
    assert jnp.allclose(out, ref_f32, atol=1e-1, rtol=1e-1), \
        "mismatch vs f32 JAX reference (beyond bf16 tolerance)"

    print("KERNEL_OK")
</pallas_src>

<mosaic_0001>
module attributes {stable_mosaic.version = 11 : i64} {
  func.func @spk_head_kernel(%arg0: i32, %arg1: memref<16x32xf32, #tpu.memory_space<vmem>>, %arg2: memref<32x768xbf16, #tpu.memory_space<vmem>>, %arg3: memref<1x768xf32, #tpu.memory_space<vmem>>, %arg4: memref<768x512xbf16, #tpu.memory_space<vmem>>, %arg5: memref<1x512xf32, #tpu.memory_space<vmem>>, %arg6: memref<512x256xbf16, #tpu.memory_space<vmem>>, %arg7: memref<1x256xf32, #tpu.memory_space<vmem>>, %arg8: memref<256x128xbf16, #tpu.memory_space<vmem>>, %arg9: memref<1x128xf32, #tpu.memory_space<vmem>>, %arg10: memref<128x128xbf16, #tpu.memory_space<vmem>>, %arg11: memref<1x128xf32, #tpu.memory_space<vmem>>, %arg12: memref<16x128xf32, #tpu.memory_space<vmem>>) attributes {dimension_semantics = [#tpu.dimension_semantics<arbitrary>], iteration_bounds = array<i64: 1>, scalar_prefetch = 0 : i64, scratch_operands = 0 : i64, tpu.core_type = #tpu.core_type<tc>, window_params = [{transform_indices = @transform_0, window_bounds = array<i64: 16, 32>}, {pipeline_mode = #tpu.pipeline_mode<synchronous>, transform_indices = @transform_1, window_bounds = array<i64: 32, 768>}, {pipeline_mode = #tpu.pipeline_mode<synchronous>, transform_indices = @transform_2, window_bounds = array<i64: 1, 768>}, {pipeline_mode = #tpu.pipeline_mode<synchronous>, transform_indices = @transform_3, window_bounds = array<i64: 768, 512>}, {pipeline_mode = #tpu.pipeline_mode<synchronous>, transform_indices = @transform_4, window_bounds = array<i64: 1, 512>}, {pipeline_mode = #tpu.pipeline_mode<synchronous>, transform_indices = @transform_5, window_bounds = array<i64: 512, 256>}, {pipeline_mode = #tpu.pipeline_mode<synchronous>, transform_indices = @transform_6, window_bounds = array<i64: 1, 256>}, {pipeline_mode = #tpu.pipeline_mode<synchronous>, transform_indices = @transform_7, window_bounds = array<i64: 256, 128>}, {pipeline_mode = #tpu.pipeline_mode<synchronous>, transform_indices = @transform_8, window_bounds = array<i64: 1, 128>}, {pipeline_mode = #tpu.pipeline_mode<synchronous>, transform_indices = @transform_9, window_bounds = array<i64: 128, 128>}, {pipeline_mode = #tpu.pipeline_mode<synchronous>, transform_indices = @transform_10, window_bounds = array<i64: 1, 128>}, {transform_indices = @transform_11, window_bounds = array<i64: 16, 128>}]} {
    %c0 = arith.constant 0 : index
    %c0_0 = arith.constant 0 : index
    %0 = vector.load %arg1[%c0, %c0_0] : memref<16x32xf32, #tpu.memory_space<vmem>>, vector<16x32xf32>
    %1 = arith.truncf %0 : vector<16x32xf32> to vector<16x32xbf16>
    %c0_1 = arith.constant 0 : index
    %c0_2 = arith.constant 0 : index
    %2 = vector.load %arg2[%c0_1, %c0_2] : memref<32x768xbf16, #tpu.memory_space<vmem>>, vector<32x768xbf16>
    %cst = arith.constant dense<0.000000e+00> : vector<16x768xf32>
    %3 = tpu.matmul %1, %2, %cst {dimension_numbers = #tpu.dot_dimension_numbers<[1], [0], [0], [1], [0, 0, 1, 1], [], []>} : vector<16x32xbf16>, vector<32x768xbf16>, vector<16x768xf32> -> vector<16x768xf32>
    %c0_3 = arith.constant 0 : index
    %c0_4 = arith.constant 0 : index
    %4 = vector.load %arg3[%c0_3, %c0_4] : memref<1x768xf32, #tpu.memory_space<vmem>>, vector<1x768xf32>
    %5 = vector.broadcast %4 : vector<1x768xf32> to vector<16x768xf32>
    %6 = arith.addf %3, %5 : vector<16x768xf32>
    %cst_5 = arith.constant 0.000000e+00 : f32
    %7 = vector.broadcast %cst_5 : f32 to vector<16x768xf32>
    %8 = arith.maximumf %6, %7 : vector<16x768xf32>
    %9 = arith.truncf %8 : vector<16x768xf32> to vector<16x768xbf16>
    %c0_6 = arith.constant 0 : index
    %c0_7 = arith.constant 0 : index
    %10 = vector.load %arg4[%c0_6, %c0_7] : memref<768x512xbf16, #tpu.memory_space<vmem>>, vector<768x512xbf16>
    %cst_8 = arith.constant dense<0.000000e+00> : vector<16x512xf32>
    %11 = tpu.matmul %9, %10, %cst_8 {dimension_numbers = #tpu.dot_dimension_numbers<[1], [0], [0], [1], [0, 0, 1, 1], [], []>} : vector<16x768xbf16>, vector<768x512xbf16>, vector<16x512xf32> -> vector<16x512xf32>
    %c0_9 = arith.constant 0 : index
    %c0_10 = arith.constant 0 : index
    %12 = vector.load %arg5[%c0_9, %c0_10] : memref<1x512xf32, #tpu.memory_space<vmem>>, vector<1x512xf32>
    %13 = vector.broadcast %12 : vector<1x512xf32> to vector<16x512xf32>
    %14 = arith.addf %11, %13 : vector<16x512xf32>
    %cst_11 = arith.constant 0.000000e+00 : f32
    %15 = vector.broadcast %cst_11 : f32 to vector<16x512xf32>
    %16 = arith.maximumf %14, %15 : vector<16x512xf32>
    %17 = arith.truncf %16 : vector<16x512xf32> to vector<16x512xbf16>
    %c0_12 = arith.constant 0 : index
    %c0_13 = arith.constant 0 : index
    %18 = vector.load %arg6[%c0_12, %c0_13] : memref<512x256xbf16, #tpu.memory_space<vmem>>, vector<512x256xbf16>
    %cst_14 = arith.constant dense<0.000000e+00> : vector<16x256xf32>
    %19 = tpu.matmul %17, %18, %cst_14 {dimension_numbers = #tpu.dot_dimension_numbers<[1], [0], [0], [1], [0, 0, 1, 1], [], []>} : vector<16x512xbf16>, vector<512x256xbf16>, vector<16x256xf32> -> vector<16x256xf32>
    %c0_15 = arith.constant 0 : index
    %c0_16 = arith.constant 0 : index
    %20 = vector.load %arg7[%c0_15, %c0_16] : memref<1x256xf32, #tpu.memory_space<vmem>>, vector<1x256xf32>
    %21 = vector.broadcast %20 : vector<1x256xf32> to vector<16x256xf32>
    %22 = arith.addf %19, %21 : vector<16x256xf32>
    %cst_17 = arith.constant 0.000000e+00 : f32
    %23 = vector.broadcast %cst_17 : f32 to vector<16x256xf32>
    %24 = arith.maximumf %22, %23 : vector<16x256xf32>
    %25 = arith.truncf %24 : vector<16x256xf32> to vector<16x256xbf16>
    %c0_18 = arith.constant 0 : index
    %c0_19 = arith.constant 0 : index
    %26 = vector.load %arg8[%c0_18, %c0_19] : memref<256x128xbf16, #tpu.memory_space<vmem>>, vector<256x128xbf16>
    %cst_20 = arith.constant dense<0.000000e+00> : vector<16x128xf32>
    %27 = tpu.matmul %25, %26, %cst_20 {dimension_numbers = #tpu.dot_dimension_numbers<[1], [0], [0], [1], [0, 0, 1, 1], [], []>} : vector<16x256xbf16>, vector<256x128xbf16>, vector<16x128xf32> -> vector<16x128xf32>
    %c0_21 = arith.constant 0 : index
    %c0_22 = arith.constant 0 : index
    %28 = vector.load %arg9[%c0_21, %c0_22] : memref<1x128xf32, #tpu.memory_space<vmem>>, vector<1x128xf32>
    %29 = vector.broadcast %28 : vector<1x128xf32> to vector<16x128xf32>
    %30 = arith.addf %27, %29 : vector<16x128xf32>
    %cst_23 = arith.constant 0.000000e+00 : f32
    %31 = vector.broadcast %cst_23 : f32 to vector<16x128xf32>
    %32 = arith.maximumf %30, %31 : vector<16x128xf32>
    %33 = arith.truncf %32 : vector<16x128xf32> to vector<16x128xbf16>
    %c0_24 = arith.constant 0 : index
    %c0_25 = arith.constant 0 : index
    %34 = vector.load %arg10[%c0_24, %c0_25] : memref<128x128xbf16, #tpu.memory_space<vmem>>, vector<128x128xbf16>
    %cst_26 = arith.constant dense<0.000000e+00> : vector<16x128xf32>
    %35 = tpu.matmul %33, %34, %cst_26 {dimension_numbers = #tpu.dot_dimension_numbers<[1], [0], [0], [1], [0, 0, 1, 1], [], []>} : vector<16x128xbf16>, vector<128x128xbf16>, vector<16x128xf32> -> vector<16x128xf32>
    %c0_27 = arith.constant 0 : index
    %c0_28 = arith.constant 0 : index
    %36 = vector.load %arg11[%c0_27, %c0_28] : memref<1x128xf32, #tpu.memory_space<vmem>>, vector<1x128xf32>
    %37 = vector.broadcast %36 : vector<1x128xf32> to vector<16x128xf32>
    %38 = arith.addf %35, %37 : vector<16x128xf32>
    %c0_29 = arith.constant 0 : index
    %c0_30 = arith.constant 0 : index
    %39 = vector.load %arg12[%c0_29, %c0_30] : memref<16x128xf32, #tpu.memory_space<vmem>>, vector<16x128xf32>
    tpu.vector_store %arg12[%c0_29, %c0_30], %38 {strides = array<i32>} : memref<16x128xf32, #tpu.memory_space<vmem>>, vector<16x128xf32>,
    return
  }
  func.func @transform_0(%arg0: i32) -> (i32, i32) {
    %c0_i32 = arith.constant 0 : i32
    %c0_i32_0 = arith.constant 0 : i32
    return %arg0, %c0_i32 : i32, i32
  }
  func.func @transform_1(%arg0: i32) -> (i32, i32) {
    %c0_i32 = arith.constant 0 : i32
    %c0_i32_0 = arith.constant 0 : i32
    %c0_i32_1 = arith.constant 0 : i32
    return %c0_i32, %c0_i32_0 : i32, i32
  }
  func.func @transform_2(%arg0: i32) -> (i32, i32) {
    %c0_i32 = arith.constant 0 : i32
    %c0_i32_0 = arith.constant 0 : i32
    %c0_i32_1 = arith.constant 0 : i32
    return %c0_i32, %c0_i32_0 : i32, i32
  }
  func.func @transform_3(%arg0: i32) -> (i32, i32) {
    %c0_i32 = arith.constant 0 : i32
    %c0_i32_0 = arith.constant 0 : i32
    %c0_i32_1 = arith.constant 0 : i32
    return %c0_i32, %c0_i32_0 : i32, i32
  }
  func.func @transform_4(%arg0: i32) -> (i32, i32) {
    %c0_i32 = arith.constant 0 : i32
    %c0_i32_0 = arith.constant 0 : i32
    %c0_i32_1 = arith.constant 0 : i32
    return %c0_i32, %c0_i32_0 : i32, i32
  }
  func.func @transform_5(%arg0: i32) -> (i32, i32) {
    %c0_i32 = arith.constant 0 : i32
    %c0_i32_0 = arith.constant 0 : i32
    %c0_i32_1 = arith.constant 0 : i32
    return %c0_i32, %c0_i32_0 : i32, i32
  }
  func.func @transform_6(%arg0: i32) -> (i32, i32) {
    %c0_i32 = arith.constant 0 : i32
    %c0_i32_0 = arith.constant 0 : i32
    %c0_i32_1 = arith.constant 0 : i32
    return %c0_i32, %c0_i32_0 : i32, i32
  }
  func.func @transform_7(%arg0: i32) -> (i32, i32) {
    %c0_i32 = arith.constant 0 : i32
    %c0_i32_0 = arith.constant 0 : i32
    %c0_i32_1 = arith.constant 0 : i32
    return %c0_i32, %c0_i32_0 : i32, i32
  }
  func.func @transform_8(%arg0: i32) -> (i32, i32) {
    %c0_i32 = arith.constant 0 : i32
    %c0_i32_0 = arith.constant 0 : i32
    %c0_i32_1 = arith.constant 0 : i32
    return %c0_i32, %c0_i32_0 : i32, i32
  }
  func.func @transform_9(%arg0: i32) -> (i32, i32) {
    %c0_i32 = arith.constant 0 : i32
    %c0_i32_0 = arith.constant 0 : i32
    %c0_i32_1 = arith.constant 0 : i32
    return %c0_i32, %c0_i32_0 : i32, i32
  }
  func.func @transform_10(%arg0: i32) -> (i32, i32) {
    %c0_i32 = arith.constant 0 : i32
    %c0_i32_0 = arith.constant 0 : i32
    %c0_i32_1 = arith.constant 0 : i32
    return %c0_i32, %c0_i32_0 : i32, i32
  }
  func.func @transform_11(%arg0: i32) -> (i32, i32) {
    %c0_i32 = arith.constant 0 : i32
    %c0_i32_0 = arith.constant 0 : i32
    return %arg0, %c0_i32 : i32, i32
  }
}

module attributes {stable_mosaic.version = 11 : i64} {
  func.func @spk_head_kernel(%arg0: i32, %arg1: memref<16x32xf32, #tpu.memory_space<vmem>>, %arg2: memref<32x768xbf16, #tpu.memory_space<vmem>>, %arg3: memref<1x768xf32, #tpu.memory_space<vmem>>, %arg4: memref<768x512xbf16, #tpu.memory_space<vmem>>, %arg5: memref<1x512xf32, #tpu.memory_space<vmem>>, %arg6: memref<512x256xbf16, #tpu.memory_space<vmem>>, %arg7: memref<1x256xf32, #tpu.memory_space<vmem>>, %arg8: memref<256x128xbf16, #tpu.memory_space<vmem>>, %arg9: memref<1x128xf32, #tpu.memory_space<vmem>>, %arg10: memref<128x128xbf16, #tpu.memory_space<vmem>>, %arg11: memref<1x128xf32, #tpu.memory_space<vmem>>, %arg12: memref<16x128xf32, #tpu.memory_space<vmem>>) attributes {dimension_semantics = [#tpu.dimension_semantics<arbitrary>], iteration_bounds = array<i64: 1>, scalar_prefetch = 0 : i64, scratch_operands = 0 : i64, tpu.core_type = #tpu.core_type<tc>, window_params = [{transform_indices = @transform_0, window_bounds = array<i64: 16, 32>}, {pipeline_mode = #tpu.pipeline_mode<synchronous>, transform_indices = @transform_1, window_bounds = array<i64: 32, 768>}, {pipeline_mode = #tpu.pipeline_mode<synchronous>, transform_indices = @transform_2, window_bounds = array<i64: 1, 768>}, {pipeline_mode = #tpu.pipeline_mode<synchronous>, transform_indices = @transform_3, window_bounds = array<i64: 768, 512>}, {pipeline_mode = #tpu.pipeline_mode<synchronous>, transform_indices = @transform_4, window_bounds = array<i64: 1, 512>}, {pipeline_mode = #tpu.pipeline_mode<synchronous>, transform_indices = @transform_5, window_bounds = array<i64: 512, 256>}, {pipeline_mode = #tpu.pipeline_mode<synchronous>, transform_indices = @transform_6, window_bounds = array<i64: 1, 256>}, {pipeline_mode = #tpu.pipeline_mode<synchronous>, transform_indices = @transform_7, window_bounds = array<i64: 256, 128>}, {pipeline_mode = #tpu.pipeline_mode<synchronous>, transform_indices = @transform_8, window_bounds = array<i64: 1, 128>}, {pipeline_mode = #tpu.pipeline_mode<synchronous>, transform_indices = @transform_9, window_bounds = array<i64: 128, 128>}, {pipeline_mode = #tpu.pipeline_mode<synchronous>, transform_indices = @transform_10, window_bounds = array<i64: 1, 128>}, {transform_indices = @transform_11, window_bounds = array<i64: 16, 128>}]} {
    %c0 = arith.constant 0 : index
    %c0_0 = arith.constant 0 : index
    %0 = vector.load %arg1[%c0, %c0_0] : memref<16x32xf32, #tpu.memory_space<vmem>>, vector<16x32xf32>
    %1 = arith.truncf %0 : vector<16x32xf32> to vector<16x32xbf16>
    %c0_1 = arith.constant 0 : index
    %c0_2 = arith.constant 0 : index
    %2 = vector.load %arg2[%c0_1, %c0_2] : memref<32x768xbf16, #tpu.memory_space<vmem>>, vector<32x768xbf16>
    %cst = arith.constant dense<0.000000e+00> : vector<16x768xf32>
    %3 = tpu.matmul %1, %2, %cst {dimension_numbers = #tpu.dot_dimension_numbers<[1], [0], [0], [1], [0, 0, 1, 1], [], []>} : vector<16x32xbf16>, vector<32x768xbf16>, vector<16x768xf32> -> vector<16x768xf32>
    %c0_3 = arith.constant 0 : index
    %c0_4 = arith.constant 0 : index
    %4 = vector.load %arg3[%c0_3, %c0_4] : memref<1x768xf32, #tpu.memory_space<vmem>>, vector<1x768xf32>
    %5 = vector.broadcast %4 : vector<1x768xf32> to vector<16x768xf32>
    %6 = arith.addf %3, %5 : vector<16x768xf32>
    %cst_5 = arith.constant 0.000000e+00 : f32
    %7 = vector.broadcast %cst_5 : f32 to vector<16x768xf32>
    %8 = arith.maximumf %6, %7 : vector<16x768xf32>
    %9 = arith.truncf %8 : vector<16x768xf32> to vector<16x768xbf16>
    %c0_6 = arith.constant 0 : index
    %c0_7 = arith.constant 0 : index
    %10 = vector.load %arg4[%c0_6, %c0_7] : memref<768x512xbf16, #tpu.memory_space<vmem>>, vector<768x512xbf16>
    %cst_8 = arith.constant dense<0.000000e+00> : vector<16x512xf32>
    %11 = tpu.matmul %9, %10, %cst_8 {dimension_numbers = #tpu.dot_dimension_numbers<[1], [0], [0], [1], [0, 0, 1, 1], [], []>} : vector<16x768xbf16>, vector<768x512xbf16>, vector<16x512xf32> -> vector<16x512xf32>
    %c0_9 = arith.constant 0 : index
    %c0_10 = arith.constant 0 : index
    %12 = vector.load %arg5[%c0_9, %c0_10] : memref<1x512xf32, #tpu.memory_space<vmem>>, vector<1x512xf32>
    %13 = vector.broadcast %12 : vector<1x512xf32> to vector<16x512xf32>
    %14 = arith.addf %11, %13 : vector<16x512xf32>
    %cst_11 = arith.constant 0.000000e+00 : f32
    %15 = vector.broadcast %cst_11 : f32 to vector<16x512xf32>
    %16 = arith.maximumf %14, %15 : vector<16x512xf32>
    %17 = arith.truncf %16 : vector<16x512xf32> to vector<16x512xbf16>
    %c0_12 = arith.constant 0 : index
    %c0_13 = arith.constant 0 : index
    %18 = vector.load %arg6[%c0_12, %c0_13] : memref<512x256xbf16, #tpu.memory_space<vmem>>, vector<512x256xbf16>
    %cst_14 = arith.constant dense<0.000000e+00> : vector<16x256xf32>
    %19 = tpu.matmul %17, %18, %cst_14 {dimension_numbers = #tpu.dot_dimension_numbers<[1], [0], [0], [1], [0, 0, 1, 1], [], []>} : vector<16x512xbf16>, vector<512x256xbf16>, vector<16x256xf32> -> vector<16x256xf32>
    %c0_15 = arith.constant 0 : index
    %c0_16 = arith.constant 0 : index
    %20 = vector.load %arg7[%c0_15, %c0_16] : memref<1x256xf32, #tpu.memory_space<vmem>>, vector<1x256xf32>
    %21 = vector.broadcast %20 : vector<1x256xf32> to vector<16x256xf32>
    %22 = arith.addf %19, %21 : vector<16x256xf32>
    %cst_17 = arith.constant 0.000000e+00 : f32
    %23 = vector.broadcast %cst_17 : f32 to vector<16x256xf32>
    %24 = arith.maximumf %22, %23 : vector<16x256xf32>
    %25 = arith.truncf %24 : vector<16x256xf32> to vector<16x256xbf16>
    %c0_18 = arith.constant 0 : index
    %c0_19 = arith.constant 0 : index
    %26 = vector.load %arg8[%c0_18, %c0_19] : memref<256x128xbf16, #tpu.memory_space<vmem>>, vector<256x128xbf16>
    %cst_20 = arith.constant dense<0.000000e+00> : vector<16x128xf32>
    %27 = tpu.matmul %25, %26, %cst_20 {dimension_numbers = #tpu.dot_dimension_numbers<[1], [0], [0], [1], [0, 0, 1, 1], [], []>} : vector<16x256xbf16>, vector<256x128xbf16>, vector<16x128xf32> -> vector<16x128xf32>
    %c0_21 = arith.constant 0 : index
    %c0_22 = arith.constant 0 : index
    %28 = vector.load %arg9[%c0_21, %c0_22] : memref<1x128xf32, #tpu.memory_space<vmem>>, vector<1x128xf32>
    %29 = vector.broadcast %28 : vector<1x128xf32> to vector<16x128xf32>
    %30 = arith.addf %27, %29 : vector<16x128xf32>
    %cst_23 = arith.constant 0.000000e+00 : f32
    %31 = vector.broadcast %cst_23 : f32 to vector<16x128xf32>
    %32 = arith.maximumf %30, %31 : vector<16x128xf32>
    %33 = arith.truncf %32 : vector<16x128xf32> to vector<16x128xbf16>
    %c0_24 = arith.constant 0 : index
    %c0_25 = arith.constant 0 : index
    %34 = vector.load %arg10[%c0_24, %c0_25] : memref<128x128xbf16, #tpu.memory_space<vmem>>, vector<128x128xbf16>
    %cst_26 = arith.constant dense<0.000000e+00> : vector<16x128xf32>
    %35 = tpu.matmul %33, %34, %cst_26 {dimension_numbers = #tpu.dot_dimension_numbers<[1], [0], [0], [1], [0, 0, 1, 1], [], []>} : vector<16x128xbf16>, vector<128x128xbf16>, vector<16x128xf32> -> vector<16x128xf32>
    %c0_27 = arith.constant 0 : index
    %c0_28 = arith.constant 0 : index
    %36 = vector.load %arg11[%c0_27, %c0_28] : memref<1x128xf32, #tpu.memory_space<vmem>>, vector<1x128xf32>
    %37 = vector.broadcast %36 : vector<1x128xf32> to vector<16x128xf32>
    %38 = arith.addf %35, %37 : vector<16x128xf32>
    %c0_29 = arith.constant 0 : index
    %c0_30 = arith.constant 0 : index
    %39 = vector.load %arg12[%c0_29, %c0_30] : memref<16x128xf32, #tpu.memory_space<vmem>>, vector<16x128xf32>
    tpu.vector_store %arg12[%c0_29, %c0_30], %38 {strides = array<i32>} : memref<16x128xf32, #tpu.memory_space<vmem>>, vector<16x128xf32>,
    return
  }
  func.func @transform_0(%arg0: i32) -> (i32, i32) {
    %c0_i32 = arith.constant 0 : i32
    %c0_i32_0 = arith.constant 0 : i32
    return %arg0, %c0_i32 : i32, i32
  }
  func.func @transform_1(%arg0: i32) -> (i32, i32) {
    %c0_i32 = arith.constant 0 : i32
    %c0_i32_0 = arith.constant 0 : i32
    %c0_i32_1 = arith.constant 0 : i32
    return %c0_i32, %c0_i32_0 : i32, i32
  }
  func.func @transform_2(%arg0: i32) -> (i32, i32) {
    %c0_i32 = arith.constant 0 : i32
    %c0_i32_0 = arith.constant 0 : i32
    %c0_i32_1 = arith.constant 0 : i32
    return %c0_i32, %c0_i32_0 : i32, i32
  }
  func.func @transform_3(%arg0: i32) -> (i32, i32) {
    %c0_i32 = arith.constant 0 : i32
    %c0_i32_0 = arith.constant 0 : i32
    %c0_i32_1 = arith.constant 0 : i32
    return %c0_i32, %c0_i32_0 : i32, i32
  }
  func.func @transform_4(%arg0: i32) -> (i32, i32) {
    %c0_i32 = arith.constant 0 : i32
    %c0_i32_0 = arith.constant 0 : i32
    %c0_i32_1 = arith.constant 0 : i32
    return %c0_i32, %c0_i32_0 : i32, i32
  }
  func.func @transform_5(%arg0: i32) -> (i32, i32) {
    %c0_i32 = arith.constant 0 : i32
    %c0_i32_0 = arith.constant 0 : i32
    %c0_i32_1 = arith.constant 0 : i32
    return %c0_i32, %c0_i32_0 : i32, i32
  }
  func.func @transform_6(%arg0: i32) -> (i32, i32) {
    %c0_i32 = arith.constant 0 : i32
    %c0_i32_0 = arith.constant 0 : i32
    %c0_i32_1 = arith.constant 0 : i32
    return %c0_i32, %c0_i32_0 : i32, i32
  }
  func.func @transform_7(%arg0: i32) -> (i32, i32) {
    %c0_i32 = arith.constant 0 : i32
    %c0_i32_0 = arith.constant 0 : i32
    %c0_i32_1 = arith.constant 0 : i32
    return %c0_i32, %c0_i32_0 : i32, i32
  }
  func.func @transform_8(%arg0: i32) -> (i32, i32) {
    %c0_i32 = arith.constant 0 : i32
    %c0_i32_0 = arith.constant 0 : i32
    %c0_i32_1 = arith.constant 0 : i32
    return %c0_i32, %c0_i32_0 : i32, i32
  }
  func.func @transform_9(%arg0: i32) -> (i32, i32) {
    %c0_i32 = arith.constant 0 : i32
    %c0_i32_0 = arith.constant 0 : i32
    %c0_i32_1 = arith.constant 0 : i32
    return %c0_i32, %c0_i32_0 : i32, i32
  }
  func.func @transform_10(%arg0: i32) -> (i32, i32) {
    %c0_i32 = arith.constant 0 : i32
    %c0_i32_0 = arith.constant 0 : i32
    %c0_i32_1 = arith.constant 0 : i32
    return %c0_i32, %c0_i32_0 : i32, i32
  }
  func.func @transform_11(%arg0: i32) -> (i32, i32) {
    %c0_i32 = arith.constant 0 : i32
    %c0_i32_0 = arith.constant 0 : i32
    return %arg0, %c0_i32 : i32, i32
  }
}

</mosaic_0001>

<bundles_post_ra>
// kernel: tpu_custom_call.1
= control target key start
LH: loop header
LB: loop body
LE: loop exit
PB: predicated region body
PF: predicated region fallthrough
CT: control target
= control target key end

     0   :  { %16 = vsyncpa [#allocation3], 0  ;;  %s3792_s0 = inlined_call_operand.hbm [shape: f32[16,32], index: 0, kind: input, shape index: {}]   ;;  %s3793_s1 = inlined_call_operand.hbm [shape: bf16[32,768], index: 1, kind: input, shape index: {}]   ;;  %s3794_s2 = inlined_call_operand.hbm [shape: f32[1,768], index: 2, kind: input, shape index: {}]   ;;  %s3795_s3 = inlined_call_operand.hbm [shape: bf16[768,512], index: 3, kind: input, shape index: {}]   ;;  %s3796_s4 = inlined_call_operand.vmem [shape: f32[1,512], index: 4, kind: input, shape index: {}]   ;;  %s3797_s5 = inlined_call_operand.hbm [shape: bf16[512,256], index: 5, kind: input, shape index: {}]   ;;  %s3798_s6 = inlined_call_operand.vmem [shape: f32[1,256], index: 6, kind: input, shape index: {}]   ;;  %s3799_s7 = inlined_call_operand.hbm [shape: bf16[256,128], index: 7, kind: input, shape index: {}]   ;;  %s3800_s8 = inlined_call_operand.vmem [shape: f32[1,128], index: 8, kind: input, shape index: {}]   ;;  %s3801_s9 = inlined_call_operand.hbm [shape: bf16[128,128], index: 9, kind: input, shape index: {}]   ;;  %s3802_s10 = inlined_call_operand.vmem [shape: f32[1,128], index: 10, kind: input, shape index: {}]   ;;  %s3803_s11 = inlined_call_operand.hbm [shape: f32[16,128], index: 11, kind: output, shape index: {}]  }
   0x1   :  { %17 = vsyncpa [#allocation6], 0 }
   0x2   :  { %18 = vsyncpa [#allocation9], 0 }
   0x3   :  { %19 = vsyncpa [#allocation12], 0 }
   0x4   :  { %20 = vsyncpa [#allocation4], 0  ;;  %s3599_s17 = smov [#allocation5]  }
   0x5   :  { %s38_s18 = sshll.u32 %s3599_s17, 4  ;;  %s39_s18 = int_to_ptr.vmem [resolvable:$true] %s38_s18 }
   0x6   :  { %s3437_s19 = scalar_lea.vmem %s39_s18, 1536  ;;  %p3442_p1 = scmp.lt.s32.totalorder %s39_s18, %s39_s18 }
   0x7   :  { %p3438_p0 = scmp.ne.s32.totalorder %s39_s18, %s3437_s19  ;;  %p3443_p2 = scmp.lt.s32.totalorder %s3437_s19, %s3437_s19 }
   0x9   :  { %p3444_p3 = por %p3443_p2, %p3442_p1 }
   0xb   :  { %p3445_p4 = pnand %p3444_p3, %p3438_p0 }
   0xd   :  { %3448 = shalt.err (!%p3445_p4)
}
   0xe   :  { %s3600_s20 = smov 384   ;;  %s3601_s21 = smov 24  }
   0xf   :  { %44 = dma.hbm_to_vmem [thread:$0]  %s3793_s1, 1536, %s39_s18, [#allocation6], %s3600_s20, %s3600_s20, %s3601_s21  }
  0x10   :  { %s3602_s24 = smov [#allocation8]  }
  0x11   :  { %s60_s25 = sshll.u32 %s3602_s24, 4  ;;  %s61_s25 = int_to_ptr.vmem [resolvable:$true] %s60_s25 }
  0x12   :  { %s3457_s26 = scalar_lea.vmem %s61_s25, 24576  ;;  %p3462_p6 = scmp.lt.s32.totalorder %s61_s25, %s61_s25 }
  0x13   :  { %p3458_p5 = scmp.ne.s32.totalorder %s61_s25, %s3457_s26  ;;  %p3463_p7 = scmp.lt.s32.totalorder %s3457_s26, %s3457_s26 }
  0x15   :  { %p3464_p8 = por %p3463_p7, %p3462_p6 }
  0x17   :  { %p3465_p9 = pnand %p3464_p8, %p3458_p5 }
  0x19   :  { %3468 = shalt.err (!%p3465_p9)
}
  0x1a   :  { %s3603_s27 = smov 256   ;;  %s3604_s28 = smov 16  }
  0x1b   :  { %66 = dma.hbm_to_vmem [thread:$0]  %s3795_s3, 24576, %s61_s25, [#allocation9], %s3603_s27, %s3603_s27, %s3604_s28  }
  0x1c   :  { %s3605_s12 = smov [#allocation11]  }
  0x1d   :  { %s88_s13 = sshll.u32 %s3605_s12, 4  ;;  %s89_s13 = int_to_ptr.vmem [resolvable:$true] %s88_s13 }
  0x1e   :  { %s3477_s1 = scalar_lea.vmem %s89_s13, 2048  ;;  %p3482_p11 = scmp.lt.s32.totalorder %s89_s13, %s89_s13 }
  0x1f   :  { %p3478_p10 = scmp.ne.s32.totalorder %s89_s13, %s3477_s1  ;;  %p3483_p12 = scmp.lt.s32.totalorder %s3477_s1, %s3477_s1 }
  0x21   :  { %p3484_p13 = por %p3483_p12, %p3482_p11 }
  0x23   :  { %p3485_p0 = pnand %p3484_p13, %p3478_p10 }
  0x25   :  { %3488 = shalt.err (!%p3485_p0)
}
  0x26   :  { %s3606_s14 = smov 64   ;;  %s3607_s15 = smov 4  }
  0x27   :  { %94 = dma.hbm_to_vmem [thread:$0]  %s3799_s7, 2048, %s89_s13, [#allocation12], %s3606_s14, %s3606_s14, %s3607_s15  }
  0x28   :  { %s3608_s3 = smov [#allocation2]  }
  0x29   :  { %s26_s18 = sshll.u32 %s3608_s3, 4  ;;  %s27_s18 = int_to_ptr.vmem [resolvable:$true] %s26_s18 }
  0x2a   :  { %s3497_s19 = scalar_lea.vmem %s27_s18, 256  ;;  %p3502_p2 = scmp.lt.s32.totalorder %s27_s18, %s27_s18 }
  0x2b   :  { %p3498_p1 = scmp.ne.s32.totalorder %s27_s18, %s3497_s19  ;;  %p3503_p3 = scmp.lt.s32.totalorder %s3497_s19, %s3497_s19 }
  0x2d   :  { %p3504_p4 = por %p3503_p3, %p3502_p2 }
  0x2f   :  { %p3505_p5 = pnand %p3504_p4, %p3498_p1 }
  0x31   :  { %3508 = shalt.err (!%p3505_p5)
}
  0x32   :  { %s3609_s20 = smov 128   ;;  %s3610_s21 = smov 8  }
  0x33   :  { %32 = dma.hbm_to_vmem [thread:$0]  %s3792_s0, 256, %s27_s18, [#allocation3], %s3609_s20, %s3609_s20, %s3610_s21  }
  0x34   :  { %s3611_s7 = smov [#allocation7]   ;;  %s3612_s25 = smov [#allocation10]  }
  0x35   :  { %s51_s24 = sshll.u32 %s3611_s7, 4  ;;  %s74_s26 = sshll.u32 %s3612_s25, 4  ;;  %s52_s24 = int_to_ptr.vmem [resolvable:$true] %s51_s24  ;;  %s75_s26 = int_to_ptr.vmem [resolvable:$true] %s74_s26 }
  0x36   :  { %s3517_s27 = scalar_lea.vmem %s52_s24, 96  ;;  %p3522_p7 = scmp.lt.s32.totalorder %s52_s24, %s52_s24 }
  0x37   :  { %p3518_p6 = scmp.ne.s32.totalorder %s52_s24, %s3517_s27  ;;  %p3523_p8 = scmp.lt.s32.totalorder %s3517_s27, %s3517_s27 }
  0x39   :  { %p3524_p9 = por %p3523_p8, %p3522_p7 }
  0x3b   :  { %p3525_p10 = pnand %p3524_p9, %p3518_p6 }
  0x3d   :  { %3528 = shalt.err (!%p3525_p10)
}
  0x3e   :  { %54 = dma.hbm_to_vmem [thread:$0]  %s3794_s2, 96, %s52_s24, [#allocation6]  }
  0x3f   :  { %s3537_s30 = scalar_lea.vmem %s75_s26, 8192  ;;  %p3542_p12 = scmp.lt.s32.totalorder %s75_s26, %s75_s26 }
  0x40   :  { %p3538_p11 = scmp.ne.s32.totalorder %s75_s26, %s3537_s30  ;;  %p3543_p13 = scmp.lt.s32.totalorder %s3537_s30, %s3537_s30 }
  0x42   :  { %p3544_p0 = por %p3543_p13, %p3542_p12 }
  0x44   :  { %p3545_p1 = pnand %p3544_p0, %p3538_p11 }
  0x46   :  { %3548 = shalt.err (!%p3545_p1)
}
  0x47   :  { %80 = dma.hbm_to_vmem [thread:$0]  %s3797_s5, 8192, %s75_s26, [#allocation9], %s3609_s20, %s3609_s20, %s3610_s21  }
  0x48   :  { %s3613_s13 = smov [#allocation13]  }
  0x49   :  { %s102_s1 = sshll.u32 %s3613_s13, 4  ;;  %s103_s1 = int_to_ptr.vmem [resolvable:$true] %s102_s1 }
  0x4a   :  { %s3557_s16 = scalar_lea.vmem %s103_s1, 1024  ;;  %p3562_p3 = scmp.lt.s32.totalorder %s103_s1, %s103_s1 }
  0x4b   :  { %p3558_p2 = scmp.ne.s32.totalorder %s103_s1, %s3557_s16  ;;  %p3563_p4 = scmp.lt.s32.totalorder %s3557_s16, %s3557_s16 }
  0x4d   :  { %p3564_p5 = por %p3563_p4, %p3562_p3 }
  0x4f   :  { %p3565_p6 = pnand %p3564_p5, %p3558_p2 }
  0x51   :  { %3568 = shalt.err (!%p3565_p6)
}
  0x52   :  { %108 = dma.hbm_to_vmem [thread:$0]  %s3801_s9, 1024, %s103_s1, [#allocation12], %s3606_s14, %s3606_s14, %s3607_s15  }
  0x53   :  { %3589 = dma.done.wait [#allocation3], 256  }
  0x54   :  { %3590 = vsyncadd [#allocation3], 4294967040 }
  0x55   :  { %3591 = dma.done.wait [#allocation6], 1632  }
  0x56   :  { %3592 = vsyncadd [#allocation6], 4294965664 }
  0x57   :  { %3593 = dma.done.wait [#allocation9], 32768  }
  0x58   :  { %3594 = vsyncadd [#allocation9], 4294934528 }
  0x59   :  { %3595 = dma.done.wait [#allocation12], 3072  }
  0x5a   :  { %3596 = vsyncadd [#allocation12], 4294964224  ;;  %v3614_v0 = vmov 0   ;;  %v3003_v1 = vld [vmem:[#allocation5 + $0x34] ss:$24 sps:$4 sm:$0xff]   ;;  %v134_v10 = vld [vmem:[#allocation2 + $0x8] sm:$0xff] }
  0x5b   :  { %276 = vmatprep.mubr.bf16.mxu0 %v3614_v0  ;;  %319 = vmatprep.mubr.bf16.mxu1 %v3614_v0  ;;  %v3005_v2 = vld [vmem:[#allocation5 + $0x3c] ss:$24 sps:$4 sm:$0xff]   ;;  %v3007_v3 = vld [vmem:[#allocation5 + $0x30] ss:$24 sps:$4 sm:$0xff]   ;;  %v3011_v6 = vld [vmem:[#allocation5 + $0xc] ss:$24 sps:$4 sm:$0xff]  }
  0x5c   :  { %256 = vmatprep.subr.bf16.mxu0 %v3003_v1  ;;  %v3008_v4 = vld [vmem:[#allocation5 + $0x38] ss:$24 sps:$4 sm:$0xff]   ;;  %299 = vmatprep.subr.bf16.mxu1 %v3005_v2  ;;  %v3009_v5 = vld [vmem:[#allocation5 + $0x4] ss:$24 sps:$4 sm:$0xff]   ;;  %v3014_v8 = vld [vmem:[#allocation5 + $0x8] ss:$24 sps:$4 sm:$0xff]  }
  0x5d   :  { %257 = vmatpush1.bf16.msra.mxu0 %v3007_v3  ;;  %300 = vmatpush1.bf16.msra.mxu1 %v3008_v4  ;;  %v3013_v7 = vld [vmem:[#allocation5] ss:$24 sps:$4 sm:$0xff]   ;;  %v133_v9 = vld [vmem:[#allocation2] sm:$0xff]  ;;  %v3017_v12 = vld [vmem:[#allocation5 + $0x44] ss:$24 sps:$4 sm:$0xff]   ;;  %vm240_vm0 = vcmask 261120  }
  0x5e   :  { %258 = vmatprep.subr.bf16.mxu0 %v3009_v5  ;;  %301 = vmatprep.subr.bf16.mxu1 %v3011_v6  ;;  %v135_v11 = vpack.c.bf16 %v134_v10, %v133_v9  ;;  %v3015_v13 = vld [vmem:[#allocation5 + $0x40] ss:$24 sps:$4 sm:$0xff]   ;;  %v3020_v14 = vld [vmem:[#allocation5 + $0x14] ss:$24 sps:$4 sm:$0xff]   ;;  %v3018_v17 = vld [vmem:[#allocation5 + $0x10] ss:$24 sps:$4 sm:$0xff]  }
  0x5f   :  { %v3023_v15 = vld [vmem:[#allocation8 + $0xe4] ss:$16 sps:$4 sm:$0xff]   ;;  %v3021_v16 = vld [vmem:[#allocation8 + $0xe0] ss:$16 sps:$4 sm:$0xff]   ;;  %vm3616_vm1 = vmmov 0   ;;  %s3617_s19 = smov [#allocation14]  }
  0x60   :  { %v3029_v18 = vld [vmem:[#allocation8 + $0xc4] ss:$16 sps:$4 sm:$0xff]   ;;  %v3027_v20 = vld [vmem:[#allocation8 + $0xc0] ss:$16 sps:$4 sm:$0xff]   ;;  %s2621_s22 = sshll.u32 %s3617_s19, 4  ;;  %s2622_s22 = int_to_ptr.vmem [resolvable:$true] %s2621_s22 }
  0x61   :  { %259 = vmatpush1.bf16.msra.mxu0 %v3013_v7  ;;  %302 = vmatpush1.bf16.msra.mxu1 %v3014_v8  ;;  %v3026_v19 = vld [vmem:[#allocation8 + $0x2e4] ss:$16 sps:$4 sm:$0xff]   ;;  %v3024_v22 = vld [vmem:[#allocation8 + $0x2e0] ss:$16 sps:$4 sm:$0xff]   ;;  %p3574_p8 = scmp.lt.s32.totalorder %s2622_s22, %s2622_s22 }
  0x62   :  { %342 = vmatprep.subr.bf16.mxu0 %v3017_v12  ;;  %1565 = vmatprep.subr.bf16.mxu1 %v3023_v15  ;;  %v3035_v21 = vld [vmem:[#allocation8 + $0xa4] ss:$16 sps:$4 sm:$0xff]   ;;  %v3033_v24 = vld [vmem:[#allocation8 + $0xa0] ss:$16 sps:$4 sm:$0xff]  }
  0x63   :  { %v3032_v23 = vld [vmem:[#allocation8 + $0x2c4] ss:$16 sps:$4 sm:$0xff]   ;;  %v3030_v26 = vld [vmem:[#allocation8 + $0x2c0] ss:$16 sps:$4 sm:$0xff]  }
  0x64   :  { %2648 = vmatmul.mubr.msk.bf16.vlgmr.msra.gmra.mxu0 %vm240_vm0, %v135_v11  ;;  %2649 = vmatmul.mubr.msk.bf16.vlgmr.msra.gmra.mxu1 %vm240_vm0, %v135_v11  ;;  %v3041_v25 = vld [vmem:[#allocation8 + $0x84] ss:$16 sps:$4 sm:$0xff]   ;;  %v3039_v28 = vld [vmem:[#allocation8 + $0x80] ss:$16 sps:$4 sm:$0xff]  }
  0x65   :  { %343 = vmatpush1.bf16.msra.mxu0 %v3015_v13  ;;  %362 = vmatprep.mubr.bf16.mxu0 %v3614_v0  ;;  %v3038_v27 = vld [vmem:[#allocation8 + $0x2a4] ss:$16 sps:$4 sm:$0xff]   ;;  %v3036_v30 = vld [vmem:[#allocation8 + $0x2a0] ss:$16 sps:$4 sm:$0xff]  }
  0x66   :  { %344 = vmatprep.subr.bf16.mxu0 %v3020_v14  ;;  %1566 = vmatpush1.bf16.msra.mxu1 %v3021_v16  ;;  %v3047_v29 = vld [vmem:[#allocation8 + $0x64] ss:$16 sps:$4 sm:$0xff]   ;;  %v3045_v32 = vld [vmem:[#allocation8 + $0x60] ss:$16 sps:$4 sm:$0xff]  }
  0x67   :  { %1567 = vmatprep.subr.bf16.mxu1 %v3029_v18  ;;  %v3044_v31 = vld [vmem:[#allocation8 + $0x284] ss:$16 sps:$4 sm:$0xff]   ;;  %v3042_v34 = vld [vmem:[#allocation8 + $0x280] ss:$16 sps:$4 sm:$0xff]   ;;  %v150_v18 = vlaneseq }
  0x68   :  { %v3053_v33 = vld [vmem:[#allocation8 + $0x44] ss:$16 sps:$4 sm:$0xff]   ;;  %v3051_v36 = vld [vmem:[#allocation8 + $0x40] ss:$16 sps:$4 sm:$0xff]  }
  0x69   :  { %345 = vmatpush1.bf16.msra.mxu0 %v3018_v17  ;;  %v3050_v35 = vld [vmem:[#allocation8 + $0x264] ss:$16 sps:$4 sm:$0xff]   ;;  %v3048_v38 = vld [vmem:[#allocation8 + $0x260] ss:$16 sps:$4 sm:$0xff]   ;;  %v3122_v17 = vld [vmem:[#allocation8 + $0xec] ss:$16 sps:$4 sm:$0xff]  }
  0x6a   :  { %1608 = vmatprep.subr.bf16.mxu0 %v3026_v19  ;;  %1568 = vmatpush1.bf16.msra.mxu1 %v3027_v20  ;;  %v3059_v37 = vld [vmem:[#allocation8 + $0x24] ss:$16 sps:$4 sm:$0xff]   ;;  %v3057_v40 = vld [vmem:[#allocation8 + $0x20] ss:$16 sps:$4 sm:$0xff]   ;;  %v3714_v19 = vshrl.u32 %v150_v18, 7 }
  0x6b   :  { %1569 = vmatprep.subr.bf16.mxu1 %v3035_v21  ;;  %v3056_v39 = vld [vmem:[#allocation8 + $0x244] ss:$16 sps:$4 sm:$0xff]   ;;  %v3054_v42 = vld [vmem:[#allocation8 + $0x240] ss:$16 sps:$4 sm:$0xff]  }
  0x6c   :  { %2650 = vmatmul.mubr.msk.bf16.vlgmr.msra.gmra.mxu0 %vm240_vm0, %v135_v11  ;;  %v3065_v41 = vld [vmem:[#allocation8 + $0x4] ss:$16 sps:$4 sm:$0xff]   ;;  %v3063_v44 = vld [vmem:[#allocation8] ss:$16 sps:$4 sm:$0xff]   ;;  %v3717_v20 = vsub.s32 1, %v3714_v19  ;;  %v164_v21 = vsub.s32 3, %v3714_v19 }
  0x6d   :  { %1609 = vmatpush1.bf16.msra.mxu0 %v3024_v22  ;;  %v3062_v43 = vld [vmem:[#allocation8 + $0x224] ss:$16 sps:$4 sm:$0xff]   ;;  %v3060_v46 = vld [vmem:[#allocation8 + $0x220] ss:$16 sps:$4 sm:$0xff]   ;;  %v3721_v22 = vsub.s32 0, %v3714_v19 }
  0x6e   :  { %1610 = vmatprep.subr.bf16.mxu0 %v3032_v23  ;;  %1570 = vmatpush1.bf16.msra.mxu1 %v3033_v24  ;;  %v3071_v45 = vld [vmem:[#allocation8 + $0x1e4] ss:$16 sps:$4 sm:$0xff]   ;;  %v3066_v48 = vld [vmem:[#allocation8 + $0x200] ss:$16 sps:$4 sm:$0xff]   ;;  %v160_v23 = vsub.s32 2, %v3714_v19 }
  0x6f   :  { %1571 = vmatprep.subr.bf16.mxu1 %v3041_v25  ;;  %v3068_v47 = vld [vmem:[#allocation8 + $0x204] ss:$16 sps:$4 sm:$0xff]   ;;  %v3069_v49 = vld [vmem:[#allocation8 + $0x1e0] ss:$16 sps:$4 sm:$0xff]   ;;  %v3724_v24 = vld [vmem:[#allocation7] sm:$0x3f] }
  0x70   :  { %v3074_v50 = vld [vmem:[#allocation8 + $0x3e4] ss:$16 sps:$4 sm:$0xff]   ;;  %v3075_v52 = vld [vmem:[#allocation8 + $0x1c0] ss:$16 sps:$4 sm:$0xff]  }
  0x71   :  { %1611 = vmatpush1.bf16.msra.mxu0 %v3030_v26  ;;  %v3077_v51 = vld [vmem:[#allocation8 + $0x1c4] ss:$16 sps:$4 sm:$0xff]   ;;  %v3072_v54 = vld [vmem:[#allocation8 + $0x3e0] ss:$16 sps:$4 sm:$0xff]  }
  0x72   :  { %1612 = vmatprep.subr.bf16.mxu0 %v3038_v27  ;;  %1572 = vmatpush1.bf16.msra.mxu1 %v3039_v28  ;;  %v3083_v53 = vld [vmem:[#allocation8 + $0x1a4] ss:$16 sps:$4 sm:$0xff]   ;;  %v3081_v56 = vld [vmem:[#allocation8 + $0x1a0] ss:$16 sps:$4 sm:$0xff]   ;;  %v157_v27 = vrot.slane %v3724_v24, %v3717_v20  ;;  %v165_v28 = vrot.slane %v3724_v24, %v164_v21 }
  0x73   :  { %1573 = vmatprep.subr.bf16.mxu1 %v3047_v29  ;;  %v3080_v55 = vld [vmem:[#allocation8 + $0x3c4] ss:$16 sps:$4 sm:$0xff]   ;;  %v3078_v58 = vld [vmem:[#allocation8 + $0x3c0] ss:$16 sps:$4 sm:$0xff]   ;;  %v153_v29 = vrot.slane %v3724_v24, %v3721_v22 }
  0x74   :  { %v3089_v57 = vld [vmem:[#allocation8 + $0x184] ss:$16 sps:$4 sm:$0xff]   ;;  %v3087_v60 = vld [vmem:[#allocation8 + $0x180] ss:$16 sps:$4 sm:$0xff]  }
  0x75   :  { %1613 = vmatpush1.bf16.msra.mxu0 %v3036_v30  ;;  %v3086_v59 = vld [vmem:[#allocation8 + $0x3a4] ss:$16 sps:$4 sm:$0xff]   ;;  %v3084_v62 = vld [vmem:[#allocation8 + $0x3a0] ss:$16 sps:$4 sm:$0xff]   ;;  %v161_v30 = vrot.slane %v3724_v24, %v160_v23 }
  0x76   :  { %1614 = vmatprep.subr.bf16.mxu0 %v3044_v31  ;;  %1574 = vmatpush1.bf16.msra.mxu1 %v3045_v32  ;;  %v3095_v61 = vld [vmem:[#allocation8 + $0x164] ss:$16 sps:$4 sm:$0xff]   ;;  %v3093_v0 = vld [vmem:[#allocation8 + $0x160] ss:$16 sps:$4 sm:$0xff]  }
  0x77   :  { %1575 = vmatprep.subr.bf16.mxu1 %v3053_v33  ;;  %v3092_v63 = vld [vmem:[#allocation8 + $0x384] ss:$16 sps:$4 sm:$0xff]   ;;  %v3090_v1 = vld [vmem:[#allocation8 + $0x380] ss:$16 sps:$4 sm:$0xff]   ;;  %v172_v33 = vsub.s32 5, %v3714_v19 }
  0x78   :  { %v3098_v2 = vld [vmem:[#allocation8 + $0x364] ss:$16 sps:$4 sm:$0xff]   ;;  %v3096_v3 = vld [vmem:[#allocation8 + $0x360] ss:$16 sps:$4 sm:$0xff]  }
  0x79   :  { %1615 = vmatpush1.bf16.msra.mxu0 %v3042_v34  ;;  %v3101_v4 = vld [vmem:[#allocation8 + $0x144] ss:$16 sps:$4 sm:$0xff]   ;;  %v3099_v6 = vld [vmem:[#allocation8 + $0x140] ss:$16 sps:$4 sm:$0xff]  }
  0x7a   :  { %1616 = vmatprep.subr.bf16.mxu0 %v3050_v35  ;;  %1576 = vmatpush1.bf16.msra.mxu1 %v3051_v36  ;;  %v3104_v5 = vld [vmem:[#allocation8 + $0x344] ss:$16 sps:$4 sm:$0xff]   ;;  %v3102_v7 = vld [vmem:[#allocation8 + $0x340] ss:$16 sps:$4 sm:$0xff]  }
  0x7b   :  { %1577 = vmatprep.subr.bf16.mxu1 %v3059_v37  ;;  %v3107_v8 = vld [vmem:[#allocation8 + $0x124] ss:$16 sps:$4 sm:$0xff]   ;;  %v3105_v10 = vld [vmem:[#allocation8 + $0x120] ss:$16 sps:$4 sm:$0xff]  }
  0x7c   :  { %v3110_v9 = vld [vmem:[#allocation8 + $0x324] ss:$16 sps:$4 sm:$0xff]   ;;  %v3108_v11 = vld [vmem:[#allocation8 + $0x320] ss:$16 sps:$4 sm:$0xff]  }
  0x7d   :  { %1617 = vmatpush1.bf16.msra.mxu0 %v3048_v38  ;;  %v3113_v12 = vld [vmem:[#allocation8 + $0x104] ss:$16 sps:$4 sm:$0xff]   ;;  %v3111_v14 = vld [vmem:[#allocation8 + $0x100] ss:$16 sps:$4 sm:$0xff]  }
  0x7e   :  { %1618 = vmatprep.subr.bf16.mxu0 %v3056_v39  ;;  %1578 = vmatpush1.bf16.msra.mxu1 %v3057_v40  ;;  %v3116_v13 = vld [vmem:[#allocation8 + $0x304] ss:$16 sps:$4 sm:$0xff]   ;;  %v3114_v15 = vld [vmem:[#allocation8 + $0x300] ss:$16 sps:$4 sm:$0xff]  }
  0x7f   :  { %1579 = vmatprep.subr.bf16.mxu1 %v3065_v41  ;;  %v3119_v16 = vld [vmem:[#allocation8 + $0x4e4] ss:$16 sps:$4 sm:$0xff]  }
  0x80   :  { %v3143_v18 = vld [vmem:[#allocation8 + $0x464] ss:$16 sps:$4 sm:$0xff]  }
  0x81   :  { %1619 = vmatpush1.bf16.msra.mxu0 %v3054_v42 }
  0x82   :  { %1620 = vmatprep.subr.bf16.mxu0 %v3062_v43  ;;  %1580 = vmatpush1.bf16.msra.mxu1 %v3063_v44 }
  0x83   :  { %1581 = vmatprep.subr.bf16.mxu1 %v3071_v45 }
  0x85   :  { %1621 = vmatpush1.bf16.msra.mxu0 %v3060_v46  ;;  %v173_v46 = vrot.slane %v3724_v24, %v172_v33  ;;  %v3158_v33 = vld [vmem:[#allocation8 + $0x2c] ss:$16 sps:$4 sm:$0xff]  }
  0x86   :  { %1622 = vmatprep.subr.bf16.mxu0 %v3068_v47  ;;  %1582 = vmatpush2.bf16.msra.mxu1 %v3069_v49 }
  0x87   :  { %1583 = vmatprep.subr.bf16.mxu1 %v3077_v51 }
  0x89   :  { %1623 = vmatpush1.bf16.msra.mxu0 %v3066_v48 }
  0x8a   :  { %1624 = vmatprep.subr.bf16.mxu0 %v3074_v50  ;;  %1584 = vmatpush2.bf16.msra.mxu1 %v3075_v52 }
  0x8b   :  { %1585 = vmatprep.subr.bf16.mxu1 %v3083_v53 }
  0x8d   :  { %1625 = vmatpush2.bf16.msra.mxu0 %v3072_v54 }
  0x8e   :  { %1626 = vmatprep.subr.bf16.mxu0 %v3080_v55  ;;  %1586 = vmatpush2.bf16.msra.mxu1 %v3081_v56 }
  0x8f   :  { %1587 = vmatprep.subr.bf16.mxu1 %v3089_v57 }
  0x91   :  { %1627 = vmatpush2.bf16.msra.mxu0 %v3078_v58 }
  0x92   :  { %1628 = vmatprep.subr.bf16.mxu0 %v3086_v59  ;;  %1588 = vmatpush2.bf16.msra.mxu1 %v3087_v60  ;;  %v3117_v59 = vld [vmem:[#allocation8 + $0x4e0] ss:$16 sps:$4 sm:$0xff]   ;;  %v3120_v60 = vld [vmem:[#allocation8 + $0xe8] ss:$16 sps:$4 sm:$0xff]  }
  0x93   :  { %1589 = vmatprep.subr.bf16.mxu1 %v3095_v61 }
  0x95   :  { %1629 = vmatpush2.bf16.msra.mxu0 %v3084_v62 }
  0x96   :  { %1630 = vmatprep.subr.bf16.mxu0 %v3092_v63  ;;  %1590 = vmatpush2.bf16.msra.mxu1 %v3093_v0  ;;  %v3125_v0 = vld [vmem:[#allocation8 + $0x4c4] ss:$16 sps:$4 sm:$0xff]  }
  0x97   :  { %1591 = vmatprep.subr.bf16.mxu1 %v3101_v4  ;;  %v3123_v4 = vld [vmem:[#allocation8 + $0x4c0] ss:$16 sps:$4 sm:$0xff]  }
  0x99   :  { %1631 = vmatpush2.bf16.msra.mxu0 %v3090_v1 }
  0x9a   :  { %1632 = vmatprep.subr.bf16.mxu0 %v3098_v2  ;;  %1592 = vmatpush2.bf16.msra.mxu1 %v3099_v6  ;;  %v3128_v2 = vld [vmem:[#allocation8 + $0xcc] ss:$16 sps:$4 sm:$0xff]  }
  0x9b   :  { %1593 = vmatprep.subr.bf16.mxu1 %v3107_v8  ;;  %v3131_v8 = vld [vmem:[#allocation8 + $0x4a4] ss:$16 sps:$4 sm:$0xff]  }
  0x9d   :  { %1633 = vmatpush2.bf16.msra.mxu0 %v3096_v3 }
  0x9e   :  { %1634 = vmatprep.subr.bf16.mxu0 %v3104_v5  ;;  %1594 = vmatpush2.bf16.msra.mxu1 %v3105_v10  ;;  %v3126_v5 = vld [vmem:[#allocation8 + $0xc8] ss:$16 sps:$4 sm:$0xff]  }
  0x9f   :  { %1595 = vmatprep.subr.bf16.mxu1 %v3113_v12  ;;  %v3132_v12 = vld [vmem:[#allocation8 + $0xa8] ss:$16 sps:$4 sm:$0xff]  }
  0xa1   :  { %1635 = vmatpush2.bf16.msra.mxu0 %v3102_v7 }
  0xa2   :  { %1636 = vmatprep.subr.bf16.mxu0 %v3110_v9  ;;  %1596 = vmatpush2.bf16.msra.mxu1 %v3111_v14  ;;  %v3134_v9 = vld [vmem:[#allocation8 + $0xac] ss:$16 sps:$4 sm:$0xff]   ;;  %v3137_v14 = vld [vmem:[#allocation8 + $0x484] ss:$16 sps:$4 sm:$0xff]  }
  0xa3   :  { %1651 = vmatprep.subr.bf16.mxu1 %v3119_v16  ;;  %v3135_v16 = vld [vmem:[#allocation8 + $0x480] ss:$16 sps:$4 sm:$0xff]  }
  0xa5   :  { %1637 = vmatpush2.bf16.msra.mxu0 %v3108_v11  ;;  %v3129_v11 = vld [vmem:[#allocation8 + $0x4a0] ss:$16 sps:$4 sm:$0xff]  }
  0xa6   :  { %1638 = vmatprep.subr.bf16.mxu0 %v3116_v13 }
  0xa9   :  { %1639 = vmatpush2.bf16.msra.mxu0 %v3114_v15  ;;  %v3140_v15 = vld [vmem:[#allocation8 + $0x8c] ss:$16 sps:$4 sm:$0xff]  }
  0xaa   :  { %1694 = vmatprep.subr.bf16.mxu0 %v3122_v17  ;;  %v3138_v17 = vld [vmem:[#allocation8 + $0x88] ss:$16 sps:$4 sm:$0xff]  }
 0x124   :  { %v278_v25 = vpop.f32.mrf.mxu0  ;;  %v321_v26 = vpop.f32.mrf.mxu1 }
 0x125   :  { %v279_v40 = vadd.f32 %v278_v25, %v153_v29  ;;  %v322_v41 = vadd.f32 %v321_v26, %v161_v30  ;;  %v3146_v25 = vld [vmem:[#allocation8 + $0x6c] ss:$16 sps:$4 sm:$0xff]   ;;  %v3141_v26 = vld [vmem:[#allocation8 + $0x460] ss:$16 sps:$4 sm:$0xff]  }
 0x126   :  { %v280_v31 = vpop.f32.mrf.mxu0  ;;  %v323_v32 = vpop.f32.mrf.mxu1 }
 0x127   :  { %v281_v36 = vadd.f32 %v280_v31, %v157_v27  ;;  %v324_v37 = vadd.f32 %v323_v32, %v165_v28  ;;  %v373_v54 = vmax.f32 %v279_v40, 0.0  ;;  %v375_v55 = vmax.f32 %v322_v41, 0.0  ;;  %v3150_v31 = vld [vmem:[#allocation8 + $0x48] ss:$16 sps:$4 sm:$0xff]   ;;  %v3155_v32 = vld [vmem:[#allocation8 + $0x424] ss:$16 sps:$4 sm:$0xff]  }
 0x128   :  { %v282_v34 = vpop.f32.mrf.mxu0  ;;  %v325_v35 = vpop.f32.mrf.mxu1  ;;  %v3167_v40 = vld [vmem:[#allocation8 + $0x5e4] ss:$16 sps:$4 sm:$0xff]   ;;  %v3170_v41 = vld [vmem:[#allocation8 + $0x1ec] ss:$16 sps:$4 sm:$0xff]  }
 0x129   :  { %v283_v38 = vadd.f32 %v282_v34, %v153_v29  ;;  %v326_v39 = vadd.f32 %v325_v35, %v161_v30  ;;  %v374_v50 = vmax.f32 %v281_v36, 0.0  ;;  %v376_v51 = vmax.f32 %v324_v37, 0.0  ;;  %v3152_v29 = vld [vmem:[#allocation8 + $0x4c] ss:$16 sps:$4 sm:$0xff]   ;;  %v3147_v30 = vld [vmem:[#allocation8 + $0x440] ss:$16 sps:$4 sm:$0xff]  }
 0x12a   :  { %v284_v42 = vpop.f32.mrf.mxu0  ;;  %v327_v43 = vpop.f32.mrf.mxu1  ;;  %v3153_v34 = vld [vmem:[#allocation8 + $0x420] ss:$16 sps:$4 sm:$0xff]   ;;  %v3156_v35 = vld [vmem:[#allocation8 + $0x28] ss:$16 sps:$4 sm:$0xff]   ;;  %v3161_v36 = vld [vmem:[#allocation8 + $0x404] ss:$16 sps:$4 sm:$0xff]  }
 0x12b   :  { %v285_v44 = vadd.f32 %v284_v42, %v157_v27  ;;  %v328_v45 = vadd.f32 %v327_v43, %v165_v28  ;;  %v379_v47 = vmax.f32 %v283_v38, 0.0  ;;  %v381_v48 = vmax.f32 %v326_v39, 0.0  ;;  %v3144_v27 = vld [vmem:[#allocation8 + $0x68] ss:$16 sps:$4 sm:$0xff]   ;;  %v3149_v28 = vld [vmem:[#allocation8 + $0x444] ss:$16 sps:$4 sm:$0xff]  }
 0x12c   :  { %v3738_v49 = vpop.f32.mrf.mxu0  ;;  %v3164_v37 = vld [vmem:[#allocation8 + $0xc] ss:$16 sps:$4 sm:$0xff]   ;;  %v3159_v38 = vld [vmem:[#allocation8 + $0x400] ss:$16 sps:$4 sm:$0xff]   ;;  %v3162_v39 = vld [vmem:[#allocation8 + $0x8] ss:$16 sps:$4 sm:$0xff]  }
 0x12d   :  { %v380_v52 = vmax.f32 %v285_v44, 0.0  ;;  %v382_v53 = vmax.f32 %v328_v45, 0.0  ;;  %v3742_v62 = vpack.c.bf16 %v379_v47, %v373_v54  ;;  %v3744_v63 = vpack.c.bf16 %v381_v48, %v375_v55  ;;  %v3165_v42 = vld [vmem:[#allocation8 + $0x5e0] ss:$16 sps:$4 sm:$0xff]   ;;  %v3168_v43 = vld [vmem:[#allocation8 + $0x1e8] ss:$16 sps:$4 sm:$0xff]  }
 0x12e   :  { %v366_v56 = vpop.f32.mrf.mxu0  ;;  %v3173_v44 = vld [vmem:[#allocation8 + $0x5c4] ss:$16 sps:$4 sm:$0xff]   ;;  %v3176_v45 = vld [vmem:[#allocation8 + $0x1cc] ss:$16 sps:$4 sm:$0xff]   ;;  %v3174_v47 = vld [vmem:[#allocation8 + $0x1c8] ss:$16 sps:$4 sm:$0xff]  }
 0x12f   :  { %v386_v57 = vpack.c.bf16 %v380_v52, %v374_v50  ;;  %v3740_v58 = vpack.c.bf16 %v382_v53, %v376_v51  ;;  %v367_v61 = vadd.f32 %v366_v56, %v173_v46  ;;  %v3179_v48 = vld [vmem:[#allocation8 + $0x5a4] ss:$16 sps:$4 sm:$0xff]   ;;  %v3182_v50 = vld [vmem:[#allocation8 + $0x1ac] ss:$16 sps:$4 sm:$0xff]   ;;  %v3177_v51 = vld [vmem:[#allocation8 + $0x5a0] ss:$16 sps:$4 sm:$0xff]  }
 0x130   :  { %v3746_v1 = vpop.f32.mrf.mxu0  ;;  %v3180_v52 = vld [vmem:[#allocation8 + $0x1a8] ss:$16 sps:$4 sm:$0xff]   ;;  %v3185_v53 = vld [vmem:[#allocation8 + $0x584] ss:$16 sps:$4 sm:$0xff]   ;;  %v3188_v54 = vld [vmem:[#allocation8 + $0x18c] ss:$16 sps:$4 sm:$0xff]  }
 0x131   :  { %1597 = vmatprep.mubr.bf16.mxu1 %v386_v57  ;;  %1640 = vmatprep.mubr.bf16.mxu0 %v3740_v58  ;;  %v378_v6 = vmax.f32 %v367_v61, 0.0  ;;  %v3183_v55 = vld [vmem:[#allocation8 + $0x580] ss:$16 sps:$4 sm:$0xff]   ;;  %v3186_v56 = vld [vmem:[#allocation8 + $0x188] ss:$16 sps:$4 sm:$0xff]  }
 0x132   :  { %1598 = vmatmul.mubr.bf16.vlgmr.msra.gmra.mxu1 %v3742_v62  ;;  %1641 = vmatmul.mubr.bf16.vlgmr.msra.gmra.mxu0 %v3744_v63  ;;  %v370_v3 = vpop.f32.mrf.mxu0  ;;  %v3192_v61 = vld [vmem:[#allocation8 + $0x168] ss:$16 sps:$4 sm:$0xff]  }
 0x133   :  { %1652 = vmatpush1.bf16.msra.mxu1 %v3117_v59  ;;  %1695 = vmatpush1.bf16.msra.mxu0 %v3120_v60  ;;  %v371_v7 = vadd.f32 %v370_v3, %v173_v46  ;;  %v3171_v46 = vld [vmem:[#allocation8 + $0x5c0] ss:$16 sps:$4 sm:$0xff]   ;;  %v3194_v59 = vld [vmem:[#allocation8 + $0x16c] ss:$16 sps:$4 sm:$0xff]  }
 0x134   :  { %1726 = vmatprep.mubr.bf16.mxu0 %v386_v57  ;;  %1653 = vmatprep.subr.bf16.mxu1 %v3125_v0  ;;  %v3191_v57 = vld [vmem:[#allocation8 + $0x564] ss:$16 sps:$4 sm:$0xff]   ;;  %v3189_v60 = vld [vmem:[#allocation8 + $0x560] ss:$16 sps:$4 sm:$0xff]   ;;  %v168_v0 = vsub.s32 4, %v3714_v19 }
 0x135   :  { %1696 = vmatprep.subr.bf16.mxu0 %v3128_v2  ;;  %v384_v10 = vmax.f32 %v371_v7, 0.0  ;;  %v3197_v2 = vld [vmem:[#allocation8 + $0x544] ss:$16 sps:$4 sm:$0xff]   ;;  %v3200_v3 = vld [vmem:[#allocation8 + $0x14c] ss:$16 sps:$4 sm:$0xff]  }
 0x136   :  { %v3203_v7 = vld [vmem:[#allocation8 + $0x524] ss:$16 sps:$4 sm:$0xff]  }
 0x137   :  { %1654 = vmatpush1.bf16.msra.mxu1 %v3123_v4  ;;  %1697 = vmatpush1.bf16.msra.mxu0 %v3126_v5  ;;  %v3751_v13 = vpack.c.bf16 %v384_v10, %v378_v6  ;;  %v3195_v4 = vld [vmem:[#allocation8 + $0x540] ss:$16 sps:$4 sm:$0xff]   ;;  %v3198_v5 = vld [vmem:[#allocation8 + $0x148] ss:$16 sps:$4 sm:$0xff]   ;;  %v169_v6 = vrot.slane %v3724_v24, %v168_v0 }
 0x138   :  { %1655 = vmatprep.subr.bf16.mxu1 %v3131_v8  ;;  %1698 = vmatprep.subr.bf16.mxu0 %v3134_v9  ;;  %v3206_v8 = vld [vmem:[#allocation8 + $0x12c] ss:$16 sps:$4 sm:$0xff]   ;;  %v3201_v9 = vld [vmem:[#allocation8 + $0x520] ss:$16 sps:$4 sm:$0xff]   ;;  %v3204_v10 = vld [vmem:[#allocation8 + $0x128] ss:$16 sps:$4 sm:$0xff]  }
 0x139   :  { %1683 = vmatprep.mubr.bf16.mxu1 %v3751_v13  ;;  %v3210_v24 = vld [vmem:[#allocation8 + $0x108] ss:$16 sps:$4 sm:$0xff]  }
 0x13a   :  { %v3270_v0 = vld [vmem:[#allocation8 + $0x5c8] ss:$16 sps:$4 sm:$0xff]  }
 0x13b   :  { %1656 = vmatpush1.bf16.msra.mxu1 %v3129_v11  ;;  %1699 = vmatpush1.bf16.msra.mxu0 %v3132_v12  ;;  %v365_v11 = vadd.f32 %v3738_v49, %v169_v6  ;;  %v369_v12 = vadd.f32 %v3746_v1, %v169_v6  ;;  %v3216_v1 = vld [vmem:[#allocation8 + $0x4e8] ss:$16 sps:$4 sm:$0xff]   ;;  %v3281_v6 = vld [vmem:[#allocation8 + $0x38c] ss:$16 sps:$4 sm:$0xff]  }
 0x13c   :  { %1657 = vmatprep.subr.bf16.mxu1 %v3137_v14  ;;  %1700 = vmatprep.subr.bf16.mxu0 %v3140_v15  ;;  %v3209_v14 = vld [vmem:[#allocation8 + $0x504] ss:$16 sps:$4 sm:$0xff]   ;;  %v3212_v15 = vld [vmem:[#allocation8 + $0x10c] ss:$16 sps:$4 sm:$0xff]  }
 0x13f   :  { %1658 = vmatpush1.bf16.msra.mxu1 %v3135_v16  ;;  %1701 = vmatpush1.bf16.msra.mxu0 %v3138_v17  ;;  %v3207_v16 = vld [vmem:[#allocation8 + $0x500] ss:$16 sps:$4 sm:$0xff]   ;;  %v377_v17 = vmax.f32 %v365_v11, 0.0  ;;  %v3290_v11 = vld [vmem:[#allocation8 + $0x56c] ss:$16 sps:$4 sm:$0xff]  }
 0x140   :  { %1659 = vmatprep.subr.bf16.mxu1 %v3143_v18  ;;  %1702 = vmatprep.subr.bf16.mxu0 %v3146_v25  ;;  %v383_v18 = vmax.f32 %v369_v12, 0.0  ;;  %v3215_v25 = vld [vmem:[#allocation8 + $0x2ec] ss:$16 sps:$4 sm:$0xff]   ;;  %v3285_v12 = vld [vmem:[#allocation8 + $0x368] ss:$16 sps:$4 sm:$0xff]  }
 0x142   :  { %v3758_v49 = vpack.c.bf16 %v383_v18, %v377_v17  ;;  %v3294_v17 = vld [vmem:[#allocation8 + $0x548] ss:$16 sps:$4 sm:$0xff]   ;;  %v3299_v18 = vld [vmem:[#allocation8 + $0x32c] ss:$16 sps:$4 sm:$0xff]  }
 0x143   :  { %1660 = vmatpush1.bf16.msra.mxu1 %v3141_v26  ;;  %1703 = vmatpush1.bf16.msra.mxu0 %v3144_v27  ;;  %v3218_v26 = vld [vmem:[#allocation8 + $0x4ec] ss:$16 sps:$4 sm:$0xff]   ;;  %v3213_v27 = vld [vmem:[#allocation8 + $0x2e8] ss:$16 sps:$4 sm:$0xff]  }
 0x144   :  { %1661 = vmatprep.subr.bf16.mxu1 %v3149_v28  ;;  %1704 = vmatprep.subr.bf16.mxu0 %v3152_v29  ;;  %v3221_v28 = vld [vmem:[#allocation8 + $0x2cc] ss:$16 sps:$4 sm:$0xff]  }
 0x145   :  { %v3224_v29 = vld [vmem:[#allocation8 + $0x4cc] ss:$16 sps:$4 sm:$0xff]  }
 0x147   :  { %1662 = vmatpush1.bf16.msra.mxu1 %v3147_v30  ;;  %1705 = vmatpush1.bf16.msra.mxu0 %v3150_v31  ;;  %v3219_v30 = vld [vmem:[#allocation8 + $0x2c8] ss:$16 sps:$4 sm:$0xff]  }
 0x148   :  { %1663 = vmatprep.subr.bf16.mxu1 %v3155_v32  ;;  %1706 = vmatprep.subr.bf16.mxu0 %v3158_v33  ;;  %v3222_v31 = vld [vmem:[#allocation8 + $0x4c8] ss:$16 sps:$4 sm:$0xff]   ;;  %v3227_v32 = vld [vmem:[#allocation8 + $0x2ac] ss:$16 sps:$4 sm:$0xff]  }
 0x149   :  { %v3230_v33 = vld [vmem:[#allocation8 + $0x4ac] ss:$16 sps:$4 sm:$0xff]  }
 0x14b   :  { %1664 = vmatpush1.bf16.msra.mxu1 %v3153_v34  ;;  %1707 = vmatpush1.bf16.msra.mxu0 %v3156_v35  ;;  %v3225_v34 = vld [vmem:[#allocation8 + $0x2a8] ss:$16 sps:$4 sm:$0xff]  }
 0x14c   :  { %1665 = vmatprep.subr.bf16.mxu1 %v3161_v36  ;;  %1708 = vmatprep.subr.bf16.mxu0 %v3164_v37  ;;  %v3228_v35 = vld [vmem:[#allocation8 + $0x4a8] ss:$16 sps:$4 sm:$0xff]   ;;  %v3233_v36 = vld [vmem:[#allocation8 + $0x28c] ss:$16 sps:$4 sm:$0xff]  }
 0x14d   :  { %v3231_v37 = vld [vmem:[#allocation8 + $0x288] ss:$16 sps:$4 sm:$0xff]  }
 0x14f   :  { %1666 = vmatpush1.bf16.msra.mxu1 %v3159_v38  ;;  %1709 = vmatpush1.bf16.msra.mxu0 %v3162_v39  ;;  %v3239_v38 = vld [vmem:[#allocation8 + $0x26c] ss:$16 sps:$4 sm:$0xff]   ;;  %v3237_v39 = vld [vmem:[#allocation8 + $0x268] ss:$16 sps:$4 sm:$0xff]  }
 0x150   :  { %1667 = vmatprep.subr.bf16.mxu1 %v3167_v40  ;;  %1710 = vmatprep.subr.bf16.mxu0 %v3170_v41  ;;  %v3240_v40 = vld [vmem:[#allocation8 + $0x468] ss:$16 sps:$4 sm:$0xff]   ;;  %v3245_v41 = vld [vmem:[#allocation8 + $0x24c] ss:$16 sps:$4 sm:$0xff]  }
 0x153   :  { %1668 = vmatpush2.bf16.msra.mxu1 %v3165_v42  ;;  %1711 = vmatpush2.bf16.msra.mxu0 %v3168_v43  ;;  %v3248_v42 = vld [vmem:[#allocation8 + $0x44c] ss:$16 sps:$4 sm:$0xff]   ;;  %v3243_v43 = vld [vmem:[#allocation8 + $0x248] ss:$16 sps:$4 sm:$0xff]  }
 0x154   :  { %1669 = vmatprep.subr.bf16.mxu1 %v3173_v44  ;;  %1712 = vmatprep.subr.bf16.mxu0 %v3176_v45  ;;  %v3246_v44 = vld [vmem:[#allocation8 + $0x448] ss:$16 sps:$4 sm:$0xff]   ;;  %v3251_v45 = vld [vmem:[#allocation8 + $0x22c] ss:$16 sps:$4 sm:$0xff]  }
 0x157   :  { %1670 = vmatpush2.bf16.msra.mxu1 %v3171_v46  ;;  %1713 = vmatpush2.bf16.msra.mxu0 %v3174_v47  ;;  %v3254_v46 = vld [vmem:[#allocation8 + $0x42c] ss:$16 sps:$4 sm:$0xff]   ;;  %v3249_v47 = vld [vmem:[#allocation8 + $0x228] ss:$16 sps:$4 sm:$0xff]  }
 0x158   :  { %1671 = vmatprep.subr.bf16.mxu1 %v3179_v48  ;;  %1714 = vmatprep.subr.bf16.mxu0 %v3182_v50  ;;  %v3252_v48 = vld [vmem:[#allocation8 + $0x428] ss:$16 sps:$4 sm:$0xff]   ;;  %v3257_v50 = vld [vmem:[#allocation8 + $0x20c] ss:$16 sps:$4 sm:$0xff]  }
 0x15b   :  { %1672 = vmatpush2.bf16.msra.mxu1 %v3177_v51  ;;  %1715 = vmatpush2.bf16.msra.mxu0 %v3180_v52  ;;  %v3260_v51 = vld [vmem:[#allocation8 + $0x40c] ss:$16 sps:$4 sm:$0xff]   ;;  %v3255_v52 = vld [vmem:[#allocation8 + $0x208] ss:$16 sps:$4 sm:$0xff]  }
 0x15c   :  { %1673 = vmatprep.subr.bf16.mxu1 %v3185_v53  ;;  %1716 = vmatprep.subr.bf16.mxu0 %v3188_v54  ;;  %v3258_v53 = vld [vmem:[#allocation8 + $0x408] ss:$16 sps:$4 sm:$0xff]   ;;  %v3263_v54 = vld [vmem:[#allocation8 + $0x3ec] ss:$16 sps:$4 sm:$0xff]  }
 0x15f   :  { %1674 = vmatpush2.bf16.msra.mxu1 %v3183_v55  ;;  %1717 = vmatpush2.bf16.msra.mxu0 %v3186_v56  ;;  %v3266_v55 = vld [vmem:[#allocation8 + $0x5ec] ss:$16 sps:$4 sm:$0xff]   ;;  %v3261_v56 = vld [vmem:[#allocation8 + $0x3e8] ss:$16 sps:$4 sm:$0xff]  }
 0x160   :  { %1675 = vmatprep.subr.bf16.mxu1 %v3191_v57  ;;  %1718 = vmatprep.subr.bf16.mxu0 %v3194_v59  ;;  %v3264_v57 = vld [vmem:[#allocation8 + $0x5e8] ss:$16 sps:$4 sm:$0xff]   ;;  %v3269_v59 = vld [vmem:[#allocation8 + $0x3cc] ss:$16 sps:$4 sm:$0xff]  }
 0x163   :  { %1676 = vmatpush2.bf16.msra.mxu1 %v3189_v60  ;;  %1719 = vmatpush2.bf16.msra.mxu0 %v3192_v61  ;;  %v3272_v60 = vld [vmem:[#allocation8 + $0x5cc] ss:$16 sps:$4 sm:$0xff]   ;;  %v3267_v61 = vld [vmem:[#allocation8 + $0x3c8] ss:$16 sps:$4 sm:$0xff]  }
 0x164   :  { %1677 = vmatprep.subr.bf16.mxu1 %v3197_v2  ;;  %1720 = vmatprep.subr.bf16.mxu0 %v3200_v3  ;;  %v3275_v2 = vld [vmem:[#allocation8 + $0x3ac] ss:$16 sps:$4 sm:$0xff]  }
 0x165   :  { %v3278_v3 = vld [vmem:[#allocation8 + $0x5ac] ss:$16 sps:$4 sm:$0xff]  }
 0x167   :  { %1678 = vmatpush2.bf16.msra.mxu1 %v3195_v4  ;;  %1721 = vmatpush2.bf16.msra.mxu0 %v3198_v5  ;;  %v3273_v4 = vld [vmem:[#allocation8 + $0x3a8] ss:$16 sps:$4 sm:$0xff]  }
 0x168   :  { %1679 = vmatprep.subr.bf16.mxu1 %v3203_v7  ;;  %1722 = vmatprep.subr.bf16.mxu0 %v3206_v8  ;;  %v3276_v5 = vld [vmem:[#allocation8 + $0x5a8] ss:$16 sps:$4 sm:$0xff]   ;;  %v3284_v7 = vld [vmem:[#allocation8 + $0x58c] ss:$16 sps:$4 sm:$0xff]  }
 0x169   :  { %v3279_v8 = vld [vmem:[#allocation8 + $0x388] ss:$16 sps:$4 sm:$0xff]  }
 0x16b   :  { %1680 = vmatpush2.bf16.msra.mxu1 %v3201_v9  ;;  %1723 = vmatpush2.bf16.msra.mxu0 %v3204_v10  ;;  %v3282_v9 = vld [vmem:[#allocation8 + $0x588] ss:$16 sps:$4 sm:$0xff]   ;;  %v3287_v10 = vld [vmem:[#allocation8 + $0x36c] ss:$16 sps:$4 sm:$0xff]  }
 0x16c   :  { %1681 = vmatprep.subr.bf16.mxu1 %v3209_v14  ;;  %1724 = vmatprep.subr.bf16.mxu0 %v3212_v15  ;;  %v3288_v14 = vld [vmem:[#allocation8 + $0x568] ss:$16 sps:$4 sm:$0xff]   ;;  %v3293_v15 = vld [vmem:[#allocation8 + $0x34c] ss:$16 sps:$4 sm:$0xff]  }
 0x16f   :  { %1682 = vmatpush2.bf16.msra.mxu1 %v3207_v16  ;;  %1725 = vmatpush2.bf16.msra.mxu0 %v3210_v24  ;;  %v3296_v16 = vld [vmem:[#allocation8 + $0x54c] ss:$16 sps:$4 sm:$0xff]   ;;  %v3291_v24 = vld [vmem:[#allocation8 + $0x348] ss:$16 sps:$4 sm:$0xff]  }
 0x170   :  { %1737 = vmatprep.subr.bf16.mxu1 %v3215_v25  ;;  %1780 = vmatprep.subr.bf16.mxu0 %v3218_v26  ;;  %v3302_v25 = vld [vmem:[#allocation8 + $0x52c] ss:$16 sps:$4 sm:$0xff]   ;;  %v3297_v26 = vld [vmem:[#allocation8 + $0x328] ss:$16 sps:$4 sm:$0xff]  }
 0x172   :  { %1684 = vmatmul.mubr.bf16.vlgmr.msra.gmra.mxu1 %v3758_v49  ;;  %1727 = vmatmul.mubr.bf16.vlgmr.msra.gmra.mxu0 %v3742_v62  ;;  %v3236_v62 = vld [vmem:[#allocation8 + $0x48c] ss:$16 sps:$4 sm:$0xff]  }
 0x173   :  { %1738 = vmatpush1.bf16.msra.mxu1 %v3213_v27  ;;  %1769 = vmatprep.mubr.bf16.mxu1 %v3740_v58  ;;  %v3234_v58 = vld [vmem:[#allocation8 + $0x488] ss:$16 sps:$4 sm:$0xff]  }
 0x174   :  { %1781 = vmatpush1.bf16.msra.mxu0 %v3216_v1  ;;  %1812 = vmatprep.mubr.bf16.mxu0 %v3751_v13  ;;  %v3242_v13 = vld [vmem:[#allocation8 + $0x46c] ss:$16 sps:$4 sm:$0xff]   ;;  %v3300_v27 = vld [vmem:[#allocation8 + $0x528] ss:$16 sps:$4 sm:$0xff]  }
 0x175   :  { %1739 = vmatprep.subr.bf16.mxu1 %v3221_v28  ;;  %1782 = vmatprep.subr.bf16.mxu0 %v3224_v29  ;;  %v3305_v1 = vld [vmem:[#allocation8 + $0x30c] ss:$16 sps:$4 sm:$0xff]   ;;  %v3303_v29 = vld [vmem:[#allocation8 + $0x308] ss:$16 sps:$4 sm:$0xff]  }
 0x176   :  { %v3308_v28 = vld [vmem:[#allocation8 + $0x50c] ss:$16 sps:$4 sm:$0xff]  }
 0x177   :  { %1740 = vmatpush1.bf16.msra.mxu1 %v3219_v30  ;;  %v3306_v30 = vld [vmem:[#allocation8 + $0x508] ss:$16 sps:$4 sm:$0xff]  }
 0x178   :  { %1783 = vmatpush1.bf16.msra.mxu0 %v3222_v31  ;;  %1741 = vmatprep.subr.bf16.mxu1 %v3227_v32  ;;  %v3311_v31 = vld [vmem:[#allocation10 + $0x74] ss:$8 sps:$4 sm:$0xff]   ;;  %v3309_v32 = vld [vmem:[#allocation10 + $0x70] ss:$8 sps:$4 sm:$0xff]  }
 0x179   :  { %1784 = vmatprep.subr.bf16.mxu0 %v3230_v33  ;;  %v3314_v33 = vld [vmem:[#allocation10 + $0x64] ss:$8 sps:$4 sm:$0xff]  }
 0x17b   :  { %1742 = vmatpush1.bf16.msra.mxu1 %v3225_v34  ;;  %v3312_v34 = vld [vmem:[#allocation10 + $0x60] ss:$8 sps:$4 sm:$0xff]  }
 0x17c   :  { %1785 = vmatpush1.bf16.msra.mxu0 %v3228_v35  ;;  %1743 = vmatprep.subr.bf16.mxu1 %v3233_v36  ;;  %v3317_v35 = vld [vmem:[#allocation10 + $0x54] ss:$8 sps:$4 sm:$0xff]   ;;  %v3315_v36 = vld [vmem:[#allocation10 + $0x50] ss:$8 sps:$4 sm:$0xff]  }
 0x17d   :  { %1786 = vmatprep.subr.bf16.mxu0 %v3236_v62  ;;  %v3320_v62 = vld [vmem:[#allocation10 + $0x44] ss:$8 sps:$4 sm:$0xff]  }
 0x17f   :  { %1744 = vmatpush1.bf16.msra.mxu1 %v3231_v37  ;;  %v3318_v37 = vld [vmem:[#allocation10 + $0x40] ss:$8 sps:$4 sm:$0xff]  }
 0x180   :  { %1787 = vmatpush1.bf16.msra.mxu0 %v3234_v58  ;;  %1745 = vmatprep.subr.bf16.mxu1 %v3239_v38  ;;  %v3323_v58 = vld [vmem:[#allocation10 + $0x34] ss:$8 sps:$4 sm:$0xff]   ;;  %v3321_v38 = vld [vmem:[#allocation10 + $0x30] ss:$8 sps:$4 sm:$0xff]  }
 0x181   :  { %1788 = vmatprep.subr.bf16.mxu0 %v3242_v13  ;;  %v3326_v13 = vld [vmem:[#allocation10 + $0x24] ss:$8 sps:$4 sm:$0xff]  }
 0x183   :  { %1746 = vmatpush1.bf16.msra.mxu1 %v3237_v39  ;;  %v3357_v39 = vld [vmem:[#allocation10 + $0x170] ss:$8 sps:$4 sm:$0xff]  }
 0x184   :  { %1789 = vmatpush1.bf16.msra.mxu0 %v3240_v40  ;;  %1747 = vmatprep.subr.bf16.mxu1 %v3245_v41  ;;  %v3362_v40 = vld [vmem:[#allocation10 + $0x164] ss:$8 sps:$4 sm:$0xff]   ;;  %v3360_v41 = vld [vmem:[#allocation10 + $0x160] ss:$8 sps:$4 sm:$0xff]  }
 0x185   :  { %1790 = vmatprep.subr.bf16.mxu0 %v3248_v42  ;;  %v3329_v42 = vld [vmem:[#allocation10 + $0x14] ss:$8 sps:$4 sm:$0xff]  }
 0x187   :  { %1748 = vmatpush1.bf16.msra.mxu1 %v3243_v43  ;;  %v3365_v43 = vld [vmem:[#allocation10 + $0x154] ss:$8 sps:$4 sm:$0xff]  }
 0x188   :  { %1791 = vmatpush1.bf16.msra.mxu0 %v3246_v44  ;;  %1749 = vmatprep.subr.bf16.mxu1 %v3251_v45  ;;  %v3327_v44 = vld [vmem:[#allocation10 + $0x10] ss:$8 sps:$4 sm:$0xff]  }
 0x189   :  { %1792 = vmatprep.subr.bf16.mxu0 %v3254_v46  ;;  %v3363_v45 = vld [vmem:[#allocation10 + $0x150] ss:$8 sps:$4 sm:$0xff]   ;;  %v3332_v46 = vld [vmem:[#allocation10 + $0x4] ss:$8 sps:$4 sm:$0xff]  }
 0x18b   :  { %1750 = vmatpush1.bf16.msra.mxu1 %v3249_v47  ;;  %v3368_v47 = vld [vmem:[#allocation10 + $0x144] ss:$8 sps:$4 sm:$0xff]  }
 0x18c   :  { %1793 = vmatpush1.bf16.msra.mxu0 %v3252_v48  ;;  %1751 = vmatprep.subr.bf16.mxu1 %v3257_v50  ;;  %v3330_v48 = vld [vmem:[#allocation10] ss:$8 sps:$4 sm:$0xff]  }
 0x18d   :  { %1794 = vmatprep.subr.bf16.mxu0 %v3260_v51  ;;  %v3366_v50 = vld [vmem:[#allocation10 + $0x140] ss:$8 sps:$4 sm:$0xff]   ;;  %v3335_v51 = vld [vmem:[#allocation10 + $0xf4] ss:$8 sps:$4 sm:$0xff]  }
 0x18f   :  { %1752 = vmatpush1.bf16.msra.mxu1 %v3255_v52  ;;  %v3371_v52 = vld [vmem:[#allocation10 + $0x134] ss:$8 sps:$4 sm:$0xff]  }
 0x190   :  { %1795 = vmatpush1.bf16.msra.mxu0 %v3258_v53  ;;  %1753 = vmatprep.subr.bf16.mxu1 %v3263_v54  ;;  %v3333_v53 = vld [vmem:[#allocation10 + $0xf0] ss:$8 sps:$4 sm:$0xff]  }
 0x191   :  { %1796 = vmatprep.subr.bf16.mxu0 %v3266_v55  ;;  %v3369_v54 = vld [vmem:[#allocation10 + $0x130] ss:$8 sps:$4 sm:$0xff]   ;;  %v3338_v55 = vld [vmem:[#allocation10 + $0xe4] ss:$8 sps:$4 sm:$0xff]  }
 0x193   :  { %1754 = vmatpush2.bf16.msra.mxu1 %v3261_v56  ;;  %v3374_v56 = vld [vmem:[#allocation10 + $0x124] ss:$8 sps:$4 sm:$0xff]  }
 0x194   :  { %1797 = vmatpush2.bf16.msra.mxu0 %v3264_v57  ;;  %1755 = vmatprep.subr.bf16.mxu1 %v3269_v59  ;;  %v3336_v57 = vld [vmem:[#allocation10 + $0xe0] ss:$8 sps:$4 sm:$0xff]  }
 0x195   :  { %1798 = vmatprep.subr.bf16.mxu0 %v3272_v60  ;;  %v3372_v59 = vld [vmem:[#allocation10 + $0x120] ss:$8 sps:$4 sm:$0xff]   ;;  %v3341_v60 = vld [vmem:[#allocation10 + $0xd4] ss:$8 sps:$4 sm:$0xff]  }
 0x197   :  { %1756 = vmatpush2.bf16.msra.mxu1 %v3267_v61  ;;  %v3377_v61 = vld [vmem:[#allocation10 + $0x114] ss:$8 sps:$4 sm:$0xff]  }
 0x198   :  { %1799 = vmatpush2.bf16.msra.mxu0 %v3270_v0  ;;  %1757 = vmatprep.subr.bf16.mxu1 %v3275_v2  ;;  %v3339_v0 = vld [vmem:[#allocation10 + $0xd0] ss:$8 sps:$4 sm:$0xff]  }
 0x199   :  { %1800 = vmatprep.subr.bf16.mxu0 %v3278_v3  ;;  %v3375_v2 = vld [vmem:[#allocation10 + $0x110] ss:$8 sps:$4 sm:$0xff]   ;;  %v3344_v3 = vld [vmem:[#allocation10 + $0xc4] ss:$8 sps:$4 sm:$0xff]  }
 0x19b   :  { %1758 = vmatpush2.bf16.msra.mxu1 %v3273_v4  ;;  %v3380_v4 = vld [vmem:[#allocation10 + $0x104] ss:$8 sps:$4 sm:$0xff]  }
 0x19c   :  { %1801 = vmatpush2.bf16.msra.mxu0 %v3276_v5  ;;  %1759 = vmatprep.subr.bf16.mxu1 %v3281_v6  ;;  %v3342_v5 = vld [vmem:[#allocation10 + $0xc0] ss:$8 sps:$4 sm:$0xff]  }
 0x19d   :  { %1802 = vmatprep.subr.bf16.mxu0 %v3284_v7  ;;  %v3378_v6 = vld [vmem:[#allocation10 + $0x100] ss:$8 sps:$4 sm:$0xff]   ;;  %v3347_v7 = vld [vmem:[#allocation10 + $0xb4] ss:$8 sps:$4 sm:$0xff]  }
 0x19f   :  { %1760 = vmatpush2.bf16.msra.mxu1 %v3279_v8  ;;  %v3383_v8 = vld [vmem:[#allocation10 + $0x1f4] ss:$8 sps:$4 sm:$0xff]  }
 0x1a0   :  { %1803 = vmatpush2.bf16.msra.mxu0 %v3282_v9  ;;  %1761 = vmatprep.subr.bf16.mxu1 %v3287_v10  ;;  %v3345_v9 = vld [vmem:[#allocation10 + $0xb0] ss:$8 sps:$4 sm:$0xff]  }
 0x1a1   :  { %1804 = vmatprep.subr.bf16.mxu0 %v3290_v11  ;;  %v3381_v10 = vld [vmem:[#allocation10 + $0x1f0] ss:$8 sps:$4 sm:$0xff]   ;;  %v3350_v11 = vld [vmem:[#allocation10 + $0xa4] ss:$8 sps:$4 sm:$0xff]  }
 0x1a3   :  { %1762 = vmatpush2.bf16.msra.mxu1 %v3285_v12  ;;  %v3386_v12 = vld [vmem:[#allocation10 + $0x1e4] ss:$8 sps:$4 sm:$0xff]  }
 0x1a4   :  { %1805 = vmatpush2.bf16.msra.mxu0 %v3288_v14  ;;  %1763 = vmatprep.subr.bf16.mxu1 %v3293_v15  ;;  %v3348_v14 = vld [vmem:[#allocation10 + $0xa0] ss:$8 sps:$4 sm:$0xff]  }
 0x1a5   :  { %1806 = vmatprep.subr.bf16.mxu0 %v3296_v16  ;;  %v3384_v15 = vld [vmem:[#allocation10 + $0x1e0] ss:$8 sps:$4 sm:$0xff]   ;;  %v3353_v16 = vld [vmem:[#allocation10 + $0x94] ss:$8 sps:$4 sm:$0xff]  }
 0x1a7   :  { %1764 = vmatpush2.bf16.msra.mxu1 %v3291_v24  ;;  %v3389_v24 = vld [vmem:[#allocation10 + $0x1d4] ss:$8 sps:$4 sm:$0xff]  }
 0x1a8   :  { %1807 = vmatpush2.bf16.msra.mxu0 %v3294_v17  ;;  %1765 = vmatprep.subr.bf16.mxu1 %v3299_v18  ;;  %v3351_v17 = vld [vmem:[#allocation10 + $0x90] ss:$8 sps:$4 sm:$0xff]  }
 0x1a9   :  { %1808 = vmatprep.subr.bf16.mxu0 %v3302_v25  ;;  %v3387_v18 = vld [vmem:[#allocation10 + $0x1d0] ss:$8 sps:$4 sm:$0xff]   ;;  %v3356_v25 = vld [vmem:[#allocation10 + $0x84] ss:$8 sps:$4 sm:$0xff]  }
 0x1ab   :  { %1766 = vmatpush2.bf16.msra.mxu1 %v3297_v26  ;;  %v3392_v26 = vld [vmem:[#allocation10 + $0x1c4] ss:$8 sps:$4 sm:$0xff]  }
 0x1ac   :  { %1809 = vmatpush2.bf16.msra.mxu0 %v3300_v27  ;;  %1767 = vmatprep.subr.bf16.mxu1 %v3305_v1  ;;  %v3354_v27 = vld [vmem:[#allocation10 + $0x80] ss:$8 sps:$4 sm:$0xff]  }
 0x1ad   :  { %1810 = vmatprep.subr.bf16.mxu0 %v3308_v28  ;;  %v3390_v1 = vld [vmem:[#allocation10 + $0x1c0] ss:$8 sps:$4 sm:$0xff]   ;;  %v3395_v28 = vld [vmem:[#allocation10 + $0x1b4] ss:$8 sps:$4 sm:$0xff]  }
 0x1af   :  { %1768 = vmatpush2.bf16.msra.mxu1 %v3303_v29  ;;  %v3393_v29 = vld [vmem:[#allocation10 + $0x1b0] ss:$8 sps:$4 sm:$0xff]  }
 0x1b0   :  { %1811 = vmatpush2.bf16.msra.mxu0 %v3306_v30  ;;  %2231 = vmatprep.subr.bf16.mxu1 %v3311_v31  ;;  %v3398_v30 = vld [vmem:[#allocation10 + $0x1a4] ss:$8 sps:$4 sm:$0xff]   ;;  %v3396_v31 = vld [vmem:[#allocation10 + $0x1a0] ss:$8 sps:$4 sm:$0xff]  }
 0x1b2   :  { %1770 = vmatmul.mubr.bf16.vlgmr.msra.gmra.mxu1 %v3744_v63  ;;  %v3359_v63 = vld [vmem:[#allocation10 + $0x174] ss:$8 sps:$4 sm:$0xff]  }
 0x1b3   :  { %1813 = vmatmul.mubr.bf16.vlgmr.msra.gmra.mxu0 %v3758_v49  ;;  %2232 = vmatpush1.bf16.msra.mxu1 %v3309_v32  ;;  %v3324_v49 = vld [vmem:[#allocation10 + $0x20] ss:$8 sps:$4 sm:$0xff]   ;;  %v3401_v32 = vld [vmem:[#allocation10 + $0x194] ss:$8 sps:$4 sm:$0xff]  }
 0x1b4   :  { %2233 = vmatprep.subr.bf16.mxu1 %v3314_v33  ;;  %2274 = vmatprep.subr.bf16.mxu0 %v3359_v63  ;;  %v3399_v33 = vld [vmem:[#allocation10 + $0x190] ss:$8 sps:$4 sm:$0xff]  }
 0x1b5   :  { %2275 = vmatpush1.bf16.msra.mxu0 %v3357_v39 }
 0x1b6   :  { %2276 = vmatprep.subr.bf16.mxu0 %v3362_v40 }
 0x1b7   :  { %2234 = vmatpush1.bf16.msra.mxu1 %v3312_v34  ;;  %v3404_v34 = vld [vmem:[#allocation10 + $0x184] ss:$8 sps:$4 sm:$0xff]  }
 0x1b8   :  { %2235 = vmatprep.subr.bf16.mxu1 %v3317_v35  ;;  %v3402_v35 = vld [vmem:[#allocation10 + $0x180] ss:$8 sps:$4 sm:$0xff]  }
 0x1b9   :  { %2277 = vmatpush1.bf16.msra.mxu0 %v3360_v41 }
 0x1ba   :  { %2278 = vmatprep.subr.bf16.mxu0 %v3365_v43 }
 0x1bb   :  { %2236 = vmatpush1.bf16.msra.mxu1 %v3315_v36 }
 0x1bc   :  { %2237 = vmatprep.subr.bf16.mxu1 %v3320_v62 }
 0x1bd   :  { %2279 = vmatpush1.bf16.msra.mxu0 %v3363_v45 }
 0x1be   :  { %2280 = vmatprep.subr.bf16.mxu0 %v3368_v47 }
 0x1bf   :  { %2238 = vmatpush1.bf16.msra.mxu1 %v3318_v37 }
 0x1c0   :  { %2239 = vmatprep.subr.bf16.mxu1 %v3323_v58  ;;  %v583_v58 = vld [vmem:[%s3796_s4] sm:$0xf] }
 0x1c1   :  { %2281 = vmatpush1.bf16.msra.mxu0 %v3366_v50  ;;  %v588_v39 = vrot.slane %v583_v58, %v3721_v22 }
 0x1c2   :  { %2282 = vmatprep.subr.bf16.mxu0 %v3371_v52 }
 0x1c3   :  { %2240 = vmatpush1.bf16.msra.mxu1 %v3321_v38 }
 0x1c4   :  { %2241 = vmatprep.subr.bf16.mxu1 %v3326_v13  ;;  %v592_v13 = vrot.slane %v583_v58, %v3717_v20 }
 0x1c5   :  { %2283 = vmatpush1.bf16.msra.mxu0 %v3369_v54 }
 0x1c6   :  { %2284 = vmatprep.subr.bf16.mxu0 %v3374_v56 }
 0x1c7   :  { %2242 = vmatpush1.bf16.msra.mxu1 %v3324_v49 }
 0x1c8   :  { %2243 = vmatprep.subr.bf16.mxu1 %v3329_v42 }
 0x1c9   :  { %2285 = vmatpush1.bf16.msra.mxu0 %v3372_v59 }
 0x1ca   :  { %2286 = vmatprep.subr.bf16.mxu0 %v3377_v61 }
 0x1cb   :  { %2244 = vmatpush1.bf16.msra.mxu1 %v3327_v44 }
 0x1cc   :  { %2245 = vmatprep.subr.bf16.mxu1 %v3332_v46 }
 0x1cd   :  { %2287 = vmatpush1.bf16.msra.mxu0 %v3375_v2 }
 0x1ce   :  { %2288 = vmatprep.subr.bf16.mxu0 %v3380_v4 }
 0x1cf   :  { %2246 = vmatpush1.bf16.msra.mxu1 %v3330_v48 }
 0x1d0   :  { %2247 = vmatprep.subr.bf16.mxu1 %v3335_v51 }
 0x1d1   :  { %2289 = vmatpush1.bf16.msra.mxu0 %v3378_v6 }
 0x1d2   :  { %2290 = vmatprep.subr.bf16.mxu0 %v3383_v8  ;;  %v600_v8 = vrot.slane %v583_v58, %v164_v21 }
 0x1d3   :  { %2248 = vmatpush2.bf16.msra.mxu1 %v3333_v53 }
 0x1d4   :  { %2249 = vmatprep.subr.bf16.mxu1 %v3338_v55 }
 0x1d5   :  { %2291 = vmatpush2.bf16.msra.mxu0 %v3381_v10 }
 0x1d6   :  { %2292 = vmatprep.subr.bf16.mxu0 %v3386_v12 }
 0x1d7   :  { %2250 = vmatpush2.bf16.msra.mxu1 %v3336_v57 }
 0x1d8   :  { %2251 = vmatprep.subr.bf16.mxu1 %v3341_v60 }
 0x1d9   :  { %2293 = vmatpush2.bf16.msra.mxu0 %v3384_v15 }
 0x1da   :  { %2294 = vmatprep.subr.bf16.mxu0 %v3389_v24 }
 0x1db   :  { %2252 = vmatpush2.bf16.msra.mxu1 %v3339_v0 }
 0x1dc   :  { %2253 = vmatprep.subr.bf16.mxu1 %v3344_v3 }
 0x1dd   :  { %2295 = vmatpush2.bf16.msra.mxu0 %v3387_v18 }
 0x1de   :  { %2296 = vmatprep.subr.bf16.mxu0 %v3392_v26 }
 0x1df   :  { %2254 = vmatpush2.bf16.msra.mxu1 %v3342_v5 }
 0x1e0   :  { %2255 = vmatprep.subr.bf16.mxu1 %v3347_v7 }
 0x1e1   :  { %2297 = vmatpush2.bf16.msra.mxu0 %v3390_v1 }
 0x1e2   :  { %2298 = vmatprep.subr.bf16.mxu0 %v3395_v28 }
 0x1e3   :  { %2256 = vmatpush2.bf16.msra.mxu1 %v3345_v9  ;;  %v596_v9 = vrot.slane %v583_v58, %v160_v23  ;;  %v3405_v58 = vld [vmem:[#allocation11 + $0x78] sm:$0xff]  }
 0x1e4   :  { %2257 = vmatprep.subr.bf16.mxu1 %v3350_v11 }
 0x1e5   :  { %2299 = vmatpush2.bf16.msra.mxu0 %v3393_v29 }
 0x1e6   :  { %2300 = vmatprep.subr.bf16.mxu0 %v3398_v30 }
 0x1e7   :  { %2258 = vmatpush2.bf16.msra.mxu1 %v3348_v14 }
 0x1e8   :  { %2259 = vmatprep.subr.bf16.mxu1 %v3353_v16 }
 0x1e9   :  { %2301 = vmatpush2.bf16.msra.mxu0 %v3396_v31 }
 0x1ea   :  { %2302 = vmatprep.subr.bf16.mxu0 %v3401_v32 }
 0x1eb   :  { %2260 = vmatpush2.bf16.msra.mxu1 %v3351_v17 }
 0x1ec   :  { %2261 = vmatprep.subr.bf16.mxu1 %v3356_v25 }
 0x1ed   :  { %2303 = vmatpush2.bf16.msra.mxu0 %v3399_v33 }
 0x1ee   :  { %2304 = vmatprep.subr.bf16.mxu0 %v3404_v34 }
 0x1ef   :  { %2262 = vmatpush2.bf16.msra.mxu1 %v3354_v27 }
 0x1f0   :  { %2933 = vmatprep.subr.bf16.mxu1 %v3405_v58 }
 0x1f1   :  { %2305 = vmatpush2.bf16.msra.mxu0 %v3402_v35 }
 0x1f2   :  { %v1599_v36 = vpop.f32.mrf.mxu1  ;;  %v1642_v37 = vpop.f32.mrf.mxu0 }
 0x1f3   :  { %v1600_v42 = vadd.f32 %v1599_v36, %v588_v39 }
 0x1f4   :  { %v1601_v62 = vpop.f32.mrf.mxu1  ;;  %v1644_v63 = vpop.f32.mrf.mxu0 }
 0x1f5   :  { %v1602_v49 = vadd.f32 %v1601_v62, %v592_v13  ;;  %v1643_v50 = vadd.f32 %v1642_v37, %v1600_v42  ;;  %v3413_v42 = vld [vmem:[#allocation11 + $0x58] sm:$0xff]  }
 0x1f6   :  { %v1603_v38 = vpop.f32.mrf.mxu1  ;;  %v1646_v43 = vpop.f32.mrf.mxu0 }
 0x1f7   :  { %v1604_v41 = vadd.f32 %v1603_v38, %v588_v39  ;;  %v1645_v47 = vadd.f32 %v1644_v63, %v1602_v49  ;;  %v3406_v38 = vld [vmem:[#allocation11 + $0x38] sm:$0xff]   ;;  %v3408_v39 = vld [vmem:[#allocation11 + $0x30] sm:$0xff]   ;;  %v3409_v63 = vld [vmem:[#allocation11 + $0x68] sm:$0xff]  }
 0x1f8   :  { %v1605_v40 = vpop.f32.mrf.mxu1  ;;  %v1648_v51 = vpop.f32.mrf.mxu0  ;;  %v3411_v49 = vld [vmem:[#allocation11 + $0x60] sm:$0xff]  }
 0x1f9   :  { %v1606_v45 = vadd.f32 %v1605_v40, %v592_v13  ;;  %v1647_v48 = vadd.f32 %v1646_v43, %v1604_v41  ;;  %v3407_v13 = vld [vmem:[#allocation11 + $0x70] sm:$0xff]   ;;  %v3410_v40 = vld [vmem:[#allocation11 + $0x28] sm:$0xff]   ;;  %v3412_v41 = vld [vmem:[#allocation11 + $0x20] sm:$0xff]  }
 0x1fa   :  { %v3414_v43 = vld [vmem:[#allocation11 + $0x18] sm:$0xff]  }
 0x1fb   :  { %v1649_v53 = vadd.f32 %v1648_v51, %v1606_v45  ;;  %v3416_v45 = vld [vmem:[#allocation11 + $0x10] sm:$0xff]   ;;  %v3421_v51 = vld [vmem:[#allocation13 + $0x38] sm:$0xff]  }
 0x232   :  { %v1685_v44 = vpop.f32.mrf.mxu1  ;;  %v1728_v5 = vpop.f32.mrf.mxu0 }
 0x233   :  { %v1686_v56 = vadd.f32 %v1685_v44, %v1643_v50  ;;  %v1729_v15 = vadd.f32 %v1728_v5, %v596_v9  ;;  %v3415_v44 = vld [vmem:[#allocation11 + $0x50] sm:$0xff]   ;;  %v3420_v50 = vld [vmem:[#allocation11] sm:$0xff]  }
 0x234   :  { %v1687_v46 = vpop.f32.mrf.mxu1  ;;  %v1730_v6 = vpop.f32.mrf.mxu0 }
 0x235   :  { %v1688_v54 = vadd.f32 %v1687_v46, %v1645_v47  ;;  %v1823_v2 = vmax.f32 %v1686_v56, 0.0  ;;  %v1731_v12 = vadd.f32 %v1730_v6, %v600_v8  ;;  %v3417_v46 = vld [vmem:[#allocation11 + $0x48] sm:$0xff]  }
 0x236   :  { %v1689_v52 = vpop.f32.mrf.mxu1  ;;  %v1732_v7 = vpop.f32.mrf.mxu0  ;;  %v3418_v47 = vld [vmem:[#allocation11 + $0x8] sm:$0xff]  }
 0x237   :  { %v1690_v55 = vadd.f32 %v1689_v52, %v1647_v48  ;;  %v1824_v61 = vmax.f32 %v1688_v54, 0.0  ;;  %v1733_v24 = vadd.f32 %v1732_v7, %v596_v9  ;;  %v3419_v48 = vld [vmem:[#allocation11 + $0x40] sm:$0xff]   ;;  %v3615_v52 = vmov 0.0   ;;  %v3423_v54 = vld [vmem:[#allocation13 + $0x28] sm:$0xff]  }
 0x238   :  { %v1691_v57 = vpop.f32.mrf.mxu1  ;;  %v1734_v10 = vpop.f32.mrf.mxu0  ;;  %2964 = vmatprep.subr.bf16.mxu0 %v3615_v52 }
 0x239   :  { %v1692_v59 = vadd.f32 %v1691_v57, %v1649_v53  ;;  %v1827_v60 = vmax.f32 %v1690_v55, 0.0  ;;  %v1735_v27 = vadd.f32 %v1734_v10, %v600_v8  ;;  %v3422_v53 = vld [vmem:[#allocation13 + $0x30] sm:$0xff]   ;;  %v3424_v55 = vld [vmem:[#allocation13 + $0x20] sm:$0xff]  }
 0x23b   :  { %v1828_v0 = vmax.f32 %v1692_v59, 0.0  ;;  %v1831_v4 = vpack.c.bf16 %v1827_v60, %v1823_v2  ;;  %v1899_v59 = vld [vmem:[%s3798_s6] sm:$0x3] }
 0x23d   :  { %v1832_v3 = vpack.c.bf16 %v1828_v0, %v1824_v61  ;;  %v1908_v61 = vrot.slane %v1899_v59, %v3717_v20  ;;  %v1904_v0 = vrot.slane %v1899_v59, %v3721_v22  ;;  %v3425_v22 = vld [vmem:[#allocation13 + $0x18] sm:$0xff]  }
 0x23f   :  { %2263 = vmatprep.mubr.bf16.mxu1 %v1832_v3 }
 0x240   :  { %2264 = vmatmul.mubr.bf16.vlgmr.msra.gmra.mxu1 %v1831_v4 }
 0x241   :  { %2934 = vmatpush3.bf16.msra.mxu1 %v3406_v38 }
 0x242   :  { %2935 = vmatprep.subr.bf16.mxu1 %v3407_v13 }
 0x245   :  { %2936 = vmatpush3.bf16.msra.mxu1 %v3408_v39 }
 0x246   :  { %2937 = vmatprep.subr.bf16.mxu1 %v3409_v63 }
 0x249   :  { %2938 = vmatpush3.bf16.msra.mxu1 %v3410_v40 }
 0x24a   :  { %2939 = vmatprep.subr.bf16.mxu1 %v3411_v49 }
 0x24d   :  { %2940 = vmatpush3.bf16.msra.mxu1 %v3412_v41 }
 0x24e   :  { %2941 = vmatprep.subr.bf16.mxu1 %v3413_v42 }
 0x251   :  { %2942 = vmatpush3.bf16.msra.mxu1 %v3414_v43 }
 0x252   :  { %2943 = vmatprep.subr.bf16.mxu1 %v3415_v44 }
 0x255   :  { %2944 = vmatpush3.bf16.msra.mxu1 %v3416_v45 }
 0x256   :  { %2945 = vmatprep.subr.bf16.mxu1 %v3417_v46 }
 0x259   :  { %2946 = vmatpush3.bf16.msra.mxu1 %v3418_v47 }
 0x25a   :  { %2947 = vmatprep.subr.bf16.mxu1 %v3419_v48 }
 0x25d   :  { %2948 = vmatpush3.bf16.msra.mxu1 %v3420_v50 }
 0x272   :  { %v1771_v11 = vpop.f32.mrf.mxu1 }
 0x273   :  { %v1814_v14 = vpop.f32.mrf.mxu0  ;;  %v1772_v25 = vadd.f32 %v1771_v11, %v1729_v15 }
 0x274   :  { %v1773_v16 = vpop.f32.mrf.mxu1 }
 0x275   :  { %v1774_v17 = vadd.f32 %v1773_v16, %v1731_v12  ;;  %v1816_v18 = vpop.f32.mrf.mxu0  ;;  %v1815_v19 = vadd.f32 %v1814_v14, %v1772_v25 }
 0x276   :  { %v1775_v26 = vpop.f32.mrf.mxu1 }
 0x277   :  { %v1776_v1 = vadd.f32 %v1775_v26, %v1733_v24  ;;  %v1818_v28 = vpop.f32.mrf.mxu0  ;;  %v1817_v30 = vadd.f32 %v1816_v18, %v1774_v17  ;;  %v1825_v36 = vmax.f32 %v1815_v19, 0.0  ;;  %v3426_v26 = vld [vmem:[#allocation13 + $0x10] sm:$0xff]  }
 0x278   :  { %v1777_v29 = vpop.f32.mrf.mxu1 }
 0x279   :  { %v1819_v21 = vadd.f32 %v1818_v28, %v1776_v1  ;;  %v1778_v31 = vadd.f32 %v1777_v29, %v1735_v27  ;;  %v1820_v23 = vpop.f32.mrf.mxu0  ;;  %v1826_v34 = vmax.f32 %v1817_v30, 0.0  ;;  %v3427_v27 = vld [vmem:[#allocation13 + $0x8] sm:$0xff]   ;;  %v3428_v1 = vld [vmem:[#allocation13] sm:$0xff]  }
 0x27b   :  { %v1821_v32 = vadd.f32 %v1820_v23, %v1778_v31  ;;  %v1829_v33 = vmax.f32 %v1819_v21, 0.0  ;;  %v2907_v21 = vld [vmem:[%s3800_s8] ss:$0 sm:$0xff]  ;;  %s3569_s8 = scalar_lea.vmem %s2622_s22, 256 }
 0x27c   :  { %p3570_p7 = scmp.ne.s32.totalorder %s2622_s22, %s3569_s8  ;;  %p3575_p9 = scmp.lt.s32.totalorder %s3569_s8, %s3569_s8 }
 0x27d   :  { %v1830_v35 = vmax.f32 %v1821_v32, 0.0  ;;  %v1833_v37 = vpack.c.bf16 %v1829_v33, %v1825_v36 }
 0x27e   :  { %p3576_p10 = por %p3575_p9, %p3574_p8 }
 0x27f   :  { %v1834_v62 = vpack.c.bf16 %v1830_v35, %v1826_v34 }
 0x280   :  { %p3577_p11 = pnand %p3576_p10, %p3570_p7 }
 0x281   :  { %2306 = vmatprep.mubr.bf16.mxu0 %v1834_v62  ;;  %v2924_v62 = vld [vmem:[%s3802_s10] ss:$0 sm:$0xff] }
 0x282   :  { %2307 = vmatmul.mubr.bf16.vlgmr.msra.gmra.mxu0 %v1833_v37 }
 0x283   :  { %2965 = vmatpush3.bf16.msra.mxu0 %v3421_v51  ;;  %2980 = vmatprep.mubr.msk.bf16.mxu0 %vm3616_vm1, %v3615_v52 }
 0x284   :  { %2966 = vmatprep.subr.bf16.mxu0 %v3615_v52 }
 0x287   :  { %2967 = vmatpush3.bf16.msra.mxu0 %v3422_v53 }
 0x288   :  { %2968 = vmatprep.subr.bf16.mxu0 %v3615_v52 }
 0x28b   :  { %2969 = vmatpush3.bf16.msra.mxu0 %v3423_v54 }
 0x28c   :  { %2970 = vmatprep.subr.bf16.mxu0 %v3615_v52 }
 0x28f   :  { %2971 = vmatpush3.bf16.msra.mxu0 %v3424_v55 }
 0x290   :  { %2972 = vmatprep.subr.bf16.mxu0 %v3615_v52 }
 0x293   :  { %2973 = vmatpush3.bf16.msra.mxu0 %v3425_v22 }
 0x294   :  { %2974 = vmatprep.subr.bf16.mxu0 %v3615_v52 }
 0x297   :  { %2975 = vmatpush3.bf16.msra.mxu0 %v3426_v26 }
 0x298   :  { %2976 = vmatprep.subr.bf16.mxu0 %v3615_v52 }
 0x29b   :  { %2977 = vmatpush3.bf16.msra.mxu0 %v3427_v27 }
 0x29c   :  { %2978 = vmatprep.subr.bf16.mxu0 %v3615_v52 }
 0x29f   :  { %2979 = vmatpush3.bf16.msra.mxu0 %v3428_v1 }
 0x300   :  { %v2265_v56 = vpop.f32.mrf.mxu1 }
 0x301   :  { %v2266_v7 = vadd.f32 %v2265_v56, %v1904_v0 }
 0x302   :  { %v2267_v57 = vpop.f32.mrf.mxu1 }
 0x303   :  { %v2268_v5 = vadd.f32 %v2267_v57, %v1908_v61 }
 0x304   :  { %v2269_v60 = vpop.f32.mrf.mxu1 }
 0x305   :  { %v2270_v6 = vadd.f32 %v2269_v60, %v1904_v0 }
 0x306   :  { %v2271_v3 = vpop.f32.mrf.mxu1 }
 0x307   :  { %v2272_v9 = vadd.f32 %v2271_v3, %v1908_v61 }
 0x342   :  { %v2308_v2 = vpop.f32.mrf.mxu0 }
 0x343   :  { %v2309_v12 = vadd.f32 %v2308_v2, %v2266_v7 }
 0x344   :  { %v2310_v4 = vpop.f32.mrf.mxu0 }
 0x345   :  { %v2311_v10 = vadd.f32 %v2310_v4, %v2268_v5  ;;  %v2317_v18 = vmax.f32 %v2309_v12, 0.0 }
 0x346   :  { %v2312_v8 = vpop.f32.mrf.mxu0 }
 0x347   :  { %v2313_v11 = vadd.f32 %v2312_v8, %v2270_v6  ;;  %v2318_v24 = vmax.f32 %v2311_v10, 0.0 }
 0x348   :  { %v2314_v14 = vpop.f32.mrf.mxu0 }
 0x349   :  { %v2315_v15 = vadd.f32 %v2314_v14, %v2272_v9  ;;  %v2319_v16 = vmax.f32 %v2313_v11, 0.0 }
 0x34b   :  { %v2320_v17 = vmax.f32 %v2315_v15, 0.0  ;;  %v2321_v25 = vpack.c.bf16 %v2319_v16, %v2317_v18 }
 0x34d   :  { %v2322_v20 = vpack.c.bf16 %v2320_v17, %v2318_v24 }
 0x34f   :  { %2490 = vmatprep.mubr.bf16.mxu1 %v2322_v20 }
 0x350   :  { %2491 = vmatmul.mubr.bf16.vlgmr.msra.gmra.mxu1 %v2321_v25 }
 0x410   :  { %v2949_v28 = vpop.f32.mrf.mxu1 }
 0x412   :  { %v2950_v29 = vpop.f32.mrf.mxu1 }
 0x413   :  { %v2951_v30 = vadd.f32 %v2950_v29, %v2949_v28 }
 0x414   :  { %v2952_v31 = vpop.f32.mrf.mxu1 }
 0x415   :  { %v2493_v23 = vadd.f32 %v2951_v30, %v2907_v21 }
 0x416   :  { %v2953_v19 = vpop.f32.mrf.mxu1 }
 0x417   :  { %v2954_v32 = vadd.f32 %v2953_v19, %v2952_v31  ;;  %v2499_v34 = vmax.f32 %v2493_v23, 0.0 }
 0x419   :  { %v2496_v33 = vadd.f32 %v2954_v32, %v2907_v21 }
 0x41b   :  { %v2500_v35 = vmax.f32 %v2496_v33, 0.0 }
 0x41d   :  { %v2501_v36 = vpack.c.bf16 %v2500_v35, %v2499_v34 }
 0x41f   :  { %2981 = vmatmul.mubr.bf16.vlgmr.msra.gmra.mxu0 %v2501_v36 }
 0x4df   :  { %v2607_v37 = vpop.f32.mrf.mxu0 }
 0x4e0   :  { %v2608_v58 = vadd.f32 %v2924_v62, %v2607_v37 }
 0x4e1   :  { %v2982_v38 = vpop.f32.mrf.mxu0 }
 0x4e2   :  { %2614 = vst [vmem:[#allocation14] sm:$0xff] %v2608_v58 }
 0x4e3   :  { %v2610_v13 = vpop.f32.mrf.mxu0 }
 0x4e4   :  { %v2611_v39 = vadd.f32 %v2924_v62, %v2610_v13 }
 0x4e5   :  { %v2983_v63 = vpop.f32.mrf.mxu0 }
 0x4e6   :  { %2615 = vst [vmem:[#allocation14 + $0x8] sm:$0xff] %v2611_v39 }
 0x4e7   :  { %3580 = shalt.err (!%p3577_p11)
}
 0x4e8   :  { %2627 = dma.vmem_to_hbm [thread:$0]  %s2622_s22, 256, %s3803_s11, [#allocation4], %s3609_s20, %s3609_s20, %s3610_s21  }
 0x4e9   :  { %3597 = dma.done.wait [#allocation4], 256  }
 0x4ea   :  { %3598 = vsyncadd [#allocation4], 4294967040 }
 0x4eb   :  { %2631 = vsyncpa [#allocation3], 1 }
 0x4ec   :  { %2632 = vsyncpa [#allocation6], 1 }
 0x4ed   :  { %2633 = vsyncpa [#allocation9], 1 }
 0x4ee   :  { %2634 = vsyncpa [#allocation12], 1 }
 0x4ef   :  { %2635 = vsyncpa [#allocation4], 1 }

// kernel: tpu_custom_call.1
= control target key start
LH: loop header
LB: loop body
LE: loop exit
PB: predicated region body
PF: predicated region fallthrough
CT: control target
= control target key end

     0   :  { %16 = vsyncpa [#allocation3], 0  ;;  %s3792_s0 = inlined_call_operand.hbm [shape: f32[16,32], index: 0, kind: input, shape index: {}]   ;;  %s3793_s1 = inlined_call_operand.hbm [shape: bf16[32,768], index: 1, kind: input, shape index: {}]   ;;  %s3794_s2 = inlined_call_operand.hbm [shape: f32[1,768], index: 2, kind: input, shape index: {}]   ;;  %s3795_s3 = inlined_call_operand.hbm [shape: bf16[768,512], index: 3, kind: input, shape index: {}]   ;;  %s3796_s4 = inlined_call_operand.vmem [shape: f32[1,512], index: 4, kind: input, shape index: {}]   ;;  %s3797_s5 = inlined_call_operand.hbm [shape: bf16[512,256], index: 5, kind: input, shape index: {}]   ;;  %s3798_s6 = inlined_call_operand.vmem [shape: f32[1,256], index: 6, kind: input, shape index: {}]   ;;  %s3799_s7 = inlined_call_operand.hbm [shape: bf16[256,128], index: 7, kind: input, shape index: {}]   ;;  %s3800_s8 = inlined_call_operand.vmem [shape: f32[1,128], index: 8, kind: input, shape index: {}]   ;;  %s3801_s9 = inlined_call_operand.hbm [shape: bf16[128,128], index: 9, kind: input, shape index: {}]   ;;  %s3802_s10 = inlined_call_operand.vmem [shape: f32[1,128], index: 10, kind: input, shape index: {}]   ;;  %s3803_s11 = inlined_call_operand.hbm [shape: f32[16,128], index: 11, kind: output, shape index: {}]  }
   0x1   :  { %17 = vsyncpa [#allocation6], 0 }
   0x2   :  { %18 = vsyncpa [#allocation9], 0 }
   0x3   :  { %19 = vsyncpa [#allocation12], 0 }
   0x4   :  { %20 = vsyncpa [#allocation4], 0  ;;  %s3599_s17 = smov [#allocation5]  }
   0x5   :  { %s38_s18 = sshll.u32 %s3599_s17, 4  ;;  %s39_s18 = int_to_ptr.vmem [resolvable:$true] %s38_s18 }
   0x6   :  { %s3437_s19 = scalar_lea.vmem %s39_s18, 1536  ;;  %p3442_p1 = scmp.lt.s32.totalorder %s39_s18, %s39_s18 }
   0x7   :  { %p3438_p0 = scmp.ne.s32.totalorder %s39_s18, %s3437_s19  ;;  %p3443_p2 = scmp.lt.s32.totalorder %s3437_s19, %s3437_s19 }
   0x9   :  { %p3444_p3 = por %p3443_p2, %p3442_p1 }
   0xb   :  { %p3445_p4 = pnand %p3444_p3, %p3438_p0 }
   0xd   :  { %3448 = shalt.err (!%p3445_p4)
}
   0xe   :  { %s3600_s20 = smov 384   ;;  %s3601_s21 = smov 24  }
   0xf   :  { %44 = dma.hbm_to_vmem [thread:$0]  %s3793_s1, 1536, %s39_s18, [#allocation6], %s3600_s20, %s3600_s20, %s3601_s21  }
  0x10   :  { %s3602_s24 = smov [#allocation8]  }
  0x11   :  { %s60_s25 = sshll.u32 %s3602_s24, 4  ;;  %s61_s25 = int_to_ptr.vmem [resolvable:$true] %s60_s25 }
  0x12   :  { %s3457_s26 = scalar_lea.vmem %s61_s25, 24576  ;;  %p3462_p6 = scmp.lt.s32.totalorder %s61_s25, %s61_s25 }
  0x13   :  { %p3458_p5 = scmp.ne.s32.totalorder %s61_s25, %s3457_s26  ;;  %p3463_p7 = scmp.lt.s32.totalorder %s3457_s26, %s3457_s26 }
  0x15   :  { %p3464_p8 = por %p3463_p7, %p3462_p6 }
  0x17   :  { %p3465_p9 = pnand %p3464_p8, %p3458_p5 }
  0x19   :  { %3468 = shalt.err (!%p3465_p9)
}
  0x1a   :  { %s3603_s27 = smov 256   ;;  %s3604_s28 = smov 16  }
  0x1b   :  { %66 = dma.hbm_to_vmem [thread:$0]  %s3795_s3, 24576, %s61_s25, [#allocation9], %s3603_s27, %s3603_s27, %s3604_s28  }
  0x1c   :  { %s3605_s12 = smov [#allocation11]  }
  0x1d   :  { %s88_s13 = sshll.u32 %s3605_s12, 4  ;;  %s89_s13 = int_to_ptr.vmem [resolvable:$true] %s88_s13 }
  0x1e   :  { %s3477_s1 = scalar_lea.vmem %s89_s13, 2048  ;;  %p3482_p11 = scmp.lt.s32.totalorder %s89_s13, %s89_s13 }
  0x1f   :  { %p3478_p10 = scmp.ne.s32.totalorder %s89_s13, %s3477_s1  ;;  %p3483_p12 = scmp.lt.s32.totalorder %s3477_s1, %s3477_s1 }
  0x21   :  { %p3484_p13 = por %p3483_p12, %p3482_p11 }
  0x23   :  { %p3485_p0 = pnand %p3484_p13, %p3478_p10 }
  0x25   :  { %3488 = shalt.err (!%p3485_p0)
}
  0x26   :  { %s3606_s14 = smov 64   ;;  %s3607_s15 = smov 4  }
  0x27   :  { %94 = dma.hbm_to_vmem [thread:$0]  %s3799_s7, 2048, %s89_s13, [#allocation12], %s3606_s14, %s3606_s14, %s3607_s15  }
  0x28   :  { %s3608_s3 = smov [#allocation2]  }
  0x29   :  { %s26_s18 = sshll.u32 %s3608_s3, 4  ;;  %s27_s18 = int_to_ptr.vmem [resolvable:$true] %s26_s18 }
  0x2a   :  { %s3497_s19 = scalar_lea.vmem %s27_s18, 256  ;;  %p3502_p2 = scmp.lt.s32.totalorder %s27_s18, %s27_s18 }
  0x2b   :  { %p3498_p1 = scmp.ne.s32.totalorder %s27_s18, %s3497_s19  ;;  %p3503_p3 = scmp.lt.s32.totalorder %s3497_s19, %s3497_s19 }
  0x2d   :  { %p3504_p4 = por %p3503_p3, %p3502_p2 }
  0x2f   :  { %p3505_p5 = pnand %p3504_p4, %p3498_p1 }
  0x31   :  { %3508 = shalt.err (!%p3505_p5)
}
  0x32   :  { %s3609_s20 = smov 128   ;;  %s3610_s21 = smov 8  }
  0x33   :  { %32 = dma.hbm_to_vmem [thread:$0]  %s3792_s0, 256, %s27_s18, [#allocation3], %s3609_s20, %s3609_s20, %s3610_s21  }
  0x34   :  { %s3611_s7 = smov [#allocation7]   ;;  %s3612_s25 = smov [#allocation10]  }
  0x35   :  { %s51_s24 = sshll.u32 %s3611_s7, 4  ;;  %s74_s26 = sshll.u32 %s3612_s25, 4  ;;  %s52_s24 = int_to_ptr.vmem [resolvable:$true] %s51_s24  ;;  %s75_s26 = int_to_ptr.vmem [resolvable:$true] %s74_s26 }
  0x36   :  { %s3517_s27 = scalar_lea.vmem %s52_s24, 96  ;;  %p3522_p7 = scmp.lt.s32.totalorder %s52_s24, %s52_s24 }
  0x37   :  { %p3518_p6 = scmp.ne.s32.totalorder %s52_s24, %s3517_s27  ;;  %p3523_p8 = scmp.lt.s32.totalorder %s3517_s27, %s3517_s27 }
  0x39   :  { %p3524_p9 = por %p3523_p8, %p3522_p7 }
  0x3b   :  { %p3525_p10 = pnand %p3524_p9, %p3518_p6 }
  0x3d   :  { %3528 = shalt.err (!%p3525_p10)
}
  0x3e   :  { %54 = dma.hbm_to_vmem [thread:$0]  %s3794_s2, 96, %s52_s24, [#allocation6]  }
  0x3f   :  { %s3537_s30 = scalar_lea.vmem %s75_s26, 8192  ;;  %p3542_p12 = scmp.lt.s32.totalorder %s75_s26, %s75_s26 }
  0x40   :  { %p3538_p11 = scmp.ne.s32.totalorder %s75_s26, %s3537_s30  ;;  %p3543_p13 = scmp.lt.s32.totalorder %s3537_s30, %s3537_s30 }
  0x42   :  { %p3544_p0 = por %p3543_p13, %p3542_p12 }
  0x44   :  { %p3545_p1 = pnand %p3544_p0, %p3538_p11 }
  0x46   :  { %3548 = shalt.err (!%p3545_p1)
}
  0x47   :  { %80 = dma.hbm_to_vmem [thread:$0]  %s3797_s5, 8192, %s75_s26, [#allocation9], %s3609_s20, %s3609_s20, %s3610_s21  }
  0x48   :  { %s3613_s13 = smov [#allocation13]  }
  0x49   :  { %s102_s1 = sshll.u32 %s3613_s13, 4  ;;  %s103_s1 = int_to_ptr.vmem [resolvable:$true] %s102_s1 }
  0x4a   :  { %s3557_s16 = scalar_lea.vmem %s103_s1, 1024  ;;  %p3562_p3 = scmp.lt.s32.totalorder %s103_s1, %s103_s1 }
  0x4b   :  { %p3558_p2 = scmp.ne.s32.totalorder %s103_s1, %s3557_s16  ;;  %p3563_p4 = scmp.lt.s32.totalorder %s3557_s16, %s3557_s16 }
  0x4d   :  { %p3564_p5 = por %p3563_p4, %p3562_p3 }
  0x4f   :  { %p3565_p6 = pnand %p3564_p5, %p3558_p2 }
  0x51   :  { %3568 = shalt.err (!%p3565_p6)
}
  0x52   :  { %108 = dma.hbm_to_vmem [thread:$0]  %s3801_s9, 1024, %s103_s1, [#allocation12], %s3606_s14, %s3606_s14, %s3607_s15  }
  0x53   :  { %3589 = dma.done.wait [#allocation3], 256  }
  0x54   :  { %3590 = vsyncadd [#allocation3], 4294967040 }
  0x55   :  { %3591 = dma.done.wait [#allocation6], 1632  }
  0x56   :  { %3592 = vsyncadd [#allocation6], 4294965664 }
  0x57   :  { %3593 = dma.done.wait [#allocation9], 32768  }
  0x58   :  { %3594 = vsyncadd [#allocation9], 4294934528 }
  0x59   :  { %3595 = dma.done.wait [#allocation12], 3072  }
  0x5a   :  { %3596 = vsyncadd [#allocation12], 4294964224  ;;  %v3614_v0 = vmov 0   ;;  %v3003_v1 = vld [vmem:[#allocation5 + $0x34] ss:$24 sps:$4 sm:$0xff]   ;;  %v134_v10 = vld [vmem:[#allocation2 + $0x8] sm:$0xff] }
  0x5b   :  { %276 = vmatprep.mubr.bf16.mxu0 %v3614_v0  ;;  %319 = vmatprep.mubr.bf16.mxu1 %v3614_v0  ;;  %v3005_v2 = vld [vmem:[#allocation5 + $0x3c] ss:$24 sps:$4 sm:$0xff]   ;;  %v3007_v3 = vld [vmem:[#allocation5 + $0x30] ss:$24 sps:$4 sm:$0xff]   ;;  %v3011_v6 = vld [vmem:[#allocation5 + $0xc] ss:$24 sps:$4 sm:$0xff]  }
  0x5c   :  { %256 = vmatprep.subr.bf16.mxu0 %v3003_v1  ;;  %v3008_v4 = vld [vmem:[#allocation5 + $0x38] ss:$24 sps:$4 sm:$0xff]   ;;  %299 = vmatprep.subr.bf16.mxu1 %v3005_v2  ;;  %v3009_v5 = vld [vmem:[#allocation5 + $0x4] ss:$24 sps:$4 sm:$0xff]   ;;  %v3014_v8 = vld [vmem:[#allocation5 + $0x8] ss:$24 sps:$4 sm:$0xff]  }
  0x5d   :  { %257 = vmatpush1.bf16.msra.mxu0 %v3007_v3  ;;  %300 = vmatpush1.bf16.msra.mxu1 %v3008_v4  ;;  %v3013_v7 = vld [vmem:[#allocation5] ss:$24 sps:$4 sm:$0xff]   ;;  %v133_v9 = vld [vmem:[#allocation2] sm:$0xff]  ;;  %v3017_v12 = vld [vmem:[#allocation5 + $0x44] ss:$24 sps:$4 sm:$0xff]   ;;  %vm240_vm0 = vcmask 261120  }
  0x5e   :  { %258 = vmatprep.subr.bf16.mxu0 %v3009_v5  ;;  %301 = vmatprep.subr.bf16.mxu1 %v3011_v6  ;;  %v135_v11 = vpack.c.bf16 %v134_v10, %v133_v9  ;;  %v3015_v13 = vld [vmem:[#allocation5 + $0x40] ss:$24 sps:$4 sm:$0xff]   ;;  %v3020_v14 = vld [vmem:[#allocation5 + $0x14] ss:$24 sps:$4 sm:$0xff]   ;;  %v3018_v17 = vld [vmem:[#allocation5 + $0x10] ss:$24 sps:$4 sm:$0xff]  }
  0x5f   :  { %v3023_v15 = vld [vmem:[#allocation8 + $0xe4] ss:$16 sps:$4 sm:$0xff]   ;;  %v3021_v16 = vld [vmem:[#allocation8 + $0xe0] ss:$16 sps:$4 sm:$0xff]   ;;  %vm3616_vm1 = vmmov 0   ;;  %s3617_s19 = smov [#allocation14]  }
  0x60   :  { %v3029_v18 = vld [vmem:[#allocation8 + $0xc4] ss:$16 sps:$4 sm:$0xff]   ;;  %v3027_v20 = vld [vmem:[#allocation8 + $0xc0] ss:$16 sps:$4 sm:$0xff]   ;;  %s2621_s22 = sshll.u32 %s3617_s19, 4  ;;  %s2622_s22 = int_to_ptr.vmem [resolvable:$true] %s2621_s22 }
  0x61   :  { %259 = vmatpush1.bf16.msra.mxu0 %v3013_v7  ;;  %302 = vmatpush1.bf16.msra.mxu1 %v3014_v8  ;;  %v3026_v19 = vld [vmem:[#allocation8 + $0x2e4] ss:$16 sps:$4 sm:$0xff]   ;;  %v3024_v22 = vld [vmem:[#allocation8 + $0x2e0] ss:$16 sps:$4 sm:$0xff]   ;;  %p3574_p8 = scmp.lt.s32.totalorder %s2622_s22, %s2622_s22 }
  0x62   :  { %342 = vmatprep.subr.bf16.mxu0 %v3017_v12  ;;  %1565 = vmatprep.subr.bf16.mxu1 %v3023_v15  ;;  %v3035_v21 = vld [vmem:[#allocation8 + $0xa4] ss:$16 sps:$4 sm:$0xff]   ;;  %v3033_v24 = vld [vmem:[#allocation8 + $0xa0] ss:$16 sps:$4 sm:$0xff]  }
  0x63   :  { %v3032_v23 = vld [vmem:[#allocation8 + $0x2c4] ss:$16 sps:$4 sm:$0xff]   ;;  %v3030_v26 = vld [vmem:[#allocation8 + $0x2c0] ss:$16 sps:$4 sm:$0xff]  }
  0x64   :  { %2648 = vmatmul.mubr.msk.bf16.vlgmr.msra.gmra.mxu0 %vm240_vm0, %v135_v11  ;;  %2649 = vmatmul.mubr.msk.bf16.vlgmr.msra.gmra.mxu1 %vm240_vm0, %v135_v11  ;;  %v3041_v25 = vld [vmem:[#allocation8 + $0x84] ss:$16 sps:$4 sm:$0xff]   ;;  %v3039_v28 = vld [vmem:[#allocation8 + $0x80] ss:$16 sps:$4 sm:$0xff]  }
  0x65   :  { %343 = vmatpush1.bf16.msra.mxu0 %v3015_v13  ;;  %362 = vmatprep.mubr.bf16.mxu0 %v3614_v0  ;;  %v3038_v27 = vld [vmem:[#allocation8 + $0x2a4] ss:$16 sps:$4 sm:$0xff]   ;;  %v3036_v30 = vld [vmem:[#allocation8 + $0x2a0] ss:$16 sps:$4 sm:$0xff]  }
  0x66   :  { %344 = vmatprep.subr.bf16.mxu0 %v3020_v14  ;;  %1566 = vmatpush1.bf16.msra.mxu1 %v3021_v16  ;;  %v3047_v29 = vld [vmem:[#allocation8 + $0x64] ss:$16 sps:$4 sm:$0xff]   ;;  %v3045_v32 = vld [vmem:[#allocation8 + $0x60] ss:$16 sps:$4 sm:$0xff]  }
  0x67   :  { %1567 = vmatprep.subr.bf16.mxu1 %v3029_v18  ;;  %v3044_v31 = vld [vmem:[#allocation8 + $0x284] ss:$16 sps:$4 sm:$0xff]   ;;  %v3042_v34 = vld [vmem:[#allocation8 + $0x280] ss:$16 sps:$4 sm:$0xff]   ;;  %v150_v18 = vlaneseq }
  0x68   :  { %v3053_v33 = vld [vmem:[#allocation8 + $0x44] ss:$16 sps:$4 sm:$0xff]   ;;  %v3051_v36 = vld [vmem:[#allocation8 + $0x40] ss:$16 sps:$4 sm:$0xff]  }
  0x69   :  { %345 = vmatpush1.bf16.msra.mxu0 %v3018_v17  ;;  %v3050_v35 = vld [vmem:[#allocation8 + $0x264] ss:$16 sps:$4 sm:$0xff]   ;;  %v3048_v38 = vld [vmem:[#allocation8 + $0x260] ss:$16 sps:$4 sm:$0xff]   ;;  %v3122_v17 = vld [vmem:[#allocation8 + $0xec] ss:$16 sps:$4 sm:$0xff]  }
  0x6a   :  { %1608 = vmatprep.subr.bf16.mxu0 %v3026_v19  ;;  %1568 = vmatpush1.bf16.msra.mxu1 %v3027_v20  ;;  %v3059_v37 = vld [vmem:[#allocation8 + $0x24] ss:$16 sps:$4 sm:$0xff]   ;;  %v3057_v40 = vld [vmem:[#allocation8 + $0x20] ss:$16 sps:$4 sm:$0xff]   ;;  %v3714_v19 = vshrl.u32 %v150_v18, 7 }
  0x6b   :  { %1569 = vmatprep.subr.bf16.mxu1 %v3035_v21  ;;  %v3056_v39 = vld [vmem:[#allocation8 + $0x244] ss:$16 sps:$4 sm:$0xff]   ;;  %v3054_v42 = vld [vmem:[#allocation8 + $0x240] ss:$16 sps:$4 sm:$0xff]  }
  0x6c   :  { %2650 = vmatmul.mubr.msk.bf16.vlgmr.msra.gmra.mxu0 %vm240_vm0, %v135_v11  ;;  %v3065_v41 = vld [vmem:[#allocation8 + $0x4] ss:$16 sps:$4 sm:$0xff]   ;;  %v3063_v44 = vld [vmem:[#allocation8] ss:$16 sps:$4 sm:$0xff]   ;;  %v3717_v20 = vsub.s32 1, %v3714_v19  ;;  %v164_v21 = vsub.s32 3, %v3714_v19 }
  0x6d   :  { %1609 = vmatpush1.bf16.msra.mxu0 %v3024_v22  ;;  %v3062_v43 = vld [vmem:[#allocation8 + $0x224] ss:$16 sps:$4 sm:$0xff]   ;;  %v3060_v46 = vld [vmem:[#allocation8 + $0x220] ss:$16 sps:$4 sm:$0xff]   ;;  %v3721_v22 = vsub.s32 0, %v3714_v19 }
  0x6e   :  { %1610 = vmatprep.subr.bf16.mxu0 %v3032_v23  ;;  %1570 = vmatpush1.bf16.msra.mxu1 %v3033_v24  ;;  %v3071_v45 = vld [vmem:[#allocation8 + $0x1e4] ss:$16 sps:$4 sm:$0xff]   ;;  %v3066_v48 = vld [vmem:[#allocation8 + $0x200] ss:$16 sps:$4 sm:$0xff]   ;;  %v160_v23 = vsub.s32 2, %v3714_v19 }
  0x6f   :  { %1571 = vmatprep.subr.bf16.mxu1 %v3041_v25  ;;  %v3068_v47 = vld [vmem:[#allocation8 + $0x204] ss:$16 sps:$4 sm:$0xff]   ;;  %v3069_v49 = vld [vmem:[#allocation8 + $0x1e0] ss:$16 sps:$4 sm:$0xff]   ;;  %v3724_v24 = vld [vmem:[#allocation7] sm:$0x3f] }
  0x70   :  { %v3074_v50 = vld [vmem:[#allocation8 + $0x3e4] ss:$16 sps:$4 sm:$0xff]   ;;  %v3075_v52 = vld [vmem:[#allocation8 + $0x1c0] ss:$16 sps:$4 sm:$0xff]  }
  0x71   :  { %1611 = vmatpush1.bf16.msra.mxu0 %v3030_v26  ;;  %v3077_v51 = vld [vmem:[#allocation8 + $0x1c4] ss:$16 sps:$4 sm:$0xff]   ;;  %v3072_v54 = vld [vmem:[#allocation8 + $0x3e0] ss:$16 sps:$4 sm:$0xff]  }
  0x72   :  { %1612 = vmatprep.subr.bf16.mxu0 %v3038_v27  ;;  %1572 = vmatpush1.bf16.msra.mxu1 %v3039_v28  ;;  %v3083_v53 = vld [vmem:[#allocation8 + $0x1a4] ss:$16 sps:$4 sm:$0xff]   ;;  %v3081_v56 = vld [vmem:[#allocation8 + $0x1a0] ss:$16 sps:$4 sm:$0xff]   ;;  %v157_v27 = vrot.slane %v3724_v24, %v3717_v20  ;;  %v165_v28 = vrot.slane %v3724_v24, %v164_v21 }
  0x73   :  { %1573 = vmatprep.subr.bf16.mxu1 %v3047_v29  ;;  %v3080_v55 = vld [vmem:[#allocation8 + $0x3c4] ss:$16 sps:$4 sm:$0xff]   ;;  %v3078_v58 = vld [vmem:[#allocation8 + $0x3c0] ss:$16 sps:$4 sm:$0xff]   ;;  %v153_v29 = vrot.slane %v3724_v24, %v3721_v22 }
  0x74   :  { %v3089_v57 = vld [vmem:[#allocation8 + $0x184] ss:$16 sps:$4 sm:$0xff]   ;;  %v3087_v60 = vld [vmem:[#allocation8 + $0x180] ss:$16 sps:$4 sm:$0xff]  }
  0x75   :  { %1613 = vmatpush1.bf16.msra.mxu0 %v3036_v30  ;;  %v3086_v59 = vld [vmem:[#allocation8 + $0x3a4] ss:$16 sps:$4 sm:$0xff]   ;;  %v3084_v62 = vld [vmem:[#allocation8 + $0x3a0] ss:$16 sps:$4 sm:$0xff]   ;;  %v161_v30 = vrot.slane %v3724_v24, %v160_v23 }
  0x76   :  { %1614 = vmatprep.subr.bf16.mxu0 %v3044_v31  ;;  %1574 = vmatpush1.bf16.msra.mxu1 %v3045_v32  ;;  %v3095_v61 = vld [vmem:[#allocation8 + $0x164] ss:$16 sps:$4 sm:$0xff]   ;;  %v3093_v0 = vld [vmem:[#allocation8 + $0x160] ss:$16 sps:$4 sm:$0xff]  }
  0x77   :  { %1575 = vmatprep.subr.bf16.mxu1 %v3053_v33  ;;  %v3092_v63 = vld [vmem:[#allocation8 + $0x384] ss:$16 sps:$4 sm:$0xff]   ;;  %v3090_v1 = vld [vmem:[#allocation8 + $0x380] ss:$16 sps:$4 sm:$0xff]   ;;  %v172_v33 = vsub.s32 5, %v3714_v19 }
  0x78   :  { %v3098_v2 = vld [vmem:[#allocation8 + $0x364] ss:$16 sps:$4 sm:$0xff]   ;;  %v3096_v3 = vld [vmem:[#allocation8 + $0x360] ss:$16 sps:$4 sm:$0xff]  }
  0x79   :  { %1615 = vmatpush1.bf16.msra.mxu0 %v3042_v34  ;;  %v3101_v4 = vld [vmem:[#allocation8 + $0x144] ss:$16 sps:$4 sm:$0xff]   ;;  %v3099_v6 = vld [vmem:[#allocation8 + $0x140] ss:$16 sps:$4 sm:$0xff]  }
  0x7a   :  { %1616 = vmatprep.subr.bf16.mxu0 %v3050_v35  ;;  %1576 = vmatpush1.bf16.msra.mxu1 %v3051_v36  ;;  %v3104_v5 = vld [vmem:[#allocation8 + $0x344] ss:$16 sps:$4 sm:$0xff]   ;;  %v3102_v7 = vld [vmem:[#allocation8 + $0x340] ss:$16 sps:$4 sm:$0xff]  }
  0x7b   :  { %1577 = vmatprep.subr.bf16.mxu1 %v3059_v37  ;;  %v3107_v8 = vld [vmem:[#allocation8 + $0x124] ss:$16 sps:$4 sm:$0xff]   ;;  %v3105_v10 = vld [vmem:[#allocation8 + $0x120] ss:$16 sps:$4 sm:$0xff]  }
  0x7c   :  { %v3110_v9 = vld [vmem:[#allocation8 + $0x324] ss:$16 sps:$4 sm:$0xff]   ;;  %v3108_v11 = vld [vmem:[#allocation8 + $0x320] ss:$16 sps:$4 sm:$0xff]  }
  0x7d   :  { %1617 = vmatpush1.bf16.msra.mxu0 %v3048_v38  ;;  %v3113_v12 = vld [vmem:[#allocation8 + $0x104] ss:$16 sps:$4 sm:$0xff]   ;;  %v3111_v14 = vld [vmem:[#allocation8 + $0x100] ss:$16 sps:$4 sm:$0xff]  }
  0x7e   :  { %1618 = vmatprep.subr.bf16.mxu0 %v3056_v39  ;;  %1578 = vmatpush1.bf16.msra.mxu1 %v3057_v40  ;;  %v3116_v13 = vld [vmem:[#allocation8 + $0x304] ss:$16 sps:$4 sm:$0xff]   ;;  %v3114_v15 = vld [vmem:[#allocation8 + $0x300] ss:$16 sps:$4 sm:$0xff]  }
  0x7f   :  { %1579 = vmatprep.subr.bf16.mxu1 %v3065_v41  ;;  %v3119_v16 = vld [vmem:[#allocation8 + $0x4e4] ss:$16 sps:$4 sm:$0xff]  }
  0x80   :  { %v3143_v18 = vld [vmem:[#allocation8 + $0x464] ss:$16 sps:$4 sm:$0xff]  }
  0x81   :  { %1619 = vmatpush1.bf16.msra.mxu0 %v3054_v42 }
  0x82   :  { %1620 = vmatprep.subr.bf16.mxu0 %v3062_v43  ;;  %1580 = vmatpush1.bf16.msra.mxu1 %v3063_v44 }
  0x83   :  { %1581 = vmatprep.subr.bf16.mxu1 %v3071_v45 }
  0x85   :  { %1621 = vmatpush1.bf16.msra.mxu0 %v3060_v46  ;;  %v173_v46 = vrot.slane %v3724_v24, %v172_v33  ;;  %v3158_v33 = vld [vmem:[#allocation8 + $0x2c] ss:$16 sps:$4 sm:$0xff]  }
  0x86   :  { %1622 = vmatprep.subr.bf16.mxu0 %v3068_v47  ;;  %1582 = vmatpush2.bf16.msra.mxu1 %v3069_v49 }
  0x87   :  { %1583 = vmatprep.subr.bf16.mxu1 %v3077_v51 }
  0x89   :  { %1623 = vmatpush1.bf16.msra.mxu0 %v3066_v48 }
  0x8a   :  { %1624 = vmatprep.subr.bf16.mxu0 %v3074_v50  ;;  %1584 = vmatpush2.bf16.msra.mxu1 %v3075_v52 }
  0x8b   :  { %1585 = vmatprep.subr.bf16.mxu1 %v3083_v53 }
  0x8d   :  { %1625 = vmatpush2.bf16.msra.mxu0 %v3072_v54 }
  0x8e   :  { %1626 = vmatprep.subr.bf16.mxu0 %v3080_v55  ;;  %1586 = vmatpush2.bf16.msra.mxu1 %v3081_v56 }
  0x8f   :  { %1587 = vmatprep.subr.bf16.mxu1 %v3089_v57 }
  0x91   :  { %1627 = vmatpush2.bf16.msra.mxu0 %v3078_v58 }
  0x92   :  { %1628 = vmatprep.subr.bf16.mxu0 %v3086_v59  ;;  %1588 = vmatpush2.bf16.msra.mxu1 %v3087_v60  ;;  %v3117_v59 = vld [vmem:[#allocation8 + $0x4e0] ss:$16 sps:$4 sm:$0xff]   ;;  %v3120_v60 = vld [vmem:[#allocation8 + $0xe8] ss:$16 sps:$4 sm:$0xff]  }
  0x93   :  { %1589 = vmatprep.subr.bf16.mxu1 %v3095_v61 }
  0x95   :  { %1629 = vmatpush2.bf16.msra.mxu0 %v3084_v62 }
  0x96   :  { %1630 = vmatprep.subr.bf16.mxu0 %v3092_v63  ;;  %1590 = vmatpush2.bf16.msra.mxu1 %v3093_v0  ;;  %v3125_v0 = vld [vmem:[#allocation8 + $0x4c4] ss:$16 sps:$4 sm:$0xff]  }
  0x97   :  { %1591 = vmatprep.subr.bf16.mxu1 %v3101_v4  ;;  %v3123_v4 = vld [vmem:[#allocation8 + $0x4c0] ss:$16 sps:$4 sm:$0xff]  }
  0x99   :  { %1631 = vmatpush2.bf16.msra.mxu0 %v3090_v1 }
  0x9a   :  { %1632 = vmatprep.subr.bf16.mxu0 %v3098_v2  ;;  %1592 = vmatpush2.bf16.msra.mxu1 %v3099_v6  ;;  %v3128_v2 = vld [vmem:[#allocation8 + $0xcc] ss:$16 sps:$4 sm:$0xff]  }
  0x9b   :  { %1593 = vmatprep.subr.bf16.mxu1 %v3107_v8  ;;  %v3131_v8 = vld [vmem:[#allocation8 + $0x4a4] ss:$16 sps:$4 sm:$0xff]  }
  0x9d   :  { %1633 = vmatpush2.bf16.msra.mxu0 %v3096_v3 }
  0x9e   :  { %1634 = vmatprep.subr.bf16.mxu0 %v3104_v5  ;;  %1594 = vmatpush2.bf16.msra.mxu1 %v3105_v10  ;;  %v3126_v5 = vld [vmem:[#allocation8 + $0xc8] ss:$16 sps:$4 sm:$0xff]  }
  0x9f   :  { %1595 = vmatprep.subr.bf16.mxu1 %v3113_v12  ;;  %v3132_v12 = vld [vmem:[#allocation8 + $0xa8] ss:$16 sps:$4 sm:$0xff]  }
  0xa1   :  { %1635 = vmatpush2.bf16.msra.mxu0 %v3102_v7 }
  0xa2   :  { %1636 = vmatprep.subr.bf16.mxu0 %v3110_v9  ;;  %1596 = vmatpush2.bf16.msra.mxu1 %v3111_v14  ;;  %v3134_v9 = vld [vmem:[#allocation8 + $0xac] ss:$16 sps:$4 sm:$0xff]   ;;  %v3137_v14 = vld [vmem:[#allocation8 + $0x484] ss:$16 sps:$4 sm:$0xff]  }
  0xa3   :  { %1651 = vmatprep.subr.bf16.mxu1 %v3119_v16  ;;  %v3135_v16 = vld [vmem:[#allocation8 + $0x480] ss:$16 sps:$4 sm:$0xff]  }
  0xa5   :  { %1637 = vmatpush2.bf16.msra.mxu0 %v3108_v11  ;;  %v3129_v11 = vld [vmem:[#allocation8 + $0x4a0] ss:$16 sps:$4 sm:$0xff]  }
  0xa6   :  { %1638 = vmatprep.subr.bf16.mxu0 %v3116_v13 }
  0xa9   :  { %1639 = vmatpush2.bf16.msra.mxu0 %v3114_v15  ;;  %v3140_v15 = vld [vmem:[#allocation8 + $0x8c] ss:$16 sps:$4 sm:$0xff]  }
  0xaa   :  { %1694 = vmatprep.subr.bf16.mxu0 %v3122_v17  ;;  %v3138_v17 = vld [vmem:[#allocation8 + $0x88] ss:$16 sps:$4 sm:$0xff]  }
 0x124   :  { %v278_v25 = vpop.f32.mrf.mxu0  ;;  %v321_v26 = vpop.f32.mrf.mxu1 }
 0x125   :  { %v279_v40 = vadd.f32 %v278_v25, %v153_v29  ;;  %v322_v41 = vadd.f32 %v321_v26, %v161_v30  ;;  %v3146_v25 = vld [vmem:[#allocation8 + $0x6c] ss:$16 sps:$4 sm:$0xff]   ;;  %v3141_v26 = vld [vmem:[#allocation8 + $0x460] ss:$16 sps:$4 sm:$0xff]  }
 0x126   :  { %v280_v31 = vpop.f32.mrf.mxu0  ;;  %v323_v32 = vpop.f32.mrf.mxu1 }
 0x127   :  { %v281_v36 = vadd.f32 %v280_v31, %v157_v27  ;;  %v324_v37 = vadd.f32 %v323_v32, %v165_v28  ;;  %v373_v54 = vmax.f32 %v279_v40, 0.0  ;;  %v375_v55 = vmax.f32 %v322_v41, 0.0  ;;  %v3150_v31 = vld [vmem:[#allocation8 + $0x48] ss:$16 sps:$4 sm:$0xff]   ;;  %v3155_v32 = vld [vmem:[#allocation8 + $0x424] ss:$16 sps:$4 sm:$0xff]  }
 0x128   :  { %v282_v34 = vpop.f32.mrf.mxu0  ;;  %v325_v35 = vpop.f32.mrf.mxu1  ;;  %v3167_v40 = vld [vmem:[#allocation8 + $0x5e4] ss:$16 sps:$4 sm:$0xff]   ;;  %v3170_v41 = vld [vmem:[#allocation8 + $0x1ec] ss:$16 sps:$4 sm:$0xff]  }
 0x129   :  { %v283_v38 = vadd.f32 %v282_v34, %v153_v29  ;;  %v326_v39 = vadd.f32 %v325_v35, %v161_v30  ;;  %v374_v50 = vmax.f32 %v281_v36, 0.0  ;;  %v376_v51 = vmax.f32 %v324_v37, 0.0  ;;  %v3152_v29 = vld [vmem:[#allocation8 + $0x4c] ss:$16 sps:$4 sm:$0xff]   ;;  %v3147_v30 = vld [vmem:[#allocation8 + $0x440] ss:$16 sps:$4 sm:$0xff]  }
 0x12a   :  { %v284_v42 = vpop.f32.mrf.mxu0  ;;  %v327_v43 = vpop.f32.mrf.mxu1  ;;  %v3153_v34 = vld [vmem:[#allocation8 + $0x420] ss:$16 sps:$4 sm:$0xff]   ;;  %v3156_v35 = vld [vmem:[#allocation8 + $0x28] ss:$16 sps:$4 sm:$0xff]   ;;  %v3161_v36 = vld [vmem:[#allocation8 + $0x404] ss:$16 sps:$4 sm:$0xff]  }
 0x12b   :  { %v285_v44 = vadd.f32 %v284_v42, %v157_v27  ;;  %v328_v45 = vadd.f32 %v327_v43, %v165_v28  ;;  %v379_v47 = vmax.f32 %v283_v38, 0.0  ;;  %v381_v48 = vmax.f32 %v326_v39, 0.0  ;;  %v3144_v27 = vld [vmem:[#allocation8 + $0x68] ss:$16 sps:$4 sm:$0xff]   ;;  %v3149_v28 = vld [vmem:[#allocation8 + $0x444] ss:$16 sps:$4 sm:$0xff]  }
 0x12c   :  { %v3738_v49 = vpop.f32.mrf.mxu0  ;;  %v3164_v37 = vld [vmem:[#allocation8 + $0xc] ss:$16 sps:$4 sm:$0xff]   ;;  %v3159_v38 = vld [vmem:[#allocation8 + $0x400] ss:$16 sps:$4 sm:$0xff]   ;;  %v3162_v39 = vld [vmem:[#allocation8 + $0x8] ss:$16 sps:$4 sm:$0xff]  }
 0x12d   :  { %v380_v52 = vmax.f32 %v285_v44, 0.0  ;;  %v382_v53 = vmax.f32 %v328_v45, 0.0  ;;  %v3742_v62 = vpack.c.bf16 %v379_v47, %v373_v54  ;;  %v3744_v63 = vpack.c.bf16 %v381_v48, %v375_v55  ;;  %v3165_v42 = vld [vmem:[#allocation8 + $0x5e0] ss:$16 sps:$4 sm:$0xff]   ;;  %v3168_v43 = vld [vmem:[#allocation8 + $0x1e8] ss:$16 sps:$4 sm:$0xff]  }
 0x12e   :  { %v366_v56 = vpop.f32.mrf.mxu0  ;;  %v3173_v44 = vld [vmem:[#allocation8 + $0x5c4] ss:$16 sps:$4 sm:$0xff]   ;;  %v3176_v45 = vld [vmem:[#allocation8 + $0x1cc] ss:$16 sps:$4 sm:$0xff]   ;;  %v3174_v47 = vld [vmem:[#allocation8 + $0x1c8] ss:$16 sps:$4 sm:$0xff]  }
 0x12f   :  { %v386_v57 = vpack.c.bf16 %v380_v52, %v374_v50  ;;  %v3740_v58 = vpack.c.bf16 %v382_v53, %v376_v51  ;;  %v367_v61 = vadd.f32 %v366_v56, %v173_v46  ;;  %v3179_v48 = vld [vmem:[#allocation8 + $0x5a4] ss:$16 sps:$4 sm:$0xff]   ;;  %v3182_v50 = vld [vmem:[#allocation8 + $0x1ac] ss:$16 sps:$4 sm:$0xff]   ;;  %v3177_v51 = vld [vmem:[#allocation8 + $0x5a0] ss:$16 sps:$4 sm:$0xff]  }
 0x130   :  { %v3746_v1 = vpop.f32.mrf.mxu0  ;;  %v3180_v52 = vld [vmem:[#allocation8 + $0x1a8] ss:$16 sps:$4 sm:$0xff]   ;;  %v3185_v53 = vld [vmem:[#allocation8 + $0x584] ss:$16 sps:$4 sm:$0xff]   ;;  %v3188_v54 = vld [vmem:[#allocation8 + $0x18c] ss:$16 sps:$4 sm:$0xff]  }
 0x131   :  { %1597 = vmatprep.mubr.bf16.mxu1 %v386_v57  ;;  %1640 = vmatprep.mubr.bf16.mxu0 %v3740_v58  ;;  %v378_v6 = vmax.f32 %v367_v61, 0.0  ;;  %v3183_v55 = vld [vmem:[#allocation8 + $0x580] ss:$16 sps:$4 sm:$0xff]   ;;  %v3186_v56 = vld [vmem:[#allocation8 + $0x188] ss:$16 sps:$4 sm:$0xff]  }
 0x132   :  { %1598 = vmatmul.mubr.bf16.vlgmr.msra.gmra.mxu1 %v3742_v62  ;;  %1641 = vmatmul.mubr.bf16.vlgmr.msra.gmra.mxu0 %v3744_v63  ;;  %v370_v3 = vpop.f32.mrf.mxu0  ;;  %v3192_v61 = vld [vmem:[#allocation8 + $0x168] ss:$16 sps:$4 sm:$0xff]  }
 0x133   :  { %1652 = vmatpush1.bf16.msra.mxu1 %v3117_v59  ;;  %1695 = vmatpush1.bf16.msra.mxu0 %v3120_v60  ;;  %v371_v7 = vadd.f32 %v370_v3, %v173_v46  ;;  %v3171_v46 = vld [vmem:[#allocation8 + $0x5c0] ss:$16 sps:$4 sm:$0xff]   ;;  %v3194_v59 = vld [vmem:[#allocation8 + $0x16c] ss:$16 sps:$4 sm:$0xff]  }
 0x134   :  { %1726 = vmatprep.mubr.bf16.mxu0 %v386_v57  ;;  %1653 = vmatprep.subr.bf16.mxu1 %v3125_v0  ;;  %v3191_v57 = vld [vmem:[#allocation8 + $0x564] ss:$16 sps:$4 sm:$0xff]   ;;  %v3189_v60 = vld [vmem:[#allocation8 + $0x560] ss:$16 sps:$4 sm:$0xff]   ;;  %v168_v0 = vsub.s32 4, %v3714_v19 }
 0x135   :  { %1696 = vmatprep.subr.bf16.mxu0 %v3128_v2  ;;  %v384_v10 = vmax.f32 %v371_v7, 0.0  ;;  %v3197_v2 = vld [vmem:[#allocation8 + $0x544] ss:$16 sps:$4 sm:$0xff]   ;;  %v3200_v3 = vld [vmem:[#allocation8 + $0x14c] ss:$16 sps:$4 sm:$0xff]  }
 0x136   :  { %v3203_v7 = vld [vmem:[#allocation8 + $0x524] ss:$16 sps:$4 sm:$0xff]  }
 0x137   :  { %1654 = vmatpush1.bf16.msra.mxu1 %v3123_v4  ;;  %1697 = vmatpush1.bf16.msra.mxu0 %v3126_v5  ;;  %v3751_v13 = vpack.c.bf16 %v384_v10, %v378_v6  ;;  %v3195_v4 = vld [vmem:[#allocation8 + $0x540] ss:$16 sps:$4 sm:$0xff]   ;;  %v3198_v5 = vld [vmem:[#allocation8 + $0x148] ss:$16 sps:$4 sm:$0xff]   ;;  %v169_v6 = vrot.slane %v3724_v24, %v168_v0 }
 0x138   :  { %1655 = vmatprep.subr.bf16.mxu1 %v3131_v8  ;;  %1698 = vmatprep.subr.bf16.mxu0 %v3134_v9  ;;  %v3206_v8 = vld [vmem:[#allocation8 + $0x12c] ss:$16 sps:$4 sm:$0xff]   ;;  %v3201_v9 = vld [vmem:[#allocation8 + $0x520] ss:$16 sps:$4 sm:$0xff]   ;;  %v3204_v10 = vld [vmem:[#allocation8 + $0x128] ss:$16 sps:$4 sm:$0xff]  }
 0x139   :  { %1683 = vmatprep.mubr.bf16.mxu1 %v3751_v13  ;;  %v3210_v24 = vld [vmem:[#allocation8 + $0x108] ss:$16 sps:$4 sm:$0xff]  }
 0x13a   :  { %v3270_v0 = vld [vmem:[#allocation8 + $0x5c8] ss:$16 sps:$4 sm:$0xff]  }
 0x13b   :  { %1656 = vmatpush1.bf16.msra.mxu1 %v3129_v11  ;;  %1699 = vmatpush1.bf16.msra.mxu0 %v3132_v12  ;;  %v365_v11 = vadd.f32 %v3738_v49, %v169_v6  ;;  %v369_v12 = vadd.f32 %v3746_v1, %v169_v6  ;;  %v3216_v1 = vld [vmem:[#allocation8 + $0x4e8] ss:$16 sps:$4 sm:$0xff]   ;;  %v3281_v6 = vld [vmem:[#allocation8 + $0x38c] ss:$16 sps:$4 sm:$0xff]  }
 0x13c   :  { %1657 = vmatprep.subr.bf16.mxu1 %v3137_v14  ;;  %1700 = vmatprep.subr.bf16.mxu0 %v3140_v15  ;;  %v3209_v14 = vld [vmem:[#allocation8 + $0x504] ss:$16 sps:$4 sm:$0xff]   ;;  %v3212_v15 = vld [vmem:[#allocation8 + $0x10c] ss:$16 sps:$4 sm:$0xff]  }
 0x13f   :  { %1658 = vmatpush1.bf16.msra.mxu1 %v3135_v16  ;;  %1701 = vmatpush1.bf16.msra.mxu0 %v3138_v17  ;;  %v3207_v16 = vld [vmem:[#allocation8 + $0x500] ss:$16 sps:$4 sm:$0xff]   ;;  %v377_v17 = vmax.f32 %v365_v11, 0.0  ;;  %v3290_v11 = vld [vmem:[#allocation8 + $0x56c] ss:$16 sps:$4 sm:$0xff]  }
 0x140   :  { %1659 = vmatprep.subr.bf16.mxu1 %v3143_v18  ;;  %1702 = vmatprep.subr.bf16.mxu0 %v3146_v25  ;;  %v383_v18 = vmax.f32 %v369_v12, 0.0  ;;  %v3215_v25 = vld [vmem:[#allocation8 + $0x2ec] ss:$16 sps:$4 sm:$0xff]   ;;  %v3285_v12 = vld [vmem:[#allocation8 + $0x368] ss:$16 sps:$4 sm:$0xff]  }
 0x142   :  { %v3758_v49 = vpack.c.bf16 %v383_v18, %v377_v17  ;;  %v3294_v17 = vld [vmem:[#allocation8 + $0x548] ss:$16 sps:$4 sm:$0xff]   ;;  %v3299_v18 = vld [vmem:[#allocation8 + $0x32c] ss:$16 sps:$4 sm:$0xff]  }
 0x143   :  { %1660 = vmatpush1.bf16.msra.mxu1 %v3141_v26  ;;  %1703 = vmatpush1.bf16.msra.mxu0 %v3144_v27  ;;  %v3218_v26 = vld [vmem:[#allocation8 + $0x4ec] ss:$16 sps:$4 sm:$0xff]   ;;  %v3213_v27 = vld [vmem:[#allocation8 + $0x2e8] ss:$16 sps:$4 sm:$0xff]  }
 0x144   :  { %1661 = vmatprep.subr.bf16.mxu1 %v3149_v28  ;;  %1704 = vmatprep.subr.bf16.mxu0 %v3152_v29  ;;  %v3221_v28 = vld [vmem:[#allocation8 + $0x2cc] ss:$16 sps:$4 sm:$0xff]  }
 0x145   :  { %v3224_v29 = vld [vmem:[#allocation8 + $0x4cc] ss:$16 sps:$4 sm:$0xff]  }
 0x147   :  { %1662 = vmatpush1.bf16.msra.mxu1 %v3147_v30  ;;  %1705 = vmatpush1.bf16.msra.mxu0 %v3150_v31  ;;  %v3219_v30 = vld [vmem:[#allocation8 + $0x2c8] ss:$16 sps:$4 sm:$0xff]  }
 0x148   :  { %1663 = vmatprep.subr.bf16.mxu1 %v3155_v32  ;;  %1706 = vmatprep.subr.bf16.mxu0 %v3158_v33  ;;  %v3222_v31 = vld [vmem:[#allocation8 + $0x4c8] ss:$16 sps:$4 sm:$0xff]   ;;  %v3227_v32 = vld [vmem:[#allocation8 + $0x2ac] ss:$16 sps:$4 sm:$0xff]  }
 0x149   :  { %v3230_v33 = vld [vmem:[#allocation8 + $0x4ac] ss:$16 sps:$4 sm:$0xff]  }
 0x14b   :  { %1664 = vmatpush1.bf16.msra.mxu1 %v3153_v34  ;;  %1707 = vmatpush1.bf16.msra.mxu0 %v3156_v35  ;;  %v3225_v34 = vld [vmem:[#allocation8 + $0x2a8] ss:$16 sps:$4 sm:$0xff]  }
 0x14c   :  { %1665 = vmatprep.subr.bf16.mxu1 %v3161_v36  ;;  %1708 = vmatprep.subr.bf16.mxu0 %v3164_v37  ;;  %v3228_v35 = vld [vmem:[#allocation8 + $0x4a8] ss:$16 sps:$4 sm:$0xff]   ;;  %v3233_v36 = vld [vmem:[#allocation8 + $0x28c] ss:$16 sps:$4 sm:$0xff]  }
 0x14d   :  { %v3231_v37 = vld [vmem:[#allocation8 + $0x288] ss:$16 sps:$4 sm:$0xff]  }
 0x14f   :  { %1666 = vmatpush1.bf16.msra.mxu1 %v3159_v38  ;;  %1709 = vmatpush1.bf16.msra.mxu0 %v3162_v39  ;;  %v3239_v38 = vld [vmem:[#allocation8 + $0x26c] ss:$16 sps:$4 sm:$0xff]   ;;  %v3237_v39 = vld [vmem:[#allocation8 + $0x268] ss:$16 sps:$4 sm:$0xff]  }
 0x150   :  { %1667 = vmatprep.subr.bf16.mxu1 %v3167_v40  ;;  %1710 = vmatprep.subr.bf16.mxu0 %v3170_v41  ;;  %v3240_v40 = vld [vmem:[#allocation8 + $0x468] ss:$16 sps:$4 sm:$0xff]   ;;  %v3245_v41 = vld [vmem:[#allocation8 + $0x24c] ss:$16 sps:$4 sm:$0xff]  }
 0x153   :  { %1668 = vmatpush2.bf16.msra.mxu1 %v3165_v42  ;;  %1711 = vmatpush2.bf16.msra.mxu0 %v3168_v43  ;;  %v3248_v42 = vld [vmem:[#allocation8 + $0x44c] ss:$16 sps:$4 sm:$0xff]   ;;  %v3243_v43 = vld [vmem:[#allocation8 + $0x248] ss:$16 sps:$4 sm:$0xff]  }
 0x154   :  { %1669 = vmatprep.subr.bf16.mxu1 %v3173_v44  ;;  %1712 = vmatprep.subr.bf16.mxu0 %v3176_v45  ;;  %v3246_v44 = vld [vmem:[#allocation8 + $0x448] ss:$16 sps:$4 sm:$0xff]   ;;  %v3251_v45 = vld [vmem:[#allocation8 + $0x22c] ss:$16 sps:$4 sm:$0xff]  }
 0x157   :  { %1670 = vmatpush2.bf16.msra.mxu1 %v3171_v46  ;;  %1713 = vmatpush2.bf16.msra.mxu0 %v3174_v47  ;;  %v3254_v46 = vld [vmem:[#allocation8 + $0x42c] ss:$16 sps:$4 sm:$0xff]   ;;  %v3249_v47 = vld [vmem:[#allocation8 + $0x228] ss:$16 sps:$4 sm:$0xff]  }
 0x158   :  { %1671 = vmatprep.subr.bf16.mxu1 %v3179_v48  ;;  %1714 = vmatprep.subr.bf16.mxu0 %v3182_v50  ;;  %v3252_v48 = vld [vmem:[#allocation8 + $0x428] ss:$16 sps:$4 sm:$0xff]   ;;  %v3257_v50 = vld [vmem:[#allocation8 + $0x20c] ss:$16 sps:$4 sm:$0xff]  }
 0x15b   :  { %1672 = vmatpush2.bf16.msra.mxu1 %v3177_v51  ;;  %1715 = vmatpush2.bf16.msra.mxu0 %v3180_v52  ;;  %v3260_v51 = vld [vmem:[#allocation8 + $0x40c] ss:$16 sps:$4 sm:$0xff]   ;;  %v3255_v52 = vld [vmem:[#allocation8 + $0x208] ss:$16 sps:$4 sm:$0xff]  }
 0x15c   :  { %1673 = vmatprep.subr.bf16.mxu1 %v3185_v53  ;;  %1716 = vmatprep.subr.bf16.mxu0 %v3188_v54  ;;  %v3258_v53 = vld [vmem:[#allocation8 + $0x408] ss:$16 sps:$4 sm:$0xff]   ;;  %v3263_v54 = vld [vmem:[#allocation8 + $0x3ec] ss:$16 sps:$4 sm:$0xff]  }
 0x15f   :  { %1674 = vmatpush2.bf16.msra.mxu1 %v3183_v55  ;;  %1717 = vmatpush2.bf16.msra.mxu0 %v3186_v56  ;;  %v3266_v55 = vld [vmem:[#allocation8 + $0x5ec] ss:$16 sps:$4 sm:$0xff]   ;;  %v3261_v56 = vld [vmem:[#allocation8 + $0x3e8] ss:$16 sps:$4 sm:$0xff]  }
 0x160   :  { %1675 = vmatprep.subr.bf16.mxu1 %v3191_v57  ;;  %1718 = vmatprep.subr.bf16.mxu0 %v3194_v59  ;;  %v3264_v57 = vld [vmem:[#allocation8 + $0x5e8] ss:$16 sps:$4 sm:$0xff]   ;;  %v3269_v59 = vld [vmem:[#allocation8 + $0x3cc] ss:$16 sps:$4 sm:$0xff]  }
 0x163   :  { %1676 = vmatpush2.bf16.msra.mxu1 %v3189_v60  ;;  %1719 = vmatpush2.bf16.msra.mxu0 %v3192_v61  ;;  %v3272_v60 = vld [vmem:[#allocation8 + $0x5cc] ss:$16 sps:$4 sm:$0xff]   ;;  %v3267_v61 = vld [vmem:[#allocation8 + $0x3c8] ss:$16 sps:$4 sm:$0xff]  }
 0x164   :  { %1677 = vmatprep.subr.bf16.mxu1 %v3197_v2  ;;  %1720 = vmatprep.subr.bf16.mxu0 %v3200_v3  ;;  %v3275_v2 = vld [vmem:[#allocation8 + $0x3ac] ss:$16 sps:$4 sm:$0xff]  }
 0x165   :  { %v3278_v3 = vld [vmem:[#allocation8 + $0x5ac] ss:$16 sps:$4 sm:$0xff]  }
 0x167   :  { %1678 = vmatpush2.bf16.msra.mxu1 %v3195_v4  ;;  %1721 = vmatpush2.bf16.msra.mxu0 %v3198_v5  ;;  %v3273_v4 = vld [vmem:[#allocation8 + $0x3a8] ss:$16 sps:$4 sm:$0xff]  }
 0x168   :  { %1679 = vmatprep.subr.bf16.mxu1 %v3203_v7  ;;  %1722 = vmatprep.subr.bf16.mxu0 %v3206_v8  ;;  %v3276_v5 = vld [vmem:[#allocation8 + $0x5a8] ss:$16 sps:$4 sm:$0xff]   ;;  %v3284_v7 = vld [vmem:[#allocation8 + $0x58c] ss:$16 sps:$4 sm:$0xff]  }
 0x169   :  { %v3279_v8 = vld [vmem:[#allocation8 + $0x388] ss:$16 sps:$4 sm:$0xff]  }
 0x16b   :  { %1680 = vmatpush2.bf16.msra.mxu1 %v3201_v9  ;;  %1723 = vmatpush2.bf16.msra.mxu0 %v3204_v10  ;;  %v3282_v9 = vld [vmem:[#allocation8 + $0x588] ss:$16 sps:$4 sm:$0xff]   ;;  %v3287_v10 = vld [vmem:[#allocation8 + $0x36c] ss:$16 sps:$4 sm:$0xff]  }
 0x16c   :  { %1681 = vmatprep.subr.bf16.mxu1 %v3209_v14  ;;  %1724 = vmatprep.subr.bf16.mxu0 %v3212_v15  ;;  %v3288_v14 = vld [vmem:[#allocation8 + $0x568] ss:$16 sps:$4 sm:$0xff]   ;;  %v3293_v15 = vld [vmem:[#allocation8 + $0x34c] ss:$16 sps:$4 sm:$0xff]  }
 0x16f   :  { %1682 = vmatpush2.bf16.msra.mxu1 %v3207_v16  ;;  %1725 = vmatpush2.bf16.msra.mxu0 %v3210_v24  ;;  %v3296_v16 = vld [vmem:[#allocation8 + $0x54c] ss:$16 sps:$4 sm:$0xff]   ;;  %v3291_v24 = vld [vmem:[#allocation8 + $0x348] ss:$16 sps:$4 sm:$0xff]  }
 0x170   :  { %1737 = vmatprep.subr.bf16.mxu1 %v3215_v25  ;;  %1780 = vmatprep.subr.bf16.mxu0 %v3218_v26  ;;  %v3302_v25 = vld [vmem:[#allocation8 + $0x52c] ss:$16 sps:$4 sm:$0xff]   ;;  %v3297_v26 = vld [vmem:[#allocation8 + $0x328] ss:$16 sps:$4 sm:$0xff]  }
 0x172   :  { %1684 = vmatmul.mubr.bf16.vlgmr.msra.gmra.mxu1 %v3758_v49  ;;  %1727 = vmatmul.mubr.bf16.vlgmr.msra.gmra.mxu0 %v3742_v62  ;;  %v3236_v62 = vld [vmem:[#allocation8 + $0x48c] ss:$16 sps:$4 sm:$0xff]  }
 0x173   :  { %1738 = vmatpush1.bf16.msra.mxu1 %v3213_v27  ;;  %1769 = vmatprep.mubr.bf16.mxu1 %v3740_v58  ;;  %v3234_v58 = vld [vmem:[#allocation8 + $0x488] ss:$16 sps:$4 sm:$0xff]  }
 0x174   :  { %1781 = vmatpush1.bf16.msra.mxu0 %v3216_v1  ;;  %1812 = vmatprep.mubr.bf16.mxu0 %v3751_v13  ;;  %v3242_v13 = vld [vmem:[#allocation8 + $0x46c] ss:$16 sps:$4 sm:$0xff]   ;;  %v3300_v27 = vld [vmem:[#allocation8 + $0x528] ss:$16 sps:$4 sm:$0xff]  }
 0x175   :  { %1739 = vmatprep.subr.bf16.mxu1 %v3221_v28  ;;  %1782 = vmatprep.subr.bf16.mxu0 %v3224_v29  ;;  %v3305_v1 = vld [vmem:[#allocation8 + $0x30c] ss:$16 sps:$4 sm:$0xff]   ;;  %v3303_v29 = vld [vmem:[#allocation8 + $0x308] ss:$16 sps:$4 sm:$0xff]  }
 0x176   :  { %v3308_v28 = vld [vmem:[#allocation8 + $0x50c] ss:$16 sps:$4 sm:$0xff]  }
 0x177   :  { %1740 = vmatpush1.bf16.msra.mxu1 %v3219_v30  ;;  %v3306_v30 = vld [vmem:[#allocation8 + $0x508] ss:$16 sps:$4 sm:$0xff]  }
 0x178   :  { %1783 = vmatpush1.bf16.msra.mxu0 %v3222_v31  ;;  %1741 = vmatprep.subr.bf16.mxu1 %v3227_v32  ;;  %v3311_v31 = vld [vmem:[#allocation10 + $0x74] ss:$8 sps:$4 sm:$0xff]   ;;  %v3309_v32 = vld [vmem:[#allocation10 + $0x70] ss:$8 sps:$4 sm:$0xff]  }
 0x179   :  { %1784 = vmatprep.subr.bf16.mxu0 %v3230_v33  ;;  %v3314_v33 = vld [vmem:[#allocation10 + $0x64] ss:$8 sps:$4 sm:$0xff]  }
 0x17b   :  { %1742 = vmatpush1.bf16.msra.mxu1 %v3225_v34  ;;  %v3312_v34 = vld [vmem:[#allocation10 + $0x60] ss:$8 sps:$4 sm:$0xff]  }
 0x17c   :  { %1785 = vmatpush1.bf16.msra.mxu0 %v3228_v35  ;;  %1743 = vmatprep.subr.bf16.mxu1 %v3233_v36  ;;  %v3317_v35 = vld [vmem:[#allocation10 + $0x54] ss:$8 sps:$4 sm:$0xff]   ;;  %v3315_v36 = vld [vmem:[#allocation10 + $0x50] ss:$8 sps:$4 sm:$0xff]  }
 0x17d   :  { %1786 = vmatprep.subr.bf16.mxu0 %v3236_v62  ;;  %v3320_v62 = vld [vmem:[#allocation10 + $0x44] ss:$8 sps:$4 sm:$0xff]  }
 0x17f   :  { %1744 = vmatpush1.bf16.msra.mxu1 %v3231_v37  ;;  %v3318_v37 = vld [vmem:[#allocation10 + $0x40] ss:$8 sps:$4 sm:$0xff]  }
 0x180   :  { %1787 = vmatpush1.bf16.msra.mxu0 %v3234_v58  ;;  %1745 = vmatprep.subr.bf16.mxu1 %v3239_v38  ;;  %v3323_v58 = vld [vmem:[#allocation10 + $0x34] ss:$8 sps:$4 sm:$0xff]   ;;  %v3321_v38 = vld [vmem:[#allocation10 + $0x30] ss:$8 sps:$4 sm:$0xff]  }
 0x181   :  { %1788 = vmatprep.subr.bf16.mxu0 %v3242_v13  ;;  %v3326_v13 = vld [vmem:[#allocation10 + $0x24] ss:$8 sps:$4 sm:$0xff]  }
 0x183   :  { %1746 = vmatpush1.bf16.msra.mxu1 %v3237_v39  ;;  %v3357_v39 = vld [vmem:[#allocation10 + $0x170] ss:$8 sps:$4 sm:$0xff]  }
 0x184   :  { %1789 = vmatpush1.bf16.msra.mxu0 %v3240_v40  ;;  %1747 = vmatprep.subr.bf16.mxu1 %v3245_v41  ;;  %v3362_v40 = vld [vmem:[#allocation10 + $0x164] ss:$8 sps:$4 sm:$0xff]   ;;  %v3360_v41 = vld [vmem:[#allocation10 + $0x160] ss:$8 sps:$4 sm:$0xff]  }
 0x185   :  { %1790 = vmatprep.subr.bf16.mxu0 %v3248_v42  ;;  %v3329_v42 = vld [vmem:[#allocation10 + $0x14] ss:$8 sps:$4 sm:$0xff]  }
 0x187   :  { %1748 = vmatpush1.bf16.msra.mxu1 %v3243_v43  ;;  %v3365_v43 = vld [vmem:[#allocation10 + $0x154] ss:$8 sps:$4 sm:$0xff]  }
 0x188   :  { %1791 = vmatpush1.bf16.msra.mxu0 %v3246_v44  ;;  %1749 = vmatprep.subr.bf16.mxu1 %v3251_v45  ;;  %v3327_v44 = vld [vmem:[#allocation10 + $0x10] ss:$8 sps:$4 sm:$0xff]  }
 0x189   :  { %1792 = vmatprep.subr.bf16.mxu0 %v3254_v46  ;;  %v3363_v45 = vld [vmem:[#allocation10 + $0x150] ss:$8 sps:$4 sm:$0xff]   ;;  %v3332_v46 = vld [vmem:[#allocation10 + $0x4] ss:$8 sps:$4 sm:$0xff]  }
 0x18b   :  { %1750 = vmatpush1.bf16.msra.mxu1 %v3249_v47  ;;  %v3368_v47 = vld [vmem:[#allocation10 + $0x144] ss:$8 sps:$4 sm:$0xff]  }
 0x18c   :  { %1793 = vmatpush1.bf16.msra.mxu0 %v3252_v48  ;;  %1751 = vmatprep.subr.bf16.mxu1 %v3257_v50  ;;  %v3330_v48 = vld [vmem:[#allocation10] ss:$8 sps:$4 sm:$0xff]  }
 0x18d   :  { %1794 = vmatprep.subr.bf16.mxu0 %v3260_v51  ;;  %v3366_v50 = vld [vmem:[#allocation10 + $0x140] ss:$8 sps:$4 sm:$0xff]   ;;  %v3335_v51 = vld [vmem:[#allocation10 + $0xf4] ss:$8 sps:$4 sm:$0xff]  }
 0x18f   :  { %1752 = vmatpush1.bf16.msra.mxu1 %v3255_v52  ;;  %v3371_v52 = vld [vmem:[#allocation10 + $0x134] ss:$8 sps:$4 sm:$0xff]  }
 0x190   :  { %1795 = vmatpush1.bf16.msra.mxu0 %v3258_v53  ;;  %1753 = vmatprep.subr.bf16.mxu1 %v3263_v54  ;;  %v3333_v53 = vld [vmem:[#allocation10 + $0xf0] ss:$8 sps:$4 sm:$0xff]  }
 0x191   :  { %1796 = vmatprep.subr.bf16.mxu0 %v3266_v55  ;;  %v3369_v54 = vld [vmem:[#allocation10 + $0x130] ss:$8 sps:$4 sm:$0xff]   ;;  %v3338_v55 = vld [vmem:[#allocation10 + $0xe4] ss:$8 sps:$4 sm:$0xff]  }
 0x193   :  { %1754 = vmatpush2.bf16.msra.mxu1 %v3261_v56  ;;  %v3374_v56 = vld [vmem:[#allocation10 + $0x124] ss:$8 sps:$4 sm:$0xff]  }
 0x194   :  { %1797 = vmatpush2.bf16.msra.mxu0 %v3264_v57  ;;  %1755 = vmatprep.subr.bf16.mxu1 %v3269_v59  ;;  %v3336_v57 = vld [vmem:[#allocation10 + $0xe0] ss:$8 sps:$4 sm:$0xff]  }
 0x195   :  { %1798 = vmatprep.subr.bf16.mxu0 %v3272_v60  ;;  %v3372_v59 = vld [vmem:[#allocation10 + $0x120] ss:$8 sps:$4 sm:$0xff]   ;;  %v3341_v60 = vld [vmem:[#allocation10 + $0xd4] ss:$8 sps:$4 sm:$0xff]  }
 0x197   :  { %1756 = vmatpush2.bf16.msra.mxu1 %v3267_v61  ;;  %v3377_v61 = vld [vmem:[#allocation10 + $0x114] ss:$8 sps:$4 sm:$0xff]  }
 0x198   :  { %1799 = vmatpush2.bf16.msra.mxu0 %v3270_v0  ;;  %1757 = vmatprep.subr.bf16.mxu1 %v3275_v2  ;;  %v3339_v0 = vld [vmem:[#allocation10 + $0xd0] ss:$8 sps:$4 sm:$0xff]  }
 0x199   :  { %1800 = vmatprep.subr.bf16.mxu0 %v3278_v3  ;;  %v3375_v2 = vld [vmem:[#allocation10 + $0x110] ss:$8 sps:$4 sm:$0xff]   ;;  %v3344_v3 = vld [vmem:[#allocation10 + $0xc4] ss:$8 sps:$4 sm:$0xff]  }
 0x19b   :  { %1758 = vmatpush2.bf16.msra.mxu1 %v3273_v4  ;;  %v3380_v4 = vld [vmem:[#allocation10 + $0x104] ss:$8 sps:$4 sm:$0xff]  }
 0x19c   :  { %1801 = vmatpush2.bf16.msra.mxu0 %v3276_v5  ;;  %1759 = vmatprep.subr.bf16.mxu1 %v3281_v6  ;;  %v3342_v5 = vld [vmem:[#allocation10 + $0xc0] ss:$8 sps:$4 sm:$0xff]  }
 0x19d   :  { %1802 = vmatprep.subr.bf16.mxu0 %v3284_v7  ;;  %v3378_v6 = vld [vmem:[#allocation10 + $0x100] ss:$8 sps:$4 sm:$0xff]   ;;  %v3347_v7 = vld [vmem:[#allocation10 + $0xb4] ss:$8 sps:$4 sm:$0xff]  }
 0x19f   :  { %1760 = vmatpush2.bf16.msra.mxu1 %v3279_v8  ;;  %v3383_v8 = vld [vmem:[#allocation10 + $0x1f4] ss:$8 sps:$4 sm:$0xff]  }
 0x1a0   :  { %1803 = vmatpush2.bf16.msra.mxu0 %v3282_v9  ;;  %1761 = vmatprep.subr.bf16.mxu1 %v3287_v10  ;;  %v3345_v9 = vld [vmem:[#allocation10 + $0xb0] ss:$8 sps:$4 sm:$0xff]  }
 0x1a1   :  { %1804 = vmatprep.subr.bf16.mxu0 %v3290_v11  ;;  %v3381_v10 = vld [vmem:[#allocation10 + $0x1f0] ss:$8 sps:$4 sm:$0xff]   ;;  %v3350_v11 = vld [vmem:[#allocation10 + $0xa4] ss:$8 sps:$4 sm:$0xff]  }
 0x1a3   :  { %1762 = vmatpush2.bf16.msra.mxu1 %v3285_v12  ;;  %v3386_v12 = vld [vmem:[#allocation10 + $0x1e4] ss:$8 sps:$4 sm:$0xff]  }
 0x1a4   :  { %1805 = vmatpush2.bf16.msra.mxu0 %v3288_v14  ;;  %1763 = vmatprep.subr.bf16.mxu1 %v3293_v15  ;;  %v3348_v14 = vld [vmem:[#allocation10 + $0xa0] ss:$8 sps:$4 sm:$0xff]  }
 0x1a5   :  { %1806 = vmatprep.subr.bf16.mxu0 %v3296_v16  ;;  %v3384_v15 = vld [vmem:[#allocation10 + $0x1e0] ss:$8 sps:$4 sm:$0xff]   ;;  %v3353_v16 = vld [vmem:[#allocation10 + $0x94] ss:$8 sps:$4 sm:$0xff]  }
 0x1a7   :  { %1764 = vmatpush2.bf16.msra.mxu1 %v3291_v24  ;;  %v3389_v24 = vld [vmem:[#allocation10 + $0x1d4] ss:$8 sps:$4 sm:$0xff]  }
 0x1a8   :  { %1807 = vmatpush2.bf16.msra.mxu0 %v3294_v17  ;;  %1765 = vmatprep.subr.bf16.mxu1 %v3299_v18  ;;  %v3351_v17 = vld [vmem:[#allocation10 + $0x90] ss:$8 sps:$4 sm:$0xff]  }
 0x1a9   :  { %1808 = vmatprep.subr.bf16.mxu0 %v3302_v25  ;;  %v3387_v18 = vld [vmem:[#allocation10 + $0x1d0] ss:$8 sps:$4 sm:$0xff]   ;;  %v3356_v25 = vld [vmem:[#allocation10 + $0x84] ss:$8 sps:$4 sm:$0xff]  }
 0x1ab   :  { %1766 = vmatpush2.bf16.msra.mxu1 %v3297_v26  ;;  %v3392_v26 = vld [vmem:[#allocation10 + $0x1c4] ss:$8 sps:$4 sm:$0xff]  }
 0x1ac   :  { %1809 = vmatpush2.bf16.msra.mxu0 %v3300_v27  ;;  %1767 = vmatprep.subr.bf16.mxu1 %v3305_v1  ;;  %v3354_v27 = vld [vmem:[#allocation10 + $0x80] ss:$8 sps:$4 sm:$0xff]  }
 0x1ad   :  { %1810 = vmatprep.subr.bf16.mxu0 %v3308_v28  ;;  %v3390_v1 = vld [vmem:[#allocation10 + $0x1c0] ss:$8 sps:$4 sm:$0xff]   ;;  %v3395_v28 = vld [vmem:[#allocation10 + $0x1b4] ss:$8 sps:$4 sm:$0xff]  }
 0x1af   :  { %1768 = vmatpush2.bf16.msra.mxu1 %v3303_v29  ;;  %v3393_v29 = vld [vmem:[#allocation10 + $0x1b0] ss:$8 sps:$4 sm:$0xff]  }
 0x1b0   :  { %1811 = vmatpush2.bf16.msra.mxu0 %v3306_v30  ;;  %2231 = vmatprep.subr.bf16.mxu1 %v3311_v31  ;;  %v3398_v30 = vld [vmem:[#allocation10 + $0x1a4] ss:$8 sps:$4 sm:$0xff]   ;;  %v3396_v31 = vld [vmem:[#allocation10 + $0x1a0] ss:$8 sps:$4 sm:$0xff]  }
 0x1b2   :  { %1770 = vmatmul.mubr.bf16.vlgmr.msra.gmra.mxu1 %v3744_v63  ;;  %v3359_v63 = vld [vmem:[#allocation10 + $0x174] ss:$8 sps:$4 sm:$0xff]  }
 0x1b3   :  { %1813 = vmatmul.mubr.bf16.vlgmr.msra.gmra.mxu0 %v3758_v49  ;;  %2232 = vmatpush1.bf16.msra.mxu1 %v3309_v32  ;;  %v3324_v49 = vld [vmem:[#allocation10 + $0x20] ss:$8 sps:$4 sm:$0xff]   ;;  %v3401_v32 = vld [vmem:[#allocation10 + $0x194] ss:$8 sps:$4 sm:$0xff]  }
 0x1b4   :  { %2233 = vmatprep.subr.bf16.mxu1 %v3314_v33  ;;  %2274 = vmatprep.subr.bf16.mxu0 %v3359_v63  ;;  %v3399_v33 = vld [vmem:[#allocation10 + $0x190] ss:$8 sps:$4 sm:$0xff]  }
 0x1b5   :  { %2275 = vmatpush1.bf16.msra.mxu0 %v3357_v39 }
 0x1b6   :  { %2276 = vmatprep.subr.bf16.mxu0 %v3362_v40 }
 0x1b7   :  { %2234 = vmatpush1.bf16.msra.mxu1 %v3312_v34  ;;  %v3404_v34 = vld [vmem:[#allocation10 + $0x184] ss:$8 sps:$4 sm:$0xff]  }
 0x1b8   :  { %2235 = vmatprep.subr.bf16.mxu1 %v3317_v35  ;;  %v3402_v35 = vld [vmem:[#allocation10 + $0x180] ss:$8 sps:$4 sm:$0xff]  }
 0x1b9   :  { %2277 = vmatpush1.bf16.msra.mxu0 %v3360_v41 }
 0x1ba   :  { %2278 = vmatprep.subr.bf16.mxu0 %v3365_v43 }
 0x1bb   :  { %2236 = vmatpush1.bf16.msra.mxu1 %v3315_v36 }
 0x1bc   :  { %2237 = vmatprep.subr.bf16.mxu1 %v3320_v62 }
 0x1bd   :  { %2279 = vmatpush1.bf16.msra.mxu0 %v3363_v45 }
 0x1be   :  { %2280 = vmatprep.subr.bf16.mxu0 %v3368_v47 }
 0x1bf   :  { %2238 = vmatpush1.bf16.msra.mxu1 %v3318_v37 }
 0x1c0   :  { %2239 = vmatprep.subr.bf16.mxu1 %v3323_v58  ;;  %v583_v58 = vld [vmem:[%s3796_s4] sm:$0xf] }
 0x1c1   :  { %2281 = vmatpush1.bf16.msra.mxu0 %v3366_v50  ;;  %v588_v39 = vrot.slane %v583_v58, %v3721_v22 }
 0x1c2   :  { %2282 = vmatprep.subr.bf16.mxu0 %v3371_v52 }
 0x1c3   :  { %2240 = vmatpush1.bf16.msra.mxu1 %v3321_v38 }
 0x1c4   :  { %2241 = vmatprep.subr.bf16.mxu1 %v3326_v13  ;;  %v592_v13 = vrot.slane %v583_v58, %v3717_v20 }
 0x1c5   :  { %2283 = vmatpush1.bf16.msra.mxu0 %v3369_v54 }
 0x1c6   :  { %2284 = vmatprep.subr.bf16.mxu0 %v3374_v56 }
 0x1c7   :  { %2242 = vmatpush1.bf16.msra.mxu1 %v3324_v49 }
 0x1c8   :  { %2243 = vmatprep.subr.bf16.mxu1 %v3329_v42 }
 0x1c9   :  { %2285 = vmatpush1.bf16.msra.mxu0 %v3372_v59 }
 0x1ca   :  { %2286 = vmatprep.subr.bf16.mxu0 %v3377_v61 }
 0x1cb   :  { %2244 = vmatpush1.bf16.msra.mxu1 %v3327_v44 }
 0x1cc   :  { %2245 = vmatprep.subr.bf16.mxu1 %v3332_v46 }
 0x1cd   :  { %2287 = vmatpush1.bf16.msra.mxu0 %v3375_v2 }
 0x1ce   :  { %2288 = vmatprep.subr.bf16.mxu0 %v3380_v4 }
 0x1cf   :  { %2246 = vmatpush1.bf16.msra.mxu1 %v3330_v48 }
 0x1d0   :  { %2247 = vmatprep.subr.bf16.mxu1 %v3335_v51 }
 0x1d1   :  { %2289 = vmatpush1.bf16.msra.mxu0 %v3378_v6 }
 0x1d2   :  { %2290 = vmatprep.subr.bf16.mxu0 %v3383_v8  ;;  %v600_v8 = vrot.slane %v583_v58, %v164_v21 }
 0x1d3   :  { %2248 = vmatpush2.bf16.msra.mxu1 %v3333_v53 }
 0x1d4   :  { %2249 = vmatprep.subr.bf16.mxu1 %v3338_v55 }
 0x1d5   :  { %2291 = vmatpush2.bf16.msra.mxu0 %v3381_v10 }
 0x1d6   :  { %2292 = vmatprep.subr.bf16.mxu0 %v3386_v12 }
 0x1d7   :  { %2250 = vmatpush2.bf16.msra.mxu1 %v3336_v57 }
 0x1d8   :  { %2251 = vmatprep.subr.bf16.mxu1 %v3341_v60 }
 0x1d9   :  { %2293 = vmatpush2.bf16.msra.mxu0 %v3384_v15 }
 0x1da   :  { %2294 = vmatprep.subr.bf16.mxu0 %v3389_v24 }
 0x1db   :  { %2252 = vmatpush2.bf16.msra.mxu1 %v3339_v0 }
 0x1dc   :  { %2253 = vmatprep.subr.bf16.mxu1 %v3344_v3 }
 0x1dd   :  { %2295 = vmatpush2.bf16.msra.mxu0 %v3387_v18 }
 0x1de   :  { %2296 = vmatprep.subr.bf16.mxu0 %v3392_v26 }
 0x1df   :  { %2254 = vmatpush2.bf16.msra.mxu1 %v3342_v5 }
 0x1e0   :  { %2255 = vmatprep.subr.bf16.mxu1 %v3347_v7 }
 0x1e1   :  { %2297 = vmatpush2.bf16.msra.mxu0 %v3390_v1 }
 0x1e2   :  { %2298 = vmatprep.subr.bf16.mxu0 %v3395_v28 }
 0x1e3   :  { %2256 = vmatpush2.bf16.msra.mxu1 %v3345_v9  ;;  %v596_v9 = vrot.slane %v583_v58, %v160_v23  ;;  %v3405_v58 = vld [vmem:[#allocation11 + $0x78] sm:$0xff]  }
 0x1e4   :  { %2257 = vmatprep.subr.bf16.mxu1 %v3350_v11 }
 0x1e5   :  { %2299 = vmatpush2.bf16.msra.mxu0 %v3393_v29 }
 0x1e6   :  { %2300 = vmatprep.subr.bf16.mxu0 %v3398_v30 }
 0x1e7   :  { %2258 = vmatpush2.bf16.msra.mxu1 %v3348_v14 }
 0x1e8   :  { %2259 = vmatprep.subr.bf16.mxu1 %v3353_v16 }
 0x1e9   :  { %2301 = vmatpush2.bf16.msra.mxu0 %v3396_v31 }
 0x1ea   :  { %2302 = vmatprep.subr.bf16.mxu0 %v3401_v32 }
 0x1eb   :  { %2260 = vmatpush2.bf16.msra.mxu1 %v3351_v17 }
 0x1ec   :  { %2261 = vmatprep.subr.bf16.mxu1 %v3356_v25 }
 0x1ed   :  { %2303 = vmatpush2.bf16.msra.mxu0 %v3399_v33 }
 0x1ee   :  { %2304 = vmatprep.subr.bf16.mxu0 %v3404_v34 }
 0x1ef   :  { %2262 = vmatpush2.bf16.msra.mxu1 %v3354_v27 }
 0x1f0   :  { %2933 = vmatprep.subr.bf16.mxu1 %v3405_v58 }
 0x1f1   :  { %2305 = vmatpush2.bf16.msra.mxu0 %v3402_v35 }
 0x1f2   :  { %v1599_v36 = vpop.f32.mrf.mxu1  ;;  %v1642_v37 = vpop.f32.mrf.mxu0 }
 0x1f3   :  { %v1600_v42 = vadd.f32 %v1599_v36, %v588_v39 }
 0x1f4   :  { %v1601_v62 = vpop.f32.mrf.mxu1  ;;  %v1644_v63 = vpop.f32.mrf.mxu0 }
 0x1f5   :  { %v1602_v49 = vadd.f32 %v1601_v62, %v592_v13  ;;  %v1643_v50 = vadd.f32 %v1642_v37, %v1600_v42  ;;  %v3413_v42 = vld [vmem:[#allocation11 + $0x58] sm:$0xff]  }
 0x1f6   :  { %v1603_v38 = vpop.f32.mrf.mxu1  ;;  %v1646_v43 = vpop.f32.mrf.mxu0 }
 0x1f7   :  { %v1604_v41 = vadd.f32 %v1603_v38, %v588_v39  ;;  %v1645_v47 = vadd.f32 %v1644_v63, %v1602_v49  ;;  %v3406_v38 = vld [vmem:[#allocation11 + $0x38] sm:$0xff]   ;;  %v3408_v39 = vld [vmem:[#allocation11 + $0x30] sm:$0xff]   ;;  %v3409_v63 = vld [vmem:[#allocation11 + $0x68] sm:$0xff]  }
 0x1f8   :  { %v1605_v40 = vpop.f32.mrf.mxu1  ;;  %v1648_v51 = vpop.f32.mrf.mxu0  ;;  %v3411_v49 = vld [vmem:[#allocation11 + $0x60] sm:$0xff]  }
 0x1f9   :  { %v1606_v45 = vadd.f32 %v1605_v40, %v592_v13  ;;  %v1647_v48 = vadd.f32 %v1646_v43, %v1604_v41  ;;  %v3407_v13 = vld [vmem:[#allocation11 + $0x70] sm:$0xff]   ;;  %v3410_v40 = vld [vmem:[#allocation11 + $0x28] sm:$0xff]   ;;  %v3412_v41 = vld [vmem:[#allocation11 + $0x20] sm:$0xff]  }
 0x1fa   :  { %v3414_v43 = vld [vmem:[#allocation11 + $0x18] sm:$0xff]  }
 0x1fb   :  { %v1649_v53 = vadd.f32 %v1648_v51, %v1606_v45  ;;  %v3416_v45 = vld [vmem:[#allocation11 + $0x10] sm:$0xff]   ;;  %v3421_v51 = vld [vmem:[#allocation13 + $0x38] sm:$0xff]  }
 0x232   :  { %v1685_v44 = vpop.f32.mrf.mxu1  ;;  %v1728_v5 = vpop.f32.mrf.mxu0 }
 0x233   :  { %v1686_v56 = vadd.f32 %v1685_v44, %v1643_v50  ;;  %v1729_v15 = vadd.f32 %v1728_v5, %v596_v9  ;;  %v3415_v44 = vld [vmem:[#allocation11 + $0x50] sm:$0xff]   ;;  %v3420_v50 = vld [vmem:[#allocation11] sm:$0xff]  }
 0x234   :  { %v1687_v46 = vpop.f32.mrf.mxu1  ;;  %v1730_v6 = vpop.f32.mrf.mxu0 }
 0x235   :  { %v1688_v54 = vadd.f32 %v1687_v46, %v1645_v47  ;;  %v1823_v2 = vmax.f32 %v1686_v56, 0.0  ;;  %v1731_v12 = vadd.f32 %v1730_v6, %v600_v8  ;;  %v3417_v46 = vld [vmem:[#allocation11 + $0x48] sm:$0xff]  }
 0x236   :  { %v1689_v52 = vpop.f32.mrf.mxu1  ;;  %v1732_v7 = vpop.f32.mrf.mxu0  ;;  %v3418_v47 = vld [vmem:[#allocation11 + $0x8] sm:$0xff]  }
 0x237   :  { %v1690_v55 = vadd.f32 %v1689_v52, %v1647_v48  ;;  %v1824_v61 = vmax.f32 %v1688_v54, 0.0  ;;  %v1733_v24 = vadd.f32 %v1732_v7, %v596_v9  ;;  %v3419_v48 = vld [vmem:[#allocation11 + $0x40] sm:$0xff]   ;;  %v3615_v52 = vmov 0.0   ;;  %v3423_v54 = vld [vmem:[#allocation13 + $0x28] sm:$0xff]  }
 0x238   :  { %v1691_v57 = vpop.f32.mrf.mxu1  ;;  %v1734_v10 = vpop.f32.mrf.mxu0  ;;  %2964 = vmatprep.subr.bf16.mxu0 %v3615_v52 }
 0x239   :  { %v1692_v59 = vadd.f32 %v1691_v57, %v1649_v53  ;;  %v1827_v60 = vmax.f32 %v1690_v55, 0.0  ;;  %v1735_v27 = vadd.f32 %v1734_v10, %v600_v8  ;;  %v3422_v53 = vld [vmem:[#allocation13 + $0x30] sm:$0xff]   ;;  %v3424_v55 = vld [vmem:[#allocation13 + $0x20] sm:$0xff]  }
 0x23b   :  { %v1828_v0 = vmax.f32 %v1692_v59, 0.0  ;;  %v1831_v4 = vpack.c.bf16 %v1827_v60, %v1823_v2  ;;  %v1899_v59 = vld [vmem:[%s3798_s6] sm:$0x3] }
 0x23d   :  { %v1832_v3 = vpack.c.bf16 %v1828_v0, %v1824_v61  ;;  %v1908_v61 = vrot.slane %v1899_v59, %v3717_v20  ;;  %v1904_v0 = vrot.slane %v1899_v59, %v3721_v22  ;;  %v3425_v22 = vld [vmem:[#allocation13 + $0x18] sm:$0xff]  }
 0x23f   :  { %2263 = vmatprep.mubr.bf16.mxu1 %v1832_v3 }
 0x240   :  { %2264 = vmatmul.mubr.bf16.vlgmr.msra.gmra.mxu1 %v1831_v4 }
 0x241   :  { %2934 = vmatpush3.bf16.msra.mxu1 %v3406_v38 }
 0x242   :  { %2935 = vmatprep.subr.bf16.mxu1 %v3407_v13 }
 0x245   :  { %2936 = vmatpush3.bf16.msra.mxu1 %v3408_v39 }
 0x246   :  { %2937 = vmatprep.subr.bf16.mxu1 %v3409_v63 }
 0x249   :  { %2938 = vmatpush3.bf16.msra.mxu1 %v3410_v40 }
 0x24a   :  { %2939 = vmatprep.subr.bf16.mxu1 %v3411_v49 }
 0x24d   :  { %2940 = vmatpush3.bf16.msra.mxu1 %v3412_v41 }
 0x24e   :  { %2941 = vmatprep.subr.bf16.mxu1 %v3413_v42 }
 0x251   :  { %2942 = vmatpush3.bf16.msra.mxu1 %v3414_v43 }
 0x252   :  { %2943 = vmatprep.subr.bf16.mxu1 %v3415_v44 }
 0x255   :  { %2944 = vmatpush3.bf16.msra.mxu1 %v3416_v45 }
 0x256   :  { %2945 = vmatprep.subr.bf16.mxu1 %v3417_v46 }
 0x259   :  { %2946 = vmatpush3.bf16.msra.mxu1 %v3418_v47 }
 0x25a   :  { %2947 = vmatprep.subr.bf16.mxu1 %v3419_v48 }
 0x25d   :  { %2948 = vmatpush3.bf16.msra.mxu1 %v3420_v50 }
 0x272   :  { %v1771_v11 = vpop.f32.mrf.mxu1 }
 0x273   :  { %v1814_v14 = vpop.f32.mrf.mxu0  ;;  %v1772_v25 = vadd.f32 %v1771_v11, %v1729_v15 }
 0x274   :  { %v1773_v16 = vpop.f32.mrf.mxu1 }
 0x275   :  { %v1774_v17 = vadd.f32 %v1773_v16, %v1731_v12  ;;  %v1816_v18 = vpop.f32.mrf.mxu0  ;;  %v1815_v19 = vadd.f32 %v1814_v14, %v1772_v25 }
 0x276   :  { %v1775_v26 = vpop.f32.mrf.mxu1 }
 0x277   :  { %v1776_v1 = vadd.f32 %v1775_v26, %v1733_v24  ;;  %v1818_v28 = vpop.f32.mrf.mxu0  ;;  %v1817_v30 = vadd.f32 %v1816_v18, %v1774_v17  ;;  %v1825_v36 = vmax.f32 %v1815_v19, 0.0  ;;  %v3426_v26 = vld [vmem:[#allocation13 + $0x10] sm:$0xff]  }
 0x278   :  { %v1777_v29 = vpop.f32.mrf.mxu1 }
 0x279   :  { %v1819_v21 = vadd.f32 %v1818_v28, %v1776_v1  ;;  %v1778_v31 = vadd.f32 %v1777_v29, %v1735_v27  ;;  %v1820_v23 = vpop.f32.mrf.mxu0  ;;  %v1826_v34 = vmax.f32 %v1817_v30, 0.0  ;;  %v3427_v27 = vld [vmem:[#allocation13 + $0x8] sm:$0xff]   ;;  %v3428_v1 = vld [vmem:[#allocation13] sm:$0xff]  }
 0x27b   :  { %v1821_v32 = vadd.f32 %v1820_v23, %v1778_v31  ;;  %v1829_v33 = vmax.f32 %v1819_v21, 0.0  ;;  %v2907_v21 = vld [vmem:[%s3800_s8] ss:$0 sm:$0xff]  ;;  %s3569_s8 = scalar_lea.vmem %s2622_s22, 256 }
 0x27c   :  { %p3570_p7 = scmp.ne.s32.totalorder %s2622_s22, %s3569_s8  ;;  %p3575_p9 = scmp.lt.s32.totalorder %s3569_s8, %s3569_s8 }
 0x27d   :  { %v1830_v35 = vmax.f32 %v1821_v32, 0.0  ;;  %v1833_v37 = vpack.c.bf16 %v1829_v33, %v1825_v36 }
 0x27e   :  { %p3576_p10 = por %p3575_p9, %p3574_p8 }
 0x27f   :  { %v1834_v62 = vpack.c.bf16 %v1830_v35, %v1826_v34 }
 0x280   :  { %p3577_p11 = pnand %p3576_p10, %p3570_p7 }
 0x281   :  { %2306 = vmatprep.mubr.bf16.mxu0 %v1834_v62  ;;  %v2924_v62 = vld [vmem:[%s3802_s10] ss:$0 sm:$0xff] }
 0x282   :  { %2307 = vmatmul.mubr.bf16.vlgmr.msra.gmra.mxu0 %v1833_v37 }
 0x283   :  { %2965 = vmatpush3.bf16.msra.mxu0 %v3421_v51  ;;  %2980 = vmatprep.mubr.msk.bf16.mxu0 %vm3616_vm1, %v3615_v52 }
 0x284   :  { %2966 = vmatprep.subr.bf16.mxu0 %v3615_v52 }
 0x287   :  { %2967 = vmatpush3.bf16.msra.mxu0 %v3422_v53 }
 0x288   :  { %2968 = vmatprep.subr.bf16.mxu0 %v3615_v52 }
 0x28b   :  { %2969 = vmatpush3.bf16.msra.mxu0 %v3423_v54 }
 0x28c   :  { %2970 = vmatprep.subr.bf16.mxu0 %v3615_v52 }
 0x28f   :  { %2971 = vmatpush3.bf16.msra.mxu0 %v3424_v55 }
 0x290   :  { %2972 = vmatprep.subr.bf16.mxu0 %v3615_v52 }
 0x293   :  { %2973 = vmatpush3.bf16.msra.mxu0 %v3425_v22 }
 0x294   :  { %2974 = vmatprep.subr.bf16.mxu0 %v3615_v52 }
 0x297   :  { %2975 = vmatpush3.bf16.msra.mxu0 %v3426_v26 }
 0x298   :  { %2976 = vmatprep.subr.bf16.mxu0 %v3615_v52 }
 0x29b   :  { %2977 = vmatpush3.bf16.msra.mxu0 %v3427_v27 }
 0x29c   :  { %2978 = vmatprep.subr.bf16.mxu0 %v3615_v52 }
 0x29f   :  { %2979 = vmatpush3.bf16.msra.mxu0 %v3428_v1 }
 0x300   :  { %v2265_v56 = vpop.f32.mrf.mxu1 }
 0x301   :  { %v2266_v7 = vadd.f32 %v2265_v56, %v1904_v0 }
 0x302   :  { %v2267_v57 = vpop.f32.mrf.mxu1 }
 0x303   :  { %v2268_v5 = vadd.f32 %v2267_v57, %v1908_v61 }
 0x304   :  { %v2269_v60 = vpop.f32.mrf.mxu1 }
 0x305   :  { %v2270_v6 = vadd.f32 %v2269_v60, %v1904_v0 }
 0x306   :  { %v2271_v3 = vpop.f32.mrf.mxu1 }
 0x307   :  { %v2272_v9 = vadd.f32 %v2271_v3, %v1908_v61 }
 0x342   :  { %v2308_v2 = vpop.f32.mrf.mxu0 }
 0x343   :  { %v2309_v12 = vadd.f32 %v2308_v2, %v2266_v7 }
 0x344   :  { %v2310_v4 = vpop.f32.mrf.mxu0 }
 0x345   :  { %v2311_v10 = vadd.f32 %v2310_v4, %v2268_v5  ;;  %v2317_v18 = vmax.f32 %v2309_v12, 0.0 }
 0x346   :  { %v2312_v8 = vpop.f32.mrf.mxu0 }
 0x347   :  { %v2313_v11 = vadd.f32 %v2312_v8, %v2270_v6  ;;  %v2318_v24 = vmax.f32 %v2311_v10, 0.0 }
 0x348   :  { %v2314_v14 = vpop.f32.mrf.mxu0 }
 0x349   :  { %v2315_v15 = vadd.f32 %v2314_v14, %v2272_v9  ;;  %v2319_v16 = vmax.f32 %v2313_v11, 0.0 }
 0x34b   :  { %v2320_v17 = vmax.f32 %v2315_v15, 0.0  ;;  %v2321_v25 = vpack.c.bf16 %v2319_v16, %v2317_v18 }
 0x34d   :  { %v2322_v20 = vpack.c.bf16 %v2320_v17, %v2318_v24 }
 0x34f   :  { %2490 = vmatprep.mubr.bf16.mxu1 %v2322_v20 }
 0x350   :  { %2491 = vmatmul.mubr.bf16.vlgmr.msra.gmra.mxu1 %v2321_v25 }
 0x410   :  { %v2949_v28 = vpop.f32.mrf.mxu1 }
 0x412   :  { %v2950_v29 = vpop.f32.mrf.mxu1 }
 0x413   :  { %v2951_v30 = vadd.f32 %v2950_v29, %v2949_v28 }
 0x414   :  { %v2952_v31 = vpop.f32.mrf.mxu1 }
 0x415   :  { %v2493_v23 = vadd.f32 %v2951_v30, %v2907_v21 }
 0x416   :  { %v2953_v19 = vpop.f32.mrf.mxu1 }
 0x417   :  { %v2954_v32 = vadd.f32 %v2953_v19, %v2952_v31  ;;  %v2499_v34 = vmax.f32 %v2493_v23, 0.0 }
 0x419   :  { %v2496_v33 = vadd.f32 %v2954_v32, %v2907_v21 }
 0x41b   :  { %v2500_v35 = vmax.f32 %v2496_v33, 0.0 }
 0x41d   :  { %v2501_v36 = vpack.c.bf16 %v2500_v35, %v2499_v34 }
 0x41f   :  { %2981 = vmatmul.mubr.bf16.vlgmr.msra.gmra.mxu0 %v2501_v36 }
 0x4df   :  { %v2607_v37 = vpop.f32.mrf.mxu0 }
 0x4e0   :  { %v2608_v58 = vadd.f32 %v2924_v62, %v2607_v37 }
 0x4e1   :  { %v2982_v38 = vpop.f32.mrf.mxu0 }
 0x4e2   :  { %2614 = vst [vmem:[#allocation14] sm:$0xff] %v2608_v58 }
 0x4e3   :  { %v2610_v13 = vpop.f32.mrf.mxu0 }
 0x4e4   :  { %v2611_v39 = vadd.f32 %v2924_v62, %v2610_v13 }
 0x4e5   :  { %v2983_v63 = vpop.f32.mrf.mxu0 }
 0x4e6   :  { %2615 = vst [vmem:[#allocation14 + $0x8] sm:$0xff] %v2611_v39 }
 0x4e7   :  { %3580 = shalt.err (!%p3577_p11)
}
 0x4e8   :  { %2627 = dma.vmem_to_hbm [thread:$0]  %s2622_s22, 256, %s3803_s11, [#allocation4], %s3609_s20, %s3609_s20, %s3610_s21  }
 0x4e9   :  { %3597 = dma.done.wait [#allocation4], 256  }
 0x4ea   :  { %3598 = vsyncadd [#allocation4], 4294967040 }
 0x4eb   :  { %2631 = vsyncpa [#allocation3], 1 }
 0x4ec   :  { %2632 = vsyncpa [#allocation6], 1 }
 0x4ed   :  { %2633 = vsyncpa [#allocation9], 1 }
 0x4ee   :  { %2634 = vsyncpa [#allocation12], 1 }
 0x4ef   :  { %2635 = vsyncpa [#allocation4], 1 }

</bundles_post_ra>
